<compile_context>
chip_gen: v7x
topology: tpu7x:2x2x1
jax: 0.10.0
libtpu: 0.0.40
codegen_flags: <defaults>
</compile_context>

<pallas_src>
import numpy as np
import jax
import jax.numpy as jnp
from jax import lax
from jax.experimental import pallas as pl
from jax.experimental.pallas import tpu as pltpu


# ---------------------------------------------------------------------------
# Fused kernel: conv1+pool -> conv2+pool -> linear+sigmoid for ONE image.
# ---------------------------------------------------------------------------
def _disc_kernel(xe_ref, xo_ref, w1b_ref, b1_ref, w2_ref, b2_ref, wl_ref, bl_ref,
                 o_ref, h1_scr):
    C = xe_ref.shape[1]

    # ----- conv1 (3x3) + bias + LeakyReLU(0.2) + 2x2 maxpool -> h1, rows = pw*15 + ph -----
    # LHS rows 0..14  -> conv1 output rows oh1 = 2*ph   (even half)
    # LHS rows 15..29 -> conv1 output rows oh1 = 2*ph+1 (odd half)
    def lhs_half(half):
        pieces = []
        for c in range(C):
            for i1 in range(3):
                par = (i1 + half) % 2          # source row parity
                q0 = (i1 + half) // 2          # source row offset inside parity plane
                src = xe_ref if par == 0 else xo_ref
                pieces.append(src[0, c, q0:q0 + 15, :])        # (15, 32) contiguous
        return jnp.concatenate(pieces, axis=1)                 # (15, 96C)

    lhs = jnp.concatenate([lhs_half(0), lhs_half(1)], axis=0)  # (30, 96C)
    conv1v = jnp.dot(lhs, w1b_ref[...],
                     preferred_element_type=jnp.float32)       # (30, 1024) = (oh1-parity, ow1*32+o)
    hp = jnp.maximum(conv1v[0:15, :], conv1v[15:30, :])        # max over oh1 parity, (15, 1024)

    b1v = b1_ref[...]                                          # (1, 32)
    for pw in range(15):
        slab = jnp.maximum(hp[:, 64 * pw: 64 * pw + 32],
                           hp[:, 64 * pw + 32: 64 * pw + 64])  # max over ow1 parity, (15, 32)
        y = slab + b1v                                         # bias after max (commutes exactly)
        y = jnp.where(y > 0, y, 0.2 * y)                       # LeakyReLU(0.2)
        h1_scr[pw * 15:(pw + 1) * 15, :] = y                   # h1[ph, pw, :] at row pw*15+ph

    # ----- conv2 (4x4) + bias + LeakyReLU(0.2) + 2x2 maxpool + Linear(4608,1) + sigmoid -----
    # Tap (i, j) of the 4x4 kernel is h1_scr shifted by j*15 + i rows -> contiguous slice.
    pieces2 = []
    for i in range(4):
        for j in range(4):
            d = j * 15 + i
            pieces2.append(h1_scr[d:d + 177, :])               # (177, 32)
    patches = jnp.concatenate(pieces2, axis=1).astype(jnp.bfloat16)   # (177, 512)
    conv2v = jnp.dot(patches, w2_ref[...],
                     preferred_element_type=jnp.float32)       # (177, 128); valid rows p=ow*15+oh

    b2v = b2_ref[...]                                          # (1, 128)
    acc = jnp.zeros((1, 128), jnp.float32)
    for pc in range(6):
        top = conv2v[(2 * pc) * 15:(2 * pc) * 15 + 12, :]          # ow = 2*pc
        bot = conv2v[(2 * pc + 1) * 15:(2 * pc + 1) * 15 + 12, :]  # ow = 2*pc + 1
        blk = jnp.maximum(top, bot)                                # (12, 128)
        rows = [jnp.maximum(blk[2 * pr:2 * pr + 1, :], blk[2 * pr + 1:2 * pr + 2, :])
                for pr in range(6)]
        pooled = jnp.concatenate(rows, axis=0)                     # (6, 128), row = pr
        y = pooled + b2v
        y = jnp.where(y > 0, y, 0.2 * y)                           # LeakyReLU(0.2)
        acc = acc + jnp.sum(y * wl_ref[pc * 6:(pc + 1) * 6, :], axis=0, keepdims=True)

    logit = jnp.sum(acc, axis=1, keepdims=True) + bl_ref[...]      # (1, 1)
    z = jnp.exp(-jnp.abs(logit))
    sig = jnp.where(logit >= 0, 1.0 / (1.0 + z), z / (1.0 + z))    # exact, stable sigmoid
    o_ref[...] = sig.reshape(1, 1, 1)


# ---------------------------------------------------------------------------
# Forward pass (inference: Dropout2d = identity).
# ---------------------------------------------------------------------------
@jax.jit
def discriminator_forward(img_nchw, kparams):
    b, c, h, w = img_nchw.shape
    assert h == 32 and w == 32, "Linear(6*6*128) implies 32x32 inputs"
    x = img_nchw.astype(jnp.float32)
    x_even = x[:, :, 0::2, :]      # (B, C, 16, 32) rows 0,2,...  (cheap dense XLA slice)
    x_odd = x[:, :, 1::2, :]       # (B, C, 16, 32) rows 1,3,...

    out = pl.pallas_call(
        _disc_kernel,
        out_shape=jax.ShapeDtypeStruct((b, 1, 1), jnp.float32),
        grid=(b,),
        in_specs=[
            pl.BlockSpec((1, c, 16, 32), lambda i: (i, 0, 0, 0)),
            pl.BlockSpec((1, c, 16, 32), lambda i: (i, 0, 0, 0)),
            pl.BlockSpec((c * 96, 1024), lambda i: (0, 0)),
            pl.BlockSpec((1, 32), lambda i: (0, 0)),
            pl.BlockSpec((512, 128), lambda i: (0, 0)),
            pl.BlockSpec((1, 128), lambda i: (0, 0)),
            pl.BlockSpec((36, 128), lambda i: (0, 0)),
            pl.BlockSpec((1, 1), lambda i: (0, 0)),
        ],
        out_specs=pl.BlockSpec((1, 1, 1), lambda i: (i, 0, 0)),
        scratch_shapes=[pltpu.VMEM((225, 32), jnp.float32)],
        compiler_params=pltpu.CompilerParams(dimension_semantics=("parallel",)),
    )(x_even, x_odd, kparams["w1b"], kparams["b1"], kparams["w2"],
      kparams["b2"], kparams["wl"], kparams["bl"])
    return out.reshape(b, 1)


# ---------------------------------------------------------------------------
# One-time parameter re-layout for the kernel (done once at init).
# ---------------------------------------------------------------------------
def prepare_kernel_params(params):
    w1 = np.asarray(params["w1"], dtype=np.float32)          # (32, C, 3, 3)
    C = w1.shape[1]
    # Banded conv1 weight: wband[(c*3+i1)*32 + w, ow1*32 + o] = w1[o, c, i1, w-ow1], w-ow1 in 0..2
    # (columns 960..1023 are zero padding so N is a multiple of 128; they are never read).
    wband = np.zeros((C * 96, 1024), np.float32)
    for c in range(C):
        for i1 in range(3):
            for j1 in range(3):
                for ow1 in range(30):
                    wband[(c * 3 + i1) * 32 + ow1 + j1, ow1 * 32:(ow1 + 1) * 32] = w1[:, c, i1, j1]
    return {
        "w1b": jnp.asarray(wband, jnp.float32),
        "b1": params["b1"].reshape(1, 32).astype(jnp.float32),
        # conv2: (128, 32, 4, 4) -> (i, j, c, o) -> (512, 128), row = (i*4+j)*32 + c
        "w2": params["w2"].transpose(2, 3, 1, 0).reshape(512, 128).astype(jnp.bfloat16),
        "b2": params["b2"].reshape(1, 128).astype(jnp.float32),
        # linear: permute to w-major pooled order: wl_perm[pc*6 + pr, o] = wl[0, o*36 + pr*6 + pc]
        "wl": params["wl"].reshape(128, 6, 6).transpose(2, 1, 0).reshape(36, 128)
                          .astype(jnp.float32),
        "bl": params["bl"].reshape(1, 1).astype(jnp.float32),
    }


# ---------------------------------------------------------------------------
# Deterministic PyTorch-like parameter init (uniform(-1/sqrt(fan_in), +...)).
# ---------------------------------------------------------------------------
def init_params(key, channels):
    ks = jax.random.split(key, 6)

    def unif(k, shape, fan_in):
        bound = 1.0 / jnp.sqrt(float(fan_in))
        return jax.random.uniform(k, shape, jnp.float32, -bound, bound)

    return {
        "w1": unif(ks[0], (32, channels, 3, 3), channels * 9),
        "b1": unif(ks[1], (32,), channels * 9),
        "w2": unif(ks[2], (128, 32, 4, 4), 32 * 16),
        "b2": unif(ks[3], (128,), 32 * 16),
        "wl": unif(ks[4], (1, 6 * 6 * 128), 6 * 6 * 128),
        "bl": unif(ks[5], (1,), 6 * 6 * 128),
    }


# ---------------------------------------------------------------------------
# Pure-JAX reference (for correctness check of the fused kernel).
# ---------------------------------------------------------------------------
def reference_forward(img, params):
    dn = ("NCHW", "OIHW", "NCHW")
    y = lax.conv_general_dilated(img, params["w1"], (1, 1), "VALID", dimension_numbers=dn)
    y = y + params["b1"].reshape(1, 32, 1, 1)
    y = jnp.where(y > 0, y, 0.2 * y)
    y = lax.reduce_window(y, -jnp.inf, lax.max, (1, 1, 2, 2), (1, 1, 2, 2), "VALID")
    y = lax.conv_general_dilated(y, params["w2"], (1, 1), "VALID", dimension_numbers=dn)
    y = y + params["b2"].reshape(1, 128, 1, 1)
    y = jnp.where(y > 0, y, 0.2 * y)
    y = lax.reduce_window(y, -jnp.inf, lax.max, (1, 1, 2, 2), (1, 1, 2, 2), "VALID")
    flat = y.reshape(y.shape[0], -1)
    logit = flat @ params["wl"].T + params["bl"]
    return jax.nn.sigmoid(logit)


if __name__ == "__main__":
    CHANNELS = 1          # opt.channels (CWRU signals as 1-channel 32x32 images)
    BATCH = 2

    key = jax.random.PRNGKey(0)
    k_img, k_par = jax.random.split(key)
    img = jax.random.normal(k_img, (BATCH, CHANNELS, 32, 32), jnp.float32)   # NCHW
    params = init_params(k_par, CHANNELS)
    kparams = prepare_kernel_params(params)    # one-time weight re-layout

    validity = jax.block_until_ready(discriminator_forward(img, kparams))    # (B, 1)
    ref = jax.block_until_ready(reference_forward(img, params))

    assert validity.shape == (BATCH, 1)
    assert bool(jnp.all(jnp.isfinite(validity)))
    assert bool(jnp.all((validity >= 0.0) & (validity <= 1.0)))
    max_err = float(jnp.max(jnp.abs(validity - ref)))
    assert max_err < 2e-2, f"kernel/reference mismatch: {max_err}"
    # TODO(synk): Dropout2d(0.25) is implemented as eval-mode identity (no train-mode channel RNG).
    print("KERNEL_OK")
</pallas_src>

<mosaic_0001>
module attributes {stable_mosaic.version = 11 : i64} {
  func.func @_disc_kernel(%arg0: i32, %arg1: memref<1x1x16x32xf32, #tpu.memory_space<vmem>>, %arg2: memref<1x1x16x32xf32, #tpu.memory_space<vmem>>, %arg3: memref<96x1024xf32, #tpu.memory_space<vmem>>, %arg4: memref<1x32xf32, #tpu.memory_space<vmem>>, %arg5: memref<512x128xbf16, #tpu.memory_space<vmem>>, %arg6: memref<1x128xf32, #tpu.memory_space<vmem>>, %arg7: memref<36x128xf32, #tpu.memory_space<vmem>>, %arg8: memref<1x1xf32, #tpu.memory_space<vmem>>, %arg9: memref<1x1x1xf32, #tpu.memory_space<vmem>>, %arg10: memref<225x32xf32, #tpu.memory_space<vmem>>) attributes {dimension_semantics = [#tpu.dimension_semantics<parallel>], iteration_bounds = array<i64: 2>, scalar_prefetch = 0 : i64, scratch_operands = 1 : i64, tpu.core_type = #tpu.core_type<tc>, window_params = [{transform_indices = @transform_0, window_bounds = array<i64: 1, 1, 16, 32>}, {transform_indices = @transform_1, window_bounds = array<i64: 1, 1, 16, 32>}, {pipeline_mode = #tpu.pipeline_mode<synchronous>, transform_indices = @transform_2, window_bounds = array<i64: 96, 1024>}, {pipeline_mode = #tpu.pipeline_mode<synchronous>, transform_indices = @transform_3, window_bounds = array<i64: 1, 32>}, {pipeline_mode = #tpu.pipeline_mode<synchronous>, transform_indices = @transform_4, window_bounds = array<i64: 512, 128>}, {pipeline_mode = #tpu.pipeline_mode<synchronous>, transform_indices = @transform_5, window_bounds = array<i64: 1, 128>}, {pipeline_mode = #tpu.pipeline_mode<synchronous>, transform_indices = @transform_6, window_bounds = array<i64: 36, 128>}, {pipeline_mode = #tpu.pipeline_mode<synchronous>, transform_indices = @transform_7, window_bounds = array<i64: 1, 1>}, {transform_indices = @transform_8, window_bounds = array<i64: 1, 1, 1>}]} {
    %c0 = arith.constant 0 : index
    %c0_0 = arith.constant 0 : index
    %c0_1 = arith.constant 0 : index
    %c0_2 = arith.constant 0 : index
    %0 = vector.load %arg1[%c0, %c0_0, %c0_1, %c0_2] : memref<1x1x16x32xf32, #tpu.memory_space<vmem>>, vector<1x1x15x32xf32>
    %1 = vector.shape_cast %0 : vector<1x1x15x32xf32> to vector<15x32xf32>
    %c0_3 = arith.constant 0 : index
    %c0_4 = arith.constant 0 : index
    %c0_5 = arith.constant 0 : index
    %c0_6 = arith.constant 0 : index
    %2 = vector.load %arg2[%c0_3, %c0_4, %c0_5, %c0_6] : memref<1x1x16x32xf32, #tpu.memory_space<vmem>>, vector<1x1x15x32xf32>
    %3 = vector.shape_cast %2 : vector<1x1x15x32xf32> to vector<15x32xf32>
    %c0_7 = arith.constant 0 : index
    %c0_8 = arith.constant 0 : index
    %c1 = arith.constant 1 : index
    %c0_9 = arith.constant 0 : index
    %4 = vector.load %arg1[%c0_7, %c0_8, %c1, %c0_9] : memref<1x1x16x32xf32, #tpu.memory_space<vmem>>, vector<1x1x15x32xf32>
    %5 = vector.shape_cast %4 : vector<1x1x15x32xf32> to vector<15x32xf32>
    %6 = tpu.concatenate %1, %3, %5 in 1 : vector<15x32xf32>, vector<15x32xf32>, vector<15x32xf32> -> vector<15x96xf32>
    %c0_10 = arith.constant 0 : index
    %c0_11 = arith.constant 0 : index
    %c0_12 = arith.constant 0 : index
    %c0_13 = arith.constant 0 : index
    %7 = vector.load %arg2[%c0_10, %c0_11, %c0_12, %c0_13] : memref<1x1x16x32xf32, #tpu.memory_space<vmem>>, vector<1x1x15x32xf32>
    %8 = vector.shape_cast %7 : vector<1x1x15x32xf32> to vector<15x32xf32>
    %c0_14 = arith.constant 0 : index
    %c0_15 = arith.constant 0 : index
    %c1_16 = arith.constant 1 : index
    %c0_17 = arith.constant 0 : index
    %9 = vector.load %arg1[%c0_14, %c0_15, %c1_16, %c0_17] : memref<1x1x16x32xf32, #tpu.memory_space<vmem>>, vector<1x1x15x32xf32>
    %10 = vector.shape_cast %9 : vector<1x1x15x32xf32> to vector<15x32xf32>
    %c0_18 = arith.constant 0 : index
    %c0_19 = arith.constant 0 : index
    %c1_20 = arith.constant 1 : index
    %c0_21 = arith.constant 0 : index
    %11 = vector.load %arg2[%c0_18, %c0_19, %c1_20, %c0_21] : memref<1x1x16x32xf32, #tpu.memory_space<vmem>>, vector<1x1x15x32xf32>
    %12 = vector.shape_cast %11 : vector<1x1x15x32xf32> to vector<15x32xf32>
    %13 = tpu.concatenate %8, %10, %12 in 1 : vector<15x32xf32>, vector<15x32xf32>, vector<15x32xf32> -> vector<15x96xf32>
    %14 = tpu.concatenate %6, %13 in 0 : vector<15x96xf32>, vector<15x96xf32> -> vector<30x96xf32>
    %c0_22 = arith.constant 0 : index
    %c0_23 = arith.constant 0 : index
    %15 = vector.load %arg3[%c0_22, %c0_23] : memref<96x1024xf32, #tpu.memory_space<vmem>>, vector<96x1024xf32>
    %cst = arith.constant dense<0.000000e+00> : vector<30x1024xf32>
    %16 = tpu.matmul %14, %15, %cst {dimension_numbers = #tpu.dot_dimension_numbers<[1], [0], [0], [1], [0, 0, 1, 1], [], []>} : vector<30x96xf32>, vector<96x1024xf32>, vector<30x1024xf32> -> vector<30x1024xf32>
    %17 = vector.extract_strided_slice %16 {offsets = [0, 0], sizes = [15, 1024], strides = [1, 1]} : vector<30x1024xf32> to vector<15x1024xf32>
    %18 = vector.extract_strided_slice %16 {offsets = [15, 0], sizes = [15, 1024], strides = [1, 1]} : vector<30x1024xf32> to vector<15x1024xf32>
    %19 = arith.maximumf %17, %18 : vector<15x1024xf32>
    %c0_24 = arith.constant 0 : index
    %c0_25 = arith.constant 0 : index
    %20 = vector.load %arg4[%c0_24, %c0_25] : memref<1x32xf32, #tpu.memory_space<vmem>>, vector<1x32xf32>
    %21 = vector.extract_strided_slice %19 {offsets = [0, 0], sizes = [15, 32], strides = [1, 1]} : vector<15x1024xf32> to vector<15x32xf32>
    %22 = vector.extract_strided_slice %19 {offsets = [0, 32], sizes = [15, 32], strides = [1, 1]} : vector<15x1024xf32> to vector<15x32xf32>
    %23 = arith.maximumf %21, %22 : vector<15x32xf32>
    %24 = vector.broadcast %20 : vector<1x32xf32> to vector<15x32xf32>
    %25 = arith.addf %23, %24 : vector<15x32xf32>
    %cst_26 = arith.constant 0.000000e+00 : f32
    %26 = vector.broadcast %cst_26 : f32 to vector<15x32xf32>
    %27 = arith.cmpf ogt, %25, %26 : vector<15x32xf32>
    %cst_27 = arith.constant 2.000000e-01 : f32
    %28 = vector.broadcast %cst_27 : f32 to vector<15x32xf32>
    %29 = arith.mulf %28, %25 : vector<15x32xf32>
    %30 = arith.select %27, %25, %29 : vector<15x32xi1>, vector<15x32xf32>
    %c0_28 = arith.constant 0 : index
    %c0_29 = arith.constant 0 : index
    %31 = vector.load %arg10[%c0_28, %c0_29] : memref<225x32xf32, #tpu.memory_space<vmem>>, vector<15x32xf32>
    tpu.vector_store %arg10[%c0_28, %c0_29], %30 {strides = array<i32>} : memref<225x32xf32, #tpu.memory_space<vmem>>, vector<15x32xf32>,
    %32 = vector.extract_strided_slice %19 {offsets = [0, 64], sizes = [15, 32], strides = [1, 1]} : vector<15x1024xf32> to vector<15x32xf32>
    %33 = vector.extract_strided_slice %19 {offsets = [0, 96], sizes = [15, 32], strides = [1, 1]} : vector<15x1024xf32> to vector<15x32xf32>
    %34 = arith.maximumf %32, %33 : vector<15x32xf32>
    %35 = vector.broadcast %20 : vector<1x32xf32> to vector<15x32xf32>
    %36 = arith.addf %34, %35 : vector<15x32xf32>
    %cst_30 = arith.constant 0.000000e+00 : f32
    %37 = vector.broadcast %cst_30 : f32 to vector<15x32xf32>
    %38 = arith.cmpf ogt, %36, %37 : vector<15x32xf32>
    %cst_31 = arith.constant 2.000000e-01 : f32
    %39 = vector.broadcast %cst_31 : f32 to vector<15x32xf32>
    %40 = arith.mulf %39, %36 : vector<15x32xf32>
    %41 = arith.select %38, %36, %40 : vector<15x32xi1>, vector<15x32xf32>
    %c15 = arith.constant 15 : index
    %c0_32 = arith.constant 0 : index
    %42 = vector.load %arg10[%c15, %c0_32] : memref<225x32xf32, #tpu.memory_space<vmem>>, vector<15x32xf32>
    tpu.vector_store %arg10[%c15, %c0_32], %41 {strides = array<i32>} : memref<225x32xf32, #tpu.memory_space<vmem>>, vector<15x32xf32>,
    %43 = vector.extract_strided_slice %19 {offsets = [0, 128], sizes = [15, 32], strides = [1, 1]} : vector<15x1024xf32> to vector<15x32xf32>
    %44 = vector.extract_strided_slice %19 {offsets = [0, 160], sizes = [15, 32], strides = [1, 1]} : vector<15x1024xf32> to vector<15x32xf32>
    %45 = arith.maximumf %43, %44 : vector<15x32xf32>
    %46 = vector.broadcast %20 : vector<1x32xf32> to vector<15x32xf32>
    %47 = arith.addf %45, %46 : vector<15x32xf32>
    %cst_33 = arith.constant 0.000000e+00 : f32
    %48 = vector.broadcast %cst_33 : f32 to vector<15x32xf32>
    %49 = arith.cmpf ogt, %47, %48 : vector<15x32xf32>
    %cst_34 = arith.constant 2.000000e-01 : f32
    %50 = vector.broadcast %cst_34 : f32 to vector<15x32xf32>
    %51 = arith.mulf %50, %47 : vector<15x32xf32>
    %52 = arith.select %49, %47, %51 : vector<15x32xi1>, vector<15x32xf32>
    %c30 = arith.constant 30 : index
    %c0_35 = arith.constant 0 : index
    %53 = vector.load %arg10[%c30, %c0_35] : memref<225x32xf32, #tpu.memory_space<vmem>>, vector<15x32xf32>
    tpu.vector_store %arg10[%c30, %c0_35], %52 {strides = array<i32>} : memref<225x32xf32, #tpu.memory_space<vmem>>, vector<15x32xf32>,
    %54 = vector.extract_strided_slice %19 {offsets = [0, 192], sizes = [15, 32], strides = [1, 1]} : vector<15x1024xf32> to vector<15x32xf32>
    %55 = vector.extract_strided_slice %19 {offsets = [0, 224], sizes = [15, 32], strides = [1, 1]} : vector<15x1024xf32> to vector<15x32xf32>
    %56 = arith.maximumf %54, %55 : vector<15x32xf32>
    %57 = vector.broadcast %20 : vector<1x32xf32> to vector<15x32xf32>
    %58 = arith.addf %56, %57 : vector<15x32xf32>
    %cst_36 = arith.constant 0.000000e+00 : f32
    %59 = vector.broadcast %cst_36 : f32 to vector<15x32xf32>
    %60 = arith.cmpf ogt, %58, %59 : vector<15x32xf32>
    %cst_37 = arith.constant 2.000000e-01 : f32
    %61 = vector.broadcast %cst_37 : f32 to vector<15x32xf32>
    %62 = arith.mulf %61, %58 : vector<15x32xf32>
    %63 = arith.select %60, %58, %62 : vector<15x32xi1>, vector<15x32xf32>
    %c45 = arith.constant 45 : index
    %c0_38 = arith.constant 0 : index
    %64 = vector.load %arg10[%c45, %c0_38] : memref<225x32xf32, #tpu.memory_space<vmem>>, vector<15x32xf32>
    tpu.vector_store %arg10[%c45, %c0_38], %63 {strides = array<i32>} : memref<225x32xf32, #tpu.memory_space<vmem>>, vector<15x32xf32>,
    %65 = vector.extract_strided_slice %19 {offsets = [0, 256], sizes = [15, 32], strides = [1, 1]} : vector<15x1024xf32> to vector<15x32xf32>
    %66 = vector.extract_strided_slice %19 {offsets = [0, 288], sizes = [15, 32], strides = [1, 1]} : vector<15x1024xf32> to vector<15x32xf32>
    %67 = arith.maximumf %65, %66 : vector<15x32xf32>
    %68 = vector.broadcast %20 : vector<1x32xf32> to vector<15x32xf32>
    %69 = arith.addf %67, %68 : vector<15x32xf32>
    %cst_39 = arith.constant 0.000000e+00 : f32
    %70 = vector.broadcast %cst_39 : f32 to vector<15x32xf32>
    %71 = arith.cmpf ogt, %69, %70 : vector<15x32xf32>
    %cst_40 = arith.constant 2.000000e-01 : f32
    %72 = vector.broadcast %cst_40 : f32 to vector<15x32xf32>
    %73 = arith.mulf %72, %69 : vector<15x32xf32>
    %74 = arith.select %71, %69, %73 : vector<15x32xi1>, vector<15x32xf32>
    %c60 = arith.constant 60 : index
    %c0_41 = arith.constant 0 : index
    %75 = vector.load %arg10[%c60, %c0_41] : memref<225x32xf32, #tpu.memory_space<vmem>>, vector<15x32xf32>
    tpu.vector_store %arg10[%c60, %c0_41], %74 {strides = array<i32>} : memref<225x32xf32, #tpu.memory_space<vmem>>, vector<15x32xf32>,
    %76 = vector.extract_strided_slice %19 {offsets = [0, 320], sizes = [15, 32], strides = [1, 1]} : vector<15x1024xf32> to vector<15x32xf32>
    %77 = vector.extract_strided_slice %19 {offsets = [0, 352], sizes = [15, 32], strides = [1, 1]} : vector<15x1024xf32> to vector<15x32xf32>
    %78 = arith.maximumf %76, %77 : vector<15x32xf32>
    %79 = vector.broadcast %20 : vector<1x32xf32> to vector<15x32xf32>
    %80 = arith.addf %78, %79 : vector<15x32xf32>
    %cst_42 = arith.constant 0.000000e+00 : f32
    %81 = vector.broadcast %cst_42 : f32 to vector<15x32xf32>
    %82 = arith.cmpf ogt, %80, %81 : vector<15x32xf32>
    %cst_43 = arith.constant 2.000000e-01 : f32
    %83 = vector.broadcast %cst_43 : f32 to vector<15x32xf32>
    %84 = arith.mulf %83, %80 : vector<15x32xf32>
    %85 = arith.select %82, %80, %84 : vector<15x32xi1>, vector<15x32xf32>
    %c75 = arith.constant 75 : index
    %c0_44 = arith.constant 0 : index
    %86 = vector.load %arg10[%c75, %c0_44] : memref<225x32xf32, #tpu.memory_space<vmem>>, vector<15x32xf32>
    tpu.vector_store %arg10[%c75, %c0_44], %85 {strides = array<i32>} : memref<225x32xf32, #tpu.memory_space<vmem>>, vector<15x32xf32>,
    %87 = vector.extract_strided_slice %19 {offsets = [0, 384], sizes = [15, 32], strides = [1, 1]} : vector<15x1024xf32> to vector<15x32xf32>
    %88 = vector.extract_strided_slice %19 {offsets = [0, 416], sizes = [15, 32], strides = [1, 1]} : vector<15x1024xf32> to vector<15x32xf32>
    %89 = arith.maximumf %87, %88 : vector<15x32xf32>
    %90 = vector.broadcast %20 : vector<1x32xf32> to vector<15x32xf32>
    %91 = arith.addf %89, %90 : vector<15x32xf32>
    %cst_45 = arith.constant 0.000000e+00 : f32
    %92 = vector.broadcast %cst_45 : f32 to vector<15x32xf32>
    %93 = arith.cmpf ogt, %91, %92 : vector<15x32xf32>
    %cst_46 = arith.constant 2.000000e-01 : f32
    %94 = vector.broadcast %cst_46 : f32 to vector<15x32xf32>
    %95 = arith.mulf %94, %91 : vector<15x32xf32>
    %96 = arith.select %93, %91, %95 : vector<15x32xi1>, vector<15x32xf32>
    %c90 = arith.constant 90 : index
    %c0_47 = arith.constant 0 : index
    %97 = vector.load %arg10[%c90, %c0_47] : memref<225x32xf32, #tpu.memory_space<vmem>>, vector<15x32xf32>
    tpu.vector_store %arg10[%c90, %c0_47], %96 {strides = array<i32>} : memref<225x32xf32, #tpu.memory_space<vmem>>, vector<15x32xf32>,
    %98 = vector.extract_strided_slice %19 {offsets = [0, 448], sizes = [15, 32], strides = [1, 1]} : vector<15x1024xf32> to vector<15x32xf32>
    %99 = vector.extract_strided_slice %19 {offsets = [0, 480], sizes = [15, 32], strides = [1, 1]} : vector<15x1024xf32> to vector<15x32xf32>
    %100 = arith.maximumf %98, %99 : vector<15x32xf32>
    %101 = vector.broadcast %20 : vector<1x32xf32> to vector<15x32xf32>
    %102 = arith.addf %100, %101 : vector<15x32xf32>
    %cst_48 = arith.constant 0.000000e+00 : f32
    %103 = vector.broadcast %cst_48 : f32 to vector<15x32xf32>
    %104 = arith.cmpf ogt, %102, %103 : vector<15x32xf32>
    %cst_49 = arith.constant 2.000000e-01 : f32
    %105 = vector.broadcast %cst_49 : f32 to vector<15x32xf32>
    %106 = arith.mulf %105, %102 : vector<15x32xf32>
    %107 = arith.select %104, %102, %106 : vector<15x32xi1>, vector<15x32xf32>
    %c105 = arith.constant 105 : index
    %c0_50 = arith.constant 0 : index
    %108 = vector.load %arg10[%c105, %c0_50] : memref<225x32xf32, #tpu.memory_space<vmem>>, vector<15x32xf32>
    tpu.vector_store %arg10[%c105, %c0_50], %107 {strides = array<i32>} : memref<225x32xf32, #tpu.memory_space<vmem>>, vector<15x32xf32>,
    %109 = vector.extract_strided_slice %19 {offsets = [0, 512], sizes = [15, 32], strides = [1, 1]} : vector<15x1024xf32> to vector<15x32xf32>
    %110 = vector.extract_strided_slice %19 {offsets = [0, 544], sizes = [15, 32], strides = [1, 1]} : vector<15x1024xf32> to vector<15x32xf32>
    %111 = arith.maximumf %109, %110 : vector<15x32xf32>
    %112 = vector.broadcast %20 : vector<1x32xf32> to vector<15x32xf32>
    %113 = arith.addf %111, %112 : vector<15x32xf32>
    %cst_51 = arith.constant 0.000000e+00 : f32
    %114 = vector.broadcast %cst_51 : f32 to vector<15x32xf32>
    %115 = arith.cmpf ogt, %113, %114 : vector<15x32xf32>
    %cst_52 = arith.constant 2.000000e-01 : f32
    %116 = vector.broadcast %cst_52 : f32 to vector<15x32xf32>
    %117 = arith.mulf %116, %113 : vector<15x32xf32>
    %118 = arith.select %115, %113, %117 : vector<15x32xi1>, vector<15x32xf32>
    %c120 = arith.constant 120 : index
    %c0_53 = arith.constant 0 : index
    %119 = vector.load %arg10[%c120, %c0_53] : memref<225x32xf32, #tpu.memory_space<vmem>>, vector<15x32xf32>
    tpu.vector_store %arg10[%c120, %c0_53], %118 {strides = array<i32>} : memref<225x32xf32, #tpu.memory_space<vmem>>, vector<15x32xf32>,
    %120 = vector.extract_strided_slice %19 {offsets = [0, 576], sizes = [15, 32], strides = [1, 1]} : vector<15x1024xf32> to vector<15x32xf32>
    %121 = vector.extract_strided_slice %19 {offsets = [0, 608], sizes = [15, 32], strides = [1, 1]} : vector<15x1024xf32> to vector<15x32xf32>
    %122 = arith.maximumf %120, %121 : vector<15x32xf32>
    %123 = vector.broadcast %20 : vector<1x32xf32> to vector<15x32xf32>
    %124 = arith.addf %122, %123 : vector<15x32xf32>
    %cst_54 = arith.constant 0.000000e+00 : f32
    %125 = vector.broadcast %cst_54 : f32 to vector<15x32xf32>
    %126 = arith.cmpf ogt, %124, %125 : vector<15x32xf32>
    %cst_55 = arith.constant 2.000000e-01 : f32
    %127 = vector.broadcast %cst_55 : f32 to vector<15x32xf32>
    %128 = arith.mulf %127, %124 : vector<15x32xf32>
    %129 = arith.select %126, %124, %128 : vector<15x32xi1>, vector<15x32xf32>
    %c135 = arith.constant 135 : index
    %c0_56 = arith.constant 0 : index
    %130 = vector.load %arg10[%c135, %c0_56] : memref<225x32xf32, #tpu.memory_space<vmem>>, vector<15x32xf32>
    tpu.vector_store %arg10[%c135, %c0_56], %129 {strides = array<i32>} : memref<225x32xf32, #tpu.memory_space<vmem>>, vector<15x32xf32>,
    %131 = vector.extract_strided_slice %19 {offsets = [0, 640], sizes = [15, 32], strides = [1, 1]} : vector<15x1024xf32> to vector<15x32xf32>
    %132 = vector.extract_strided_slice %19 {offsets = [0, 672], sizes = [15, 32], strides = [1, 1]} : vector<15x1024xf32> to vector<15x32xf32>
    %133 = arith.maximumf %131, %132 : vector<15x32xf32>
    %134 = vector.broadcast %20 : vector<1x32xf32> to vector<15x32xf32>
    %135 = arith.addf %133, %134 : vector<15x32xf32>
    %cst_57 = arith.constant 0.000000e+00 : f32
    %136 = vector.broadcast %cst_57 : f32 to vector<15x32xf32>
    %137 = arith.cmpf ogt, %135, %136 : vector<15x32xf32>
    %cst_58 = arith.constant 2.000000e-01 : f32
    %138 = vector.broadcast %cst_58 : f32 to vector<15x32xf32>
    %139 = arith.mulf %138, %135 : vector<15x32xf32>
    %140 = arith.select %137, %135, %139 : vector<15x32xi1>, vector<15x32xf32>
    %c150 = arith.constant 150 : index
    %c0_59 = arith.constant 0 : index
    %141 = vector.load %arg10[%c150, %c0_59] : memref<225x32xf32, #tpu.memory_space<vmem>>, vector<15x32xf32>
    tpu.vector_store %arg10[%c150, %c0_59], %140 {strides = array<i32>} : memref<225x32xf32, #tpu.memory_space<vmem>>, vector<15x32xf32>,
    %142 = vector.extract_strided_slice %19 {offsets = [0, 704], sizes = [15, 32], strides = [1, 1]} : vector<15x1024xf32> to vector<15x32xf32>
    %143 = vector.extract_strided_slice %19 {offsets = [0, 736], sizes = [15, 32], strides = [1, 1]} : vector<15x1024xf32> to vector<15x32xf32>
    %144 = arith.maximumf %142, %143 : vector<15x32xf32>
    %145 = vector.broadcast %20 : vector<1x32xf32> to vector<15x32xf32>
    %146 = arith.addf %144, %145 : vector<15x32xf32>
    %cst_60 = arith.constant 0.000000e+00 : f32
    %147 = vector.broadcast %cst_60 : f32 to vector<15x32xf32>
    %148 = arith.cmpf ogt, %146, %147 : vector<15x32xf32>
    %cst_61 = arith.constant 2.000000e-01 : f32
    %149 = vector.broadcast %cst_61 : f32 to vector<15x32xf32>
    %150 = arith.mulf %149, %146 : vector<15x32xf32>
    %151 = arith.select %148, %146, %150 : vector<15x32xi1>, vector<15x32xf32>
    %c165 = arith.constant 165 : index
    %c0_62 = arith.constant 0 : index
    %152 = vector.load %arg10[%c165, %c0_62] : memref<225x32xf32, #tpu.memory_space<vmem>>, vector<15x32xf32>
    tpu.vector_store %arg10[%c165, %c0_62], %151 {strides = array<i32>} : memref<225x32xf32, #tpu.memory_space<vmem>>, vector<15x32xf32>,
    %153 = vector.extract_strided_slice %19 {offsets = [0, 768], sizes = [15, 32], strides = [1, 1]} : vector<15x1024xf32> to vector<15x32xf32>
    %154 = vector.extract_strided_slice %19 {offsets = [0, 800], sizes = [15, 32], strides = [1, 1]} : vector<15x1024xf32> to vector<15x32xf32>
    %155 = arith.maximumf %153, %154 : vector<15x32xf32>
    %156 = vector.broadcast %20 : vector<1x32xf32> to vector<15x32xf32>
    %157 = arith.addf %155, %156 : vector<15x32xf32>
    %cst_63 = arith.constant 0.000000e+00 : f32
    %158 = vector.broadcast %cst_63 : f32 to vector<15x32xf32>
    %159 = arith.cmpf ogt, %157, %158 : vector<15x32xf32>
    %cst_64 = arith.constant 2.000000e-01 : f32
    %160 = vector.broadcast %cst_64 : f32 to vector<15x32xf32>
    %161 = arith.mulf %160, %157 : vector<15x32xf32>
    %162 = arith.select %159, %157, %161 : vector<15x32xi1>, vector<15x32xf32>
    %c180 = arith.constant 180 : index
    %c0_65 = arith.constant 0 : index
    %163 = vector.load %arg10[%c180, %c0_65] : memref<225x32xf32, #tpu.memory_space<vmem>>, vector<15x32xf32>
    tpu.vector_store %arg10[%c180, %c0_65], %162 {strides = array<i32>} : memref<225x32xf32, #tpu.memory_space<vmem>>, vector<15x32xf32>,
    %164 = vector.extract_strided_slice %19 {offsets = [0, 832], sizes = [15, 32], strides = [1, 1]} : vector<15x1024xf32> to vector<15x32xf32>
    %165 = vector.extract_strided_slice %19 {offsets = [0, 864], sizes = [15, 32], strides = [1, 1]} : vector<15x1024xf32> to vector<15x32xf32>
    %166 = arith.maximumf %164, %165 : vector<15x32xf32>
    %167 = vector.broadcast %20 : vector<1x32xf32> to vector<15x32xf32>
    %168 = arith.addf %166, %167 : vector<15x32xf32>
    %cst_66 = arith.constant 0.000000e+00 : f32
    %169 = vector.broadcast %cst_66 : f32 to vector<15x32xf32>
    %170 = arith.cmpf ogt, %168, %169 : vector<15x32xf32>
    %cst_67 = arith.constant 2.000000e-01 : f32
    %171 = vector.broadcast %cst_67 : f32 to vector<15x32xf32>
    %172 = arith.mulf %171, %168 : vector<15x32xf32>
    %173 = arith.select %170, %168, %172 : vector<15x32xi1>, vector<15x32xf32>
    %c195 = arith.constant 195 : index
    %c0_68 = arith.constant 0 : index
    %174 = vector.load %arg10[%c195, %c0_68] : memref<225x32xf32, #tpu.memory_space<vmem>>, vector<15x32xf32>
    tpu.vector_store %arg10[%c195, %c0_68], %173 {strides = array<i32>} : memref<225x32xf32, #tpu.memory_space<vmem>>, vector<15x32xf32>,
    %175 = vector.extract_strided_slice %19 {offsets = [0, 896], sizes = [15, 32], strides = [1, 1]} : vector<15x1024xf32> to vector<15x32xf32>
    %176 = vector.extract_strided_slice %19 {offsets = [0, 928], sizes = [15, 32], strides = [1, 1]} : vector<15x1024xf32> to vector<15x32xf32>
    %177 = arith.maximumf %175, %176 : vector<15x32xf32>
    %178 = vector.broadcast %20 : vector<1x32xf32> to vector<15x32xf32>
    %179 = arith.addf %177, %178 : vector<15x32xf32>
    %cst_69 = arith.constant 0.000000e+00 : f32
    %180 = vector.broadcast %cst_69 : f32 to vector<15x32xf32>
    %181 = arith.cmpf ogt, %179, %180 : vector<15x32xf32>
    %cst_70 = arith.constant 2.000000e-01 : f32
    %182 = vector.broadcast %cst_70 : f32 to vector<15x32xf32>
    %183 = arith.mulf %182, %179 : vector<15x32xf32>
    %184 = arith.select %181, %179, %183 : vector<15x32xi1>, vector<15x32xf32>
    %c210 = arith.constant 210 : index
    %c0_71 = arith.constant 0 : index
    %185 = vector.load %arg10[%c210, %c0_71] : memref<225x32xf32, #tpu.memory_space<vmem>>, vector<15x32xf32>
    tpu.vector_store %arg10[%c210, %c0_71], %184 {strides = array<i32>} : memref<225x32xf32, #tpu.memory_space<vmem>>, vector<15x32xf32>,
    %c0_72 = arith.constant 0 : index
    %c0_73 = arith.constant 0 : index
    %186 = vector.load %arg10[%c0_72, %c0_73] : memref<225x32xf32, #tpu.memory_space<vmem>>, vector<177x32xf32>
    %c15_74 = arith.constant 15 : index
    %c0_75 = arith.constant 0 : index
    %187 = vector.load %arg10[%c15_74, %c0_75] : memref<225x32xf32, #tpu.memory_space<vmem>>, vector<177x32xf32>
    %c30_76 = arith.constant 30 : index
    %c0_77 = arith.constant 0 : index
    %188 = vector.load %arg10[%c30_76, %c0_77] : memref<225x32xf32, #tpu.memory_space<vmem>>, vector<177x32xf32>
    %c45_78 = arith.constant 45 : index
    %c0_79 = arith.constant 0 : index
    %189 = vector.load %arg10[%c45_78, %c0_79] : memref<225x32xf32, #tpu.memory_space<vmem>>, vector<177x32xf32>
    %c1_80 = arith.constant 1 : index
    %c0_81 = arith.constant 0 : index
    %190 = vector.load %arg10[%c1_80, %c0_81] : memref<225x32xf32, #tpu.memory_space<vmem>>, vector<177x32xf32>
    %c16 = arith.constant 16 : index
    %c0_82 = arith.constant 0 : index
    %191 = vector.load %arg10[%c16, %c0_82] : memref<225x32xf32, #tpu.memory_space<vmem>>, vector<177x32xf32>
    %c31 = arith.constant 31 : index
    %c0_83 = arith.constant 0 : index
    %192 = vector.load %arg10[%c31, %c0_83] : memref<225x32xf32, #tpu.memory_space<vmem>>, vector<177x32xf32>
    %c46 = arith.constant 46 : index
    %c0_84 = arith.constant 0 : index
    %193 = vector.load %arg10[%c46, %c0_84] : memref<225x32xf32, #tpu.memory_space<vmem>>, vector<177x32xf32>
    %c2 = arith.constant 2 : index
    %c0_85 = arith.constant 0 : index
    %194 = vector.load %arg10[%c2, %c0_85] : memref<225x32xf32, #tpu.memory_space<vmem>>, vector<177x32xf32>
    %c17 = arith.constant 17 : index
    %c0_86 = arith.constant 0 : index
    %195 = vector.load %arg10[%c17, %c0_86] : memref<225x32xf32, #tpu.memory_space<vmem>>, vector<177x32xf32>
    %c32 = arith.constant 32 : index
    %c0_87 = arith.constant 0 : index
    %196 = vector.load %arg10[%c32, %c0_87] : memref<225x32xf32, #tpu.memory_space<vmem>>, vector<177x32xf32>
    %c47 = arith.constant 47 : index
    %c0_88 = arith.constant 0 : index
    %197 = vector.load %arg10[%c47, %c0_88] : memref<225x32xf32, #tpu.memory_space<vmem>>, vector<177x32xf32>
    %c3 = arith.constant 3 : index
    %c0_89 = arith.constant 0 : index
    %198 = vector.load %arg10[%c3, %c0_89] : memref<225x32xf32, #tpu.memory_space<vmem>>, vector<177x32xf32>
    %c18 = arith.constant 18 : index
    %c0_90 = arith.constant 0 : index
    %199 = vector.load %arg10[%c18, %c0_90] : memref<225x32xf32, #tpu.memory_space<vmem>>, vector<177x32xf32>
    %c33 = arith.constant 33 : index
    %c0_91 = arith.constant 0 : index
    %200 = vector.load %arg10[%c33, %c0_91] : memref<225x32xf32, #tpu.memory_space<vmem>>, vector<177x32xf32>
    %c48 = arith.constant 48 : index
    %c0_92 = arith.constant 0 : index
    %201 = vector.load %arg10[%c48, %c0_92] : memref<225x32xf32, #tpu.memory_space<vmem>>, vector<177x32xf32>
    %202 = tpu.concatenate %186, %187, %188, %189, %190, %191, %192, %193, %194, %195, %196, %197, %198, %199, %200, %201 in 1 : vector<177x32xf32>, vector<177x32xf32>, vector<177x32xf32>, vector<177x32xf32>, vector<177x32xf32>, vector<177x32xf32>, vector<177x32xf32>, vector<177x32xf32>, vector<177x32xf32>, vector<177x32xf32>, vector<177x32xf32>, vector<177x32xf32>, vector<177x32xf32>, vector<177x32xf32>, vector<177x32xf32>, vector<177x32xf32> -> vector<177x512xf32>
    %203 = arith.truncf %202 : vector<177x512xf32> to vector<177x512xbf16>
    %c0_93 = arith.constant 0 : index
    %c0_94 = arith.constant 0 : index
    %204 = vector.load %arg5[%c0_93, %c0_94] : memref<512x128xbf16, #tpu.memory_space<vmem>>, vector<512x128xbf16>
    %cst_95 = arith.constant dense<0.000000e+00> : vector<177x128xf32>
    %205 = tpu.matmul %203, %204, %cst_95 {dimension_numbers = #tpu.dot_dimension_numbers<[1], [0], [0], [1], [0, 0, 1, 1], [], []>} : vector<177x512xbf16>, vector<512x128xbf16>, vector<177x128xf32> -> vector<177x128xf32>
    %c0_96 = arith.constant 0 : index
    %c0_97 = arith.constant 0 : index
    %206 = vector.load %arg6[%c0_96, %c0_97] : memref<1x128xf32, #tpu.memory_space<vmem>>, vector<1x128xf32>
    %cst_98 = arith.constant 0.000000e+00 : f32
    %207 = vector.broadcast %cst_98 : f32 to vector<1x128xf32>
    %208 = vector.extract_strided_slice %205 {offsets = [0, 0], sizes = [12, 128], strides = [1, 1]} : vector<177x128xf32> to vector<12x128xf32>
    %209 = vector.extract_strided_slice %205 {offsets = [15, 0], sizes = [12, 128], strides = [1, 1]} : vector<177x128xf32> to vector<12x128xf32>
    %210 = arith.maximumf %208, %209 : vector<12x128xf32>
    %211 = vector.extract_strided_slice %210 {offsets = [0, 0], sizes = [1, 128], strides = [1, 1]} : vector<12x128xf32> to vector<1x128xf32>
    %212 = vector.extract_strided_slice %210 {offsets = [1, 0], sizes = [1, 128], strides = [1, 1]} : vector<12x128xf32> to vector<1x128xf32>
    %213 = arith.maximumf %211, %212 : vector<1x128xf32>
    %214 = vector.extract_strided_slice %210 {offsets = [2, 0], sizes = [1, 128], strides = [1, 1]} : vector<12x128xf32> to vector<1x128xf32>
    %215 = vector.extract_strided_slice %210 {offsets = [3, 0], sizes = [1, 128], strides = [1, 1]} : vector<12x128xf32> to vector<1x128xf32>
    %216 = arith.maximumf %214, %215 : vector<1x128xf32>
    %217 = vector.extract_strided_slice %210 {offsets = [4, 0], sizes = [1, 128], strides = [1, 1]} : vector<12x128xf32> to vector<1x128xf32>
    %218 = vector.extract_strided_slice %210 {offsets = [5, 0], sizes = [1, 128], strides = [1, 1]} : vector<12x128xf32> to vector<1x128xf32>
    %219 = arith.maximumf %217, %218 : vector<1x128xf32>
    %220 = vector.extract_strided_slice %210 {offsets = [6, 0], sizes = [1, 128], strides = [1, 1]} : vector<12x128xf32> to vector<1x128xf32>
    %221 = vector.extract_strided_slice %210 {offsets = [7, 0], sizes = [1, 128], strides = [1, 1]} : vector<12x128xf32> to vector<1x128xf32>
    %222 = arith.maximumf %220, %221 : vector<1x128xf32>
    %223 = vector.extract_strided_slice %210 {offsets = [8, 0], sizes = [1, 128], strides = [1, 1]} : vector<12x128xf32> to vector<1x128xf32>
    %224 = vector.extract_strided_slice %210 {offsets = [9, 0], sizes = [1, 128], strides = [1, 1]} : vector<12x128xf32> to vector<1x128xf32>
    %225 = arith.maximumf %223, %224 : vector<1x128xf32>
    %226 = vector.extract_strided_slice %210 {offsets = [10, 0], sizes = [1, 128], strides = [1, 1]} : vector<12x128xf32> to vector<1x128xf32>
    %227 = vector.extract_strided_slice %210 {offsets = [11, 0], sizes = [1, 128], strides = [1, 1]} : vector<12x128xf32> to vector<1x128xf32>
    %228 = arith.maximumf %226, %227 : vector<1x128xf32>
    %229 = tpu.concatenate %213, %216, %219, %222, %225, %228 in 0 : vector<1x128xf32>, vector<1x128xf32>, vector<1x128xf32>, vector<1x128xf32>, vector<1x128xf32>, vector<1x128xf32> -> vector<6x128xf32>
    %230 = vector.broadcast %206 : vector<1x128xf32> to vector<6x128xf32>
    %231 = arith.addf %229, %230 : vector<6x128xf32>
    %cst_99 = arith.constant 0.000000e+00 : f32
    %232 = vector.broadcast %cst_99 : f32 to vector<6x128xf32>
    %233 = arith.cmpf ogt, %231, %232 : vector<6x128xf32>
    %cst_100 = arith.constant 2.000000e-01 : f32
    %234 = vector.broadcast %cst_100 : f32 to vector<6x128xf32>
    %235 = arith.mulf %234, %231 : vector<6x128xf32>
    %236 = arith.select %233, %231, %235 : vector<6x128xi1>, vector<6x128xf32>
    %c0_101 = arith.constant 0 : index
    %c0_102 = arith.constant 0 : index
    %237 = vector.load %arg7[%c0_101, %c0_102] : memref<36x128xf32, #tpu.memory_space<vmem>>, vector<6x128xf32>
    %238 = arith.mulf %236, %237 : vector<6x128xf32>
    %cst_103 = arith.constant dense<0.000000e+00> : vector<128xf32>
    %239 = vector.multi_reduction <add>, %238, %cst_103 [0] : vector<6x128xf32> to vector<128xf32>
    %240 = vector.shape_cast %239 : vector<128xf32> to vector<1x128xf32>
    %241 = arith.addf %207, %240 : vector<1x128xf32>
    %242 = vector.extract_strided_slice %205 {offsets = [30, 0], sizes = [12, 128], strides = [1, 1]} : vector<177x128xf32> to vector<12x128xf32>
    %243 = vector.extract_strided_slice %205 {offsets = [45, 0], sizes = [12, 128], strides = [1, 1]} : vector<177x128xf32> to vector<12x128xf32>
    %244 = arith.maximumf %242, %243 : vector<12x128xf32>
    %245 = vector.extract_strided_slice %244 {offsets = [0, 0], sizes = [1, 128], strides = [1, 1]} : vector<12x128xf32> to vector<1x128xf32>
    %246 = vector.extract_strided_slice %244 {offsets = [1, 0], sizes = [1, 128], strides = [1, 1]} : vector<12x128xf32> to vector<1x128xf32>
    %247 = arith.maximumf %245, %246 : vector<1x128xf32>
    %248 = vector.extract_strided_slice %244 {offsets = [2, 0], sizes = [1, 128], strides = [1, 1]} : vector<12x128xf32> to vector<1x128xf32>
    %249 = vector.extract_strided_slice %244 {offsets = [3, 0], sizes = [1, 128], strides = [1, 1]} : vector<12x128xf32> to vector<1x128xf32>
    %250 = arith.maximumf %248, %249 : vector<1x128xf32>
    %251 = vector.extract_strided_slice %244 {offsets = [4, 0], sizes = [1, 128], strides = [1, 1]} : vector<12x128xf32> to vector<1x128xf32>
    %252 = vector.extract_strided_slice %244 {offsets = [5, 0], sizes = [1, 128], strides = [1, 1]} : vector<12x128xf32> to vector<1x128xf32>
    %253 = arith.maximumf %251, %252 : vector<1x128xf32>
    %254 = vector.extract_strided_slice %244 {offsets = [6, 0], sizes = [1, 128], strides = [1, 1]} : vector<12x128xf32> to vector<1x128xf32>
    %255 = vector.extract_strided_slice %244 {offsets = [7, 0], sizes = [1, 128], strides = [1, 1]} : vector<12x128xf32> to vector<1x128xf32>
    %256 = arith.maximumf %254, %255 : vector<1x128xf32>
    %257 = vector.extract_strided_slice %244 {offsets = [8, 0], sizes = [1, 128], strides = [1, 1]} : vector<12x128xf32> to vector<1x128xf32>
    %258 = vector.extract_strided_slice %244 {offsets = [9, 0], sizes = [1, 128], strides = [1, 1]} : vector<12x128xf32> to vector<1x128xf32>
    %259 = arith.maximumf %257, %258 : vector<1x128xf32>
    %260 = vector.extract_strided_slice %244 {offsets = [10, 0], sizes = [1, 128], strides = [1, 1]} : vector<12x128xf32> to vector<1x128xf32>
    %261 = vector.extract_strided_slice %244 {offsets = [11, 0], sizes = [1, 128], strides = [1, 1]} : vector<12x128xf32> to vector<1x128xf32>
    %262 = arith.maximumf %260, %261 : vector<1x128xf32>
    %263 = tpu.concatenate %247, %250, %253, %256, %259, %262 in 0 : vector<1x128xf32>, vector<1x128xf32>, vector<1x128xf32>, vector<1x128xf32>, vector<1x128xf32>, vector<1x128xf32> -> vector<6x128xf32>
    %264 = vector.broadcast %206 : vector<1x128xf32> to vector<6x128xf32>
    %265 = arith.addf %263, %264 : vector<6x128xf32>
    %cst_104 = arith.constant 0.000000e+00 : f32
    %266 = vector.broadcast %cst_104 : f32 to vector<6x128xf32>
    %267 = arith.cmpf ogt, %265, %266 : vector<6x128xf32>
    %cst_105 = arith.constant 2.000000e-01 : f32
    %268 = vector.broadcast %cst_105 : f32 to vector<6x128xf32>
    %269 = arith.mulf %268, %265 : vector<6x128xf32>
    %270 = arith.select %267, %265, %269 : vector<6x128xi1>, vector<6x128xf32>
    %c6 = arith.constant 6 : index
    %c0_106 = arith.constant 0 : index
    %271 = vector.load %arg7[%c6, %c0_106] : memref<36x128xf32, #tpu.memory_space<vmem>>, vector<6x128xf32>
    %272 = arith.mulf %270, %271 : vector<6x128xf32>
    %cst_107 = arith.constant dense<0.000000e+00> : vector<128xf32>
    %273 = vector.multi_reduction <add>, %272, %cst_107 [0] : vector<6x128xf32> to vector<128xf32>
    %274 = vector.shape_cast %273 : vector<128xf32> to vector<1x128xf32>
    %275 = arith.addf %241, %274 : vector<1x128xf32>
    %276 = vector.extract_strided_slice %205 {offsets = [60, 0], sizes = [12, 128], strides = [1, 1]} : vector<177x128xf32> to vector<12x128xf32>
    %277 = vector.extract_strided_slice %205 {offsets = [75, 0], sizes = [12, 128], strides = [1, 1]} : vector<177x128xf32> to vector<12x128xf32>
    %278 = arith.maximumf %276, %277 : vector<12x128xf32>
    %279 = vector.extract_strided_slice %278 {offsets = [0, 0], sizes = [1, 128], strides = [1, 1]} : vector<12x128xf32> to vector<1x128xf32>
    %280 = vector.extract_strided_slice %278 {offsets = [1, 0], sizes = [1, 128], strides = [1, 1]} : vector<12x128xf32> to vector<1x128xf32>
    %281 = arith.maximumf %279, %280 : vector<1x128xf32>
    %282 = vector.extract_strided_slice %278 {offsets = [2, 0], sizes = [1, 128], strides = [1, 1]} : vector<12x128xf32> to vector<1x128xf32>
    %283 = vector.extract_strided_slice %278 {offsets = [3, 0], sizes = [1, 128], strides = [1, 1]} : vector<12x128xf32> to vector<1x128xf32>
    %284 = arith.maximumf %282, %283 : vector<1x128xf32>
    %285 = vector.extract_strided_slice %278 {offsets = [4, 0], sizes = [1, 128], strides = [1, 1]} : vector<12x128xf32> to vector<1x128xf32>
    %286 = vector.extract_strided_slice %278 {offsets = [5, 0], sizes = [1, 128], strides = [1, 1]} : vector<12x128xf32> to vector<1x128xf32>
    %287 = arith.maximumf %285, %286 : vector<1x128xf32>
    %288 = vector.extract_strided_slice %278 {offsets = [6, 0], sizes = [1, 128], strides = [1, 1]} : vector<12x128xf32> to vector<1x128xf32>
    %289 = vector.extract_strided_slice %278 {offsets = [7, 0], sizes = [1, 128], strides = [1, 1]} : vector<12x128xf32> to vector<1x128xf32>
    %290 = arith.maximumf %288, %289 : vector<1x128xf32>
    %291 = vector.extract_strided_slice %278 {offsets = [8, 0], sizes = [1, 128], strides = [1, 1]} : vector<12x128xf32> to vector<1x128xf32>
    %292 = vector.extract_strided_slice %278 {offsets = [9, 0], sizes = [1, 128], strides = [1, 1]} : vector<12x128xf32> to vector<1x128xf32>
    %293 = arith.maximumf %291, %292 : vector<1x128xf32>
    %294 = vector.extract_strided_slice %278 {offsets = [10, 0], sizes = [1, 128], strides = [1, 1]} : vector<12x128xf32> to vector<1x128xf32>
    %295 = vector.extract_strided_slice %278 {offsets = [11, 0], sizes = [1, 128], strides = [1, 1]} : vector<12x128xf32> to vector<1x128xf32>
    %296 = arith.maximumf %294, %295 : vector<1x128xf32>
    %297 = tpu.concatenate %281, %284, %287, %290, %293, %296 in 0 : vector<1x128xf32>, vector<1x128xf32>, vector<1x128xf32>, vector<1x128xf32>, vector<1x128xf32>, vector<1x128xf32> -> vector<6x128xf32>
    %298 = vector.broadcast %206 : vector<1x128xf32> to vector<6x128xf32>
    %299 = arith.addf %297, %298 : vector<6x128xf32>
    %cst_108 = arith.constant 0.000000e+00 : f32
    %300 = vector.broadcast %cst_108 : f32 to vector<6x128xf32>
    %301 = arith.cmpf ogt, %299, %300 : vector<6x128xf32>
    %cst_109 = arith.constant 2.000000e-01 : f32
    %302 = vector.broadcast %cst_109 : f32 to vector<6x128xf32>
    %303 = arith.mulf %302, %299 : vector<6x128xf32>
    %304 = arith.select %301, %299, %303 : vector<6x128xi1>, vector<6x128xf32>
    %c12 = arith.constant 12 : index
    %c0_110 = arith.constant 0 : index
    %305 = vector.load %arg7[%c12, %c0_110] : memref<36x128xf32, #tpu.memory_space<vmem>>, vector<6x128xf32>
    %306 = arith.mulf %304, %305 : vector<6x128xf32>
    %cst_111 = arith.constant dense<0.000000e+00> : vector<128xf32>
    %307 = vector.multi_reduction <add>, %306, %cst_111 [0] : vector<6x128xf32> to vector<128xf32>
    %308 = vector.shape_cast %307 : vector<128xf32> to vector<1x128xf32>
    %309 = arith.addf %275, %308 : vector<1x128xf32>
    %310 = vector.extract_strided_slice %205 {offsets = [90, 0], sizes = [12, 128], strides = [1, 1]} : vector<177x128xf32> to vector<12x128xf32>
    %311 = vector.extract_strided_slice %205 {offsets = [105, 0], sizes = [12, 128], strides = [1, 1]} : vector<177x128xf32> to vector<12x128xf32>
    %312 = arith.maximumf %310, %311 : vector<12x128xf32>
    %313 = vector.extract_strided_slice %312 {offsets = [0, 0], sizes = [1, 128], strides = [1, 1]} : vector<12x128xf32> to vector<1x128xf32>
    %314 = vector.extract_strided_slice %312 {offsets = [1, 0], sizes = [1, 128], strides = [1, 1]} : vector<12x128xf32> to vector<1x128xf32>
    %315 = arith.maximumf %313, %314 : vector<1x128xf32>
    %316 = vector.extract_strided_slice %312 {offsets = [2, 0], sizes = [1, 128], strides = [1, 1]} : vector<12x128xf32> to vector<1x128xf32>
    %317 = vector.extract_strided_slice %312 {offsets = [3, 0], sizes = [1, 128], strides = [1, 1]} : vector<12x128xf32> to vector<1x128xf32>
    %318 = arith.maximumf %316, %317 : vector<1x128xf32>
    %319 = vector.extract_strided_slice %312 {offsets = [4, 0], sizes = [1, 128], strides = [1, 1]} : vector<12x128xf32> to vector<1x128xf32>
    %320 = vector.extract_strided_slice %312 {offsets = [5, 0], sizes = [1, 128], strides = [1, 1]} : vector<12x128xf32> to vector<1x128xf32>
    %321 = arith.maximumf %319, %320 : vector<1x128xf32>
    %322 = vector.extract_strided_slice %312 {offsets = [6, 0], sizes = [1, 128], strides = [1, 1]} : vector<12x128xf32> to vector<1x128xf32>
    %323 = vector.extract_strided_slice %312 {offsets = [7, 0], sizes = [1, 128], strides = [1, 1]} : vector<12x128xf32> to vector<1x128xf32>
    %324 = arith.maximumf %322, %323 : vector<1x128xf32>
    %325 = vector.extract_strided_slice %312 {offsets = [8, 0], sizes = [1, 128], strides = [1, 1]} : vector<12x128xf32> to vector<1x128xf32>
    %326 = vector.extract_strided_slice %312 {offsets = [9, 0], sizes = [1, 128], strides = [1, 1]} : vector<12x128xf32> to vector<1x128xf32>
    %327 = arith.maximumf %325, %326 : vector<1x128xf32>
    %328 = vector.extract_strided_slice %312 {offsets = [10, 0], sizes = [1, 128], strides = [1, 1]} : vector<12x128xf32> to vector<1x128xf32>
    %329 = vector.extract_strided_slice %312 {offsets = [11, 0], sizes = [1, 128], strides = [1, 1]} : vector<12x128xf32> to vector<1x128xf32>
    %330 = arith.maximumf %328, %329 : vector<1x128xf32>
    %331 = tpu.concatenate %315, %318, %321, %324, %327, %330 in 0 : vector<1x128xf32>, vector<1x128xf32>, vector<1x128xf32>, vector<1x128xf32>, vector<1x128xf32>, vector<1x128xf32> -> vector<6x128xf32>
    %332 = vector.broadcast %206 : vector<1x128xf32> to vector<6x128xf32>
    %333 = arith.addf %331, %332 : vector<6x128xf32>
    %cst_112 = arith.constant 0.000000e+00 : f32
    %334 = vector.broadcast %cst_112 : f32 to vector<6x128xf32>
    %335 = arith.cmpf ogt, %333, %334 : vector<6x128xf32>
    %cst_113 = arith.constant 2.000000e-01 : f32
    %336 = vector.broadcast %cst_113 : f32 to vector<6x128xf32>
    %337 = arith.mulf %336, %333 : vector<6x128xf32>
    %338 = arith.select %335, %333, %337 : vector<6x128xi1>, vector<6x128xf32>
    %c18_114 = arith.constant 18 : index
    %c0_115 = arith.constant 0 : index
    %339 = vector.load %arg7[%c18_114, %c0_115] : memref<36x128xf32, #tpu.memory_space<vmem>>, vector<6x128xf32>
    %340 = arith.mulf %338, %339 : vector<6x128xf32>
    %cst_116 = arith.constant dense<0.000000e+00> : vector<128xf32>
    %341 = vector.multi_reduction <add>, %340, %cst_116 [0] : vector<6x128xf32> to vector<128xf32>
    %342 = vector.shape_cast %341 : vector<128xf32> to vector<1x128xf32>
    %343 = arith.addf %309, %342 : vector<1x128xf32>
    %344 = vector.extract_strided_slice %205 {offsets = [120, 0], sizes = [12, 128], strides = [1, 1]} : vector<177x128xf32> to vector<12x128xf32>
    %345 = vector.extract_strided_slice %205 {offsets = [135, 0], sizes = [12, 128], strides = [1, 1]} : vector<177x128xf32> to vector<12x128xf32>
    %346 = arith.maximumf %344, %345 : vector<12x128xf32>
    %347 = vector.extract_strided_slice %346 {offsets = [0, 0], sizes = [1, 128], strides = [1, 1]} : vector<12x128xf32> to vector<1x128xf32>
    %348 = vector.extract_strided_slice %346 {offsets = [1, 0], sizes = [1, 128], strides = [1, 1]} : vector<12x128xf32> to vector<1x128xf32>
    %349 = arith.maximumf %347, %348 : vector<1x128xf32>
    %350 = vector.extract_strided_slice %346 {offsets = [2, 0], sizes = [1, 128], strides = [1, 1]} : vector<12x128xf32> to vector<1x128xf32>
    %351 = vector.extract_strided_slice %346 {offsets = [3, 0], sizes = [1, 128], strides = [1, 1]} : vector<12x128xf32> to vector<1x128xf32>
    %352 = arith.maximumf %350, %351 : vector<1x128xf32>
    %353 = vector.extract_strided_slice %346 {offsets = [4, 0], sizes = [1, 128], strides = [1, 1]} : vector<12x128xf32> to vector<1x128xf32>
    %354 = vector.extract_strided_slice %346 {offsets = [5, 0], sizes = [1, 128], strides = [1, 1]} : vector<12x128xf32> to vector<1x128xf32>
    %355 = arith.maximumf %353, %354 : vector<1x128xf32>
    %356 = vector.extract_strided_slice %346 {offsets = [6, 0], sizes = [1, 128], strides = [1, 1]} : vector<12x128xf32> to vector<1x128xf32>
    %357 = vector.extract_strided_slice %346 {offsets = [7, 0], sizes = [1, 128], strides = [1, 1]} : vector<12x128xf32> to vector<1x128xf32>
    %358 = arith.maximumf %356, %357 : vector<1x128xf32>
    %359 = vector.extract_strided_slice %346 {offsets = [8, 0], sizes = [1, 128], strides = [1, 1]} : vector<12x128xf32> to vector<1x128xf32>
    %360 = vector.extract_strided_slice %346 {offsets = [9, 0], sizes = [1, 128], strides = [1, 1]} : vector<12x128xf32> to vector<1x128xf32>
    %361 = arith.maximumf %359, %360 : vector<1x128xf32>
    %362 = vector.extract_strided_slice %346 {offsets = [10, 0], sizes = [1, 128], strides = [1, 1]} : vector<12x128xf32> to vector<1x128xf32>
    %363 = vector.extract_strided_slice %346 {offsets = [11, 0], sizes = [1, 128], strides = [1, 1]} : vector<12x128xf32> to vector<1x128xf32>
    %364 = arith.maximumf %362, %363 : vector<1x128xf32>
    %365 = tpu.concatenate %349, %352, %355, %358, %361, %364 in 0 : vector<1x128xf32>, vector<1x128xf32>, vector<1x128xf32>, vector<1x128xf32>, vector<1x128xf32>, vector<1x128xf32> -> vector<6x128xf32>
    %366 = vector.broadcast %206 : vector<1x128xf32> to vector<6x128xf32>
    %367 = arith.addf %365, %366 : vector<6x128xf32>
    %cst_117 = arith.constant 0.000000e+00 : f32
    %368 = vector.broadcast %cst_117 : f32 to vector<6x128xf32>
    %369 = arith.cmpf ogt, %367, %368 : vector<6x128xf32>
    %cst_118 = arith.constant 2.000000e-01 : f32
    %370 = vector.broadcast %cst_118 : f32 to vector<6x128xf32>
    %371 = arith.mulf %370, %367 : vector<6x128xf32>
    %372 = arith.select %369, %367, %371 : vector<6x128xi1>, vector<6x128xf32>
    %c24 = arith.constant 24 : index
    %c0_119 = arith.constant 0 : index
    %373 = vector.load %arg7[%c24, %c0_119] : memref<36x128xf32, #tpu.memory_space<vmem>>, vector<6x128xf32>
    %374 = arith.mulf %372, %373 : vector<6x128xf32>
    %cst_120 = arith.constant dense<0.000000e+00> : vector<128xf32>
    %375 = vector.multi_reduction <add>, %374, %cst_120 [0] : vector<6x128xf32> to vector<128xf32>
    %376 = vector.shape_cast %375 : vector<128xf32> to vector<1x128xf32>
    %377 = arith.addf %343, %376 : vector<1x128xf32>
    %378 = vector.extract_strided_slice %205 {offsets = [150, 0], sizes = [12, 128], strides = [1, 1]} : vector<177x128xf32> to vector<12x128xf32>
    %379 = vector.extract_strided_slice %205 {offsets = [165, 0], sizes = [12, 128], strides = [1, 1]} : vector<177x128xf32> to vector<12x128xf32>
    %380 = arith.maximumf %378, %379 : vector<12x128xf32>
    %381 = vector.extract_strided_slice %380 {offsets = [0, 0], sizes = [1, 128], strides = [1, 1]} : vector<12x128xf32> to vector<1x128xf32>
    %382 = vector.extract_strided_slice %380 {offsets = [1, 0], sizes = [1, 128], strides = [1, 1]} : vector<12x128xf32> to vector<1x128xf32>
    %383 = arith.maximumf %381, %382 : vector<1x128xf32>
    %384 = vector.extract_strided_slice %380 {offsets = [2, 0], sizes = [1, 128], strides = [1, 1]} : vector<12x128xf32> to vector<1x128xf32>
    %385 = vector.extract_strided_slice %380 {offsets = [3, 0], sizes = [1, 128], strides = [1, 1]} : vector<12x128xf32> to vector<1x128xf32>
    %386 = arith.maximumf %384, %385 : vector<1x128xf32>
    %387 = vector.extract_strided_slice %380 {offsets = [4, 0], sizes = [1, 128], strides = [1, 1]} : vector<12x128xf32> to vector<1x128xf32>
    %388 = vector.extract_strided_slice %380 {offsets = [5, 0], sizes = [1, 128], strides = [1, 1]} : vector<12x128xf32> to vector<1x128xf32>
    %389 = arith.maximumf %387, %388 : vector<1x128xf32>
    %390 = vector.extract_strided_slice %380 {offsets = [6, 0], sizes = [1, 128], strides = [1, 1]} : vector<12x128xf32> to vector<1x128xf32>
    %391 = vector.extract_strided_slice %380 {offsets = [7, 0], sizes = [1, 128], strides = [1, 1]} : vector<12x128xf32> to vector<1x128xf32>
    %392 = arith.maximumf %390, %391 : vector<1x128xf32>
    %393 = vector.extract_strided_slice %380 {offsets = [8, 0], sizes = [1, 128], strides = [1, 1]} : vector<12x128xf32> to vector<1x128xf32>
    %394 = vector.extract_strided_slice %380 {offsets = [9, 0], sizes = [1, 128], strides = [1, 1]} : vector<12x128xf32> to vector<1x128xf32>
    %395 = arith.maximumf %393, %394 : vector<1x128xf32>
    %396 = vector.extract_strided_slice %380 {offsets = [10, 0], sizes = [1, 128], strides = [1, 1]} : vector<12x128xf32> to vector<1x128xf32>
    %397 = vector.extract_strided_slice %380 {offsets = [11, 0], sizes = [1, 128], strides = [1, 1]} : vector<12x128xf32> to vector<1x128xf32>
    %398 = arith.maximumf %396, %397 : vector<1x128xf32>
    %399 = tpu.concatenate %383, %386, %389, %392, %395, %398 in 0 : vector<1x128xf32>, vector<1x128xf32>, vector<1x128xf32>, vector<1x128xf32>, vector<1x128xf32>, vector<1x128xf32> -> vector<6x128xf32>
    %400 = vector.broadcast %206 : vector<1x128xf32> to vector<6x128xf32>
    %401 = arith.addf %399, %400 : vector<6x128xf32>
    %cst_121 = arith.constant 0.000000e+00 : f32
    %402 = vector.broadcast %cst_121 : f32 to vector<6x128xf32>
    %403 = arith.cmpf ogt, %401, %402 : vector<6x128xf32>
    %cst_122 = arith.constant 2.000000e-01 : f32
    %404 = vector.broadcast %cst_122 : f32 to vector<6x128xf32>
    %405 = arith.mulf %404, %401 : vector<6x128xf32>
    %406 = arith.select %403, %401, %405 : vector<6x128xi1>, vector<6x128xf32>
    %c30_123 = arith.constant 30 : index
    %c0_124 = arith.constant 0 : index
    %407 = vector.load %arg7[%c30_123, %c0_124] : memref<36x128xf32, #tpu.memory_space<vmem>>, vector<6x128xf32>
    %408 = arith.mulf %406, %407 : vector<6x128xf32>
    %cst_125 = arith.constant dense<0.000000e+00> : vector<128xf32>
    %409 = vector.multi_reduction <add>, %408, %cst_125 [0] : vector<6x128xf32> to vector<128xf32>
    %410 = vector.shape_cast %409 : vector<128xf32> to vector<1x128xf32>
    %411 = arith.addf %377, %410 : vector<1x128xf32>
    %cst_126 = arith.constant dense<0.000000e+00> : vector<1xf32>
    %412 = vector.multi_reduction <add>, %411, %cst_126 [1] : vector<1x128xf32> to vector<1xf32>
    %413 = vector.shape_cast %412 : vector<1xf32> to vector<1x1xf32>
    %c0_127 = arith.constant 0 : index
    %c0_128 = arith.constant 0 : index
    %414 = vector.load %arg8[%c0_127, %c0_128] : memref<1x1xf32, #tpu.memory_space<vmem>>, vector<1x1xf32>
    %415 = arith.addf %413, %414 : vector<1x1xf32>
    %416 = math.absf %415 : vector<1x1xf32>
    %cst_129 = arith.constant 0.000000e+00 : f32
    %417 = vector.broadcast %cst_129 : f32 to vector<1x1xf32>
    %418 = arith.subf %417, %416 : vector<1x1xf32>
    %419 = math.exp %418 : vector<1x1xf32>
    %cst_130 = arith.constant 0.000000e+00 : f32
    %420 = vector.broadcast %cst_130 : f32 to vector<1x1xf32>
    %421 = arith.cmpf oge, %415, %420 : vector<1x1xf32>
    %cst_131 = arith.constant 1.000000e+00 : f32
    %422 = vector.broadcast %cst_131 : f32 to vector<1x1xf32>
    %423 = arith.addf %422, %419 : vector<1x1xf32>
    %cst_132 = arith.constant 1.000000e+00 : f32
    %424 = vector.broadcast %cst_132 : f32 to vector<1x1xf32>
    %425 = arith.divf %424, %423 : vector<1x1xf32>
    %cst_133 = arith.constant 1.000000e+00 : f32
    %426 = vector.broadcast %cst_133 : f32 to vector<1x1xf32>
    %427 = arith.addf %426, %419 : vector<1x1xf32>
    %428 = arith.divf %419, %427 : vector<1x1xf32>
    %429 = arith.select %421, %425, %428 : vector<1x1xi1>, vector<1x1xf32>
    %430 = vector.shape_cast %429 : vector<1x1xf32> to vector<1x1x1xf32>
    %c0_134 = arith.constant 0 : index
    %c0_135 = arith.constant 0 : index
    %c0_136 = arith.constant 0 : index
    %431 = vector.load %arg9[%c0_134, %c0_135, %c0_136] : memref<1x1x1xf32, #tpu.memory_space<vmem>>, vector<1x1x1xf32>
    tpu.vector_store %arg9[%c0_134, %c0_135, %c0_136], %430 {strides = array<i32>} : memref<1x1x1xf32, #tpu.memory_space<vmem>>, vector<1x1x1xf32>,
    return
  }
  func.func @transform_0(%arg0: i32) -> (i32, i32, i32, i32) {
    %c0_i32 = arith.constant 0 : i32
    %c0_i32_0 = arith.constant 0 : i32
    %c0_i32_1 = arith.constant 0 : i32
    %c0_i32_2 = arith.constant 0 : i32
    return %arg0, %c0_i32, %c0_i32_0, %c0_i32_1 : i32, i32, i32, i32
  }
  func.func @transform_1(%arg0: i32) -> (i32, i32, i32, i32) {
    %c0_i32 = arith.constant 0 : i32
    %c0_i32_0 = arith.constant 0 : i32
    %c0_i32_1 = arith.constant 0 : i32
    %c0_i32_2 = arith.constant 0 : i32
    return %arg0, %c0_i32, %c0_i32_0, %c0_i32_1 : i32, i32, i32, i32
  }
  func.func @transform_2(%arg0: i32) -> (i32, i32) {
    %c0_i32 = arith.constant 0 : i32
    %c0_i32_0 = arith.constant 0 : i32
    %c0_i32_1 = arith.constant 0 : i32
    return %c0_i32, %c0_i32_0 : i32, i32
  }
  func.func @transform_3(%arg0: i32) -> (i32, i32) {
    %c0_i32 = arith.constant 0 : i32
    %c0_i32_0 = arith.constant 0 : i32
    %c0_i32_1 = arith.constant 0 : i32
    return %c0_i32, %c0_i32_0 : i32, i32
  }
  func.func @transform_4(%arg0: i32) -> (i32, i32) {
    %c0_i32 = arith.constant 0 : i32
    %c0_i32_0 = arith.constant 0 : i32
    %c0_i32_1 = arith.constant 0 : i32
    return %c0_i32, %c0_i32_0 : i32, i32
  }
  func.func @transform_5(%arg0: i32) -> (i32, i32) {
    %c0_i32 = arith.constant 0 : i32
    %c0_i32_0 = arith.constant 0 : i32
    %c0_i32_1 = arith.constant 0 : i32
    return %c0_i32, %c0_i32_0 : i32, i32
  }
  func.func @transform_6(%arg0: i32) -> (i32, i32) {
    %c0_i32 = arith.constant 0 : i32
    %c0_i32_0 = arith.constant 0 : i32
    %c0_i32_1 = arith.constant 0 : i32
    return %c0_i32, %c0_i32_0 : i32, i32
  }
  func.func @transform_7(%arg0: i32) -> (i32, i32) {
    %c0_i32 = arith.constant 0 : i32
    %c0_i32_0 = arith.constant 0 : i32
    %c0_i32_1 = arith.constant 0 : i32
    return %c0_i32, %c0_i32_0 : i32, i32
  }
  func.func @transform_8(%arg0: i32) -> (i32, i32, i32) {
    %c0_i32 = arith.constant 0 : i32
    %c0_i32_0 = arith.constant 0 : i32
    %c0_i32_1 = arith.constant 0 : i32
    return %arg0, %c0_i32, %c0_i32_0 : i32, i32, i32
  }
}

</mosaic_0001>

<bundles_post_ra>
// kernel: discriminator_forward.1
= control target key start
LH: loop header
LB: loop body
LE: loop exit
PB: predicated region body
PF: predicated region fallthrough
CT: control target
= control target key end

     0   :  { %s6637_s0 = inlined_call_operand.vmem [shape: f32[2,1,16,32], index: 0, kind: input, shape index: {}]   ;;  %s6638_s1 = inlined_call_operand.vmem [shape: f32[2,1,16,32], index: 1, kind: input, shape index: {}]   ;;  %s6639_s2 = inlined_call_operand.hbm [shape: f32[96,1024], index: 2, kind: input, shape index: {}]   ;;  %s6640_s3 = inlined_call_operand.vmem [shape: f32[1,32], index: 3, kind: input, shape index: {}]   ;;  %s6641_s4 = inlined_call_operand.hbm [shape: bf16[512,128], index: 4, kind: input, shape index: {}]   ;;  %s6642_s5 = inlined_call_operand.vmem [shape: f32[1,128], index: 5, kind: input, shape index: {}]   ;;  %s6643_s6 = inlined_call_operand.vmem [shape: f32[36,128], index: 6, kind: input, shape index: {}]   ;;  %s6644_s7 = inlined_call_operand.<no memory space> [shape: f32[1,1], index: 7, kind: input, shape index: {}]   ;;  %s6645_s8 = inlined_call_operand.vmem [shape: f32[2,1,1], index: 8, kind: output, shape index: {}]  }
   0x1   :  { %v13_v0 = vstv %s6644_s7 }
   0x2   :  { %14 = vst [vmem:[#allocation3] sm:$0x1] %v13_v0 }
   0x3   :  { %15 = vsyncpa [#allocation5], 0 }
   0x4   :  { %16 = vsyncpa [#allocation7], 0  ;;  %s4981_s29 = smov 0  }
   0x5 LB: > { %s4987_s30 = sadd.s32 4294967295, %s4922_s29   ;;  %p3703_p0 = scmp.ge.s32.totalorder %s4922_s29, 1  ;;  %s4922_s29 = sphi %s4981_s29, %s22_s29  }
   0x6   : > { %p231_p1 = scmp.lt.s32.totalorder %s4922_s29, 3  ;;  %s4924_s7 = smov [#allocation4]  }
   0x7   : > { %s243_s9 = sshll.u32 %s4924_s7, 4  ;;  %p6646_p3 = scmp.eq.s32.totalorder %s4987_s30, 0  ;;  %s244_s9 = int_to_ptr.vmem [resolvable:$true] %s243_s9 }
   0x8   : > { %p4991_p2 = pnand %p3703_p0, %p231_p1  ;;  %s4925_s11 = smov [#allocation6]  }
   0x9   : > { %s259_s12 = sshll.u32 %s4925_s11, 4  ;;  %s4852_s16 = scalar_lea.hbm %s6639_s2, 12288  ;;  %s5004_s12 = int_to_ptr.vmem [resolvable:$true] %s259_s12 }
   0xa   : > { %s6694_s10 = scalar_select %p4991_p2, 1, 0 }
   0xb   : > { %p4048_p4 = pneg %p4991_p2  ;;  %p4853_p6 = scmp.ne.s32.totalorder %s6639_s2, %s4852_s16 }
   0xc   : > { %p4859_p10 = scmp.lt.u32.totalorder %s4852_s16, %s6639_s2 }
   0xd   : > { %p5000_p5 = pnand %p6646_p3, %p4048_p4 }
   0xf   : > { %p4854_p7 = pneg %p5000_p5 }
  0x11   : > { %p4855_p8 = pnand %p4854_p7, %p4853_p6 }
  0x13   : > { %p4856_p9 = pneg %p4855_p8 }
  0x15   : > { %p4861_p11 = pnand %p4859_p10, %p4856_p9 }
  0x17   : > { %4864 = shalt.err (!%p4861_p11)
}
  0x18   : > { %s4865_s21 = scalar_lea.vmem %s244_s9, 12288  ;;  %p4873_p1 = scmp.lt.s32.totalorder %s244_s9, %s244_s9 }
  0x19   : > { %p4866_p12 = scmp.ne.s32.totalorder %s244_s9, %s4865_s21  ;;  %p4874_p4 = scmp.lt.s32.totalorder %s4865_s21, %s4865_s21 }
  0x1b   : > { %p4868_p13 = pnand %p4866_p12, %p4854_p7  ;;  %p4875_p3 = por %p4874_p4, %p4873_p1 }
  0x1d   : > { %p4869_p0 = pneg %p4868_p13 }
  0x1f   : > { %p4876_p2 = pnand %p4875_p3, %p4869_p0 }
  0x21   : > { %4879 = shalt.err (!%p4876_p2)
}
  0x22   : > { %s4926_s22 = smov 1024   ;;  %s4927_s23 = smov 64  }
  0x23   : > { %4051 = dma.hbm_to_vmem [thread:$0]  (!%p5000_p5), %s6639_s2, 12288, %s244_s9, [#allocation5], %s4926_s22, %s4926_s22, %s4927_s23  }
  0x24   : > { %s4880_s28 = scalar_lea.hbm %s6641_s4, 4096 }
  0x25   : > { %p4881_p6 = scmp.ne.s32.totalorder %s6641_s4, %s4880_s28  ;;  %p4887_p8 = scmp.lt.u32.totalorder %s4880_s28, %s6641_s4 }
  0x27   : > { %p4883_p2 = pnand %p4881_p6, %p4854_p7 }
  0x29   : > { %p4884_p3 = pneg %p4883_p2 }
  0x2b   : > { %p4889_p9 = pnand %p4887_p8, %p4884_p3 }
  0x2d   : > { %4892 = shalt.err (!%p4889_p9)
}
  0x2e   : > { %s4893_s9 = scalar_lea.vmem %s5004_s12, 4096  ;;  %p4901_p13 = scmp.lt.s32.totalorder %s5004_s12, %s5004_s12 }
  0x2f   : > { %p4894_p10 = scmp.ne.s32.totalorder %s5004_s12, %s4893_s9  ;;  %p4902_p0 = scmp.lt.s32.totalorder %s4893_s9, %s4893_s9 }
  0x31   : > { %p4896_p11 = pnand %p4894_p10, %p4854_p7  ;;  %p4903_p1 = por %p4902_p0, %p4901_p13 }
  0x33   : > { %p4897_p12 = pneg %p4896_p11 }
  0x35   : > { %p4904_p4 = pnand %p4903_p1, %p4897_p12 }
  0x37   : > { %4907 = shalt.err (!%p4904_p4)
}
  0x38   : > { %s4928_s16 = smov 4   ;;  %p6696_p6 = scmp.ne.s32.totalorder %s6694_s10, 0 }
  0x39   : > { %4054 = dma.hbm_to_vmem [thread:$0]  (!%p5000_p5), %s6641_s4, 4096, %s5004_s12, [#allocation7], %s4927_s23, %s4927_s23, %s4928_s16  }
  0x3a   : > { %300 = sbr.rel (%p6696_p6) target bundleno = 1513 (0x5e9), region = 52 }
  0x41   : > { %p6697_p7 = scmp.eq.s32.totalorder %s4987_s30, 0 }
  0x43   : > { %4913 = dma.done.wait (%p6697_p7), [#allocation5], 12288   ;;  %p6698_p2 = pmov %p6697_p7 }
  0x45   : > { %4915 = vsyncadd (%p6698_p2), [#allocation5], 4294955008  ;;  %p6699_p3 = pmov %p6698_p2 }
  0x46   : > { %p6700_p8 = pmov %p6698_p2 }
  0x47   : > { %4917 = dma.done.wait (%p6699_p3), [#allocation7], 4096  }
  0x48   : > { %4919 = vsyncadd (%p6700_p8), [#allocation7], 4294963200  ;;  %p341_p9 = scmp.lt.s32.totalorder %s4987_s30, 1  ;;  %v4929_v1 = vmov 0.0   ;;  %s4930_s23 = smov 32   ;;  %v412_v4 = vld [vmem:[#allocation4 + $0x8] sm:$0xff] }
  0x49   : > { %582 = vmatprep.mubr.f32.mxu0 %v4929_v1  ;;  %671 = vmatprep.mubr.f32.mxu1 %v4929_v1  ;;  %v420_v6 = vld [vmem:[#allocation4 + $0x48] sm:$0xff]  ;;  %v414_v7 = vld [vmem:[#allocation4 + $0x18] sm:$0xff]  ;;  %v411_v10 = vld [vmem:[#allocation4] sm:$0xff]  ;;  %s4931_s24 = smov 64   ;;  %vm377_vm0 = vcmask 261120   ;;  %vm380_vm1 = vcmask 523264  }
  0x4a   : > { %s6838_s30 = smov (!%p341_p9, %s4987_s30), 1  ;;  %v3944_v8 = vpack.c.bf16 %v420_v6, %v412_v4  ;;  %v422_v9 = vld [vmem:[#allocation4 + $0x58] sm:$0xff]  ;;  %v419_v11 = vld [vmem:[#allocation4 + $0x40] sm:$0xff]  ;;  %v413_v16 = vld [vmem:[#allocation4 + $0x10] sm:$0xff]  ;;  %vm507_vm2 = vcmask 785408   ;;  %vm405_vm3 = vcmask 1046528  }
  0x4b   : > { %s3766_s10 = sshll.u32 %s6838_s30, 4  ;;  %v3968_v14 = vpack.c.bf16 %v422_v9, %v414_v7  ;;  %v3946_v15 = vpack.c.bf16 %v419_v11, %v411_v10  ;;  %v421_v17 = vld [vmem:[#allocation4 + $0x50] sm:$0xff]  ;;  %v428_v18 = vld [vmem:[#allocation4 + $0x88] sm:$0xff]  ;;  %v430_v21 = vld [vmem:[#allocation4 + $0x98] sm:$0xff]  ;;  %vm898_vm4 = vcmask 1040384   ;;  %s4932_s27 = smov 96  }
  0x4c   : > { %s5073_s19 = scalar_lea.vmem %s6637_s0, %s3766_s10  ;;  %s5078_s22 = scalar_lea.vmem %s6638_s1, %s3766_s10  ;;  %v3970_v19 = vpack.c.bf16 %v421_v17, %v413_v16  ;;  %v436_v20 = vld [vmem:[#allocation4 + $0xc8] sm:$0xff]  ;;  %v438_v22 = vld [vmem:[#allocation4 + $0xd8] sm:$0xff]  ;;  %3945 = vmatprep.subr.bf16.mxu0 %v3944_v8  ;;  %v427_v25 = vld [vmem:[#allocation4 + $0x80] sm:$0xff]  ;;  %vm997_vm8 = vcmask 260096  }
  0x4d   : > { %v359_v2 = vld [vmem:[%s5073_s19 + $0x1] sm:$0xff]  ;;  %v360_v13 = vld [vmem:[%s5073_s19 + $0x9] sm:$0x7f]  ;;  %3969 = vmatprep.subr.bf16.mxu1 %v3968_v14  ;;  %v3948_v23 = vpack.c.bf16 %v436_v20, %v428_v18  ;;  %v3972_v24 = vpack.c.bf16 %v438_v22, %v430_v21  ;;  %v429_v27 = vld [vmem:[#allocation4 + $0x90] sm:$0xff]  ;;  %3947 = vmatpush1.bf16.msra.mxu0 %v3946_v15 }
  0x4e   : > { %v5082_v3 = vld [vmem:[%s5078_s22] sm:$0xff]  ;;  %385 = vrot.lane.b32.xlu1 %v359_v2, %s4930_s23  ;;  %v5089_v12 = vld [vmem:[%s5078_s22 + $0x8] sm:$0x7f]  ;;  %3971 = vmatpush1.bf16.msra.mxu1 %v3970_v19  ;;  %v444_v30 = vld [vmem:[#allocation4 + $0x108] sm:$0xff] }
  0x4f   : > { %363 = vrot.lane.b32.xlu0 %v5082_v3, %s4930_s23  ;;  %v383_v5 = vld [vmem:[%s5078_s22 + $0x1] sm:$0xff]  ;;  %v435_v26 = vld [vmem:[#allocation4 + $0xc0] sm:$0xff]  ;;  %v437_v29 = vld [vmem:[#allocation4 + $0xd0] sm:$0xff]  ;;  %3949 = vmatprep.subr.bf16.mxu0 %v3948_v23 }
  0x50   : > { %v3950_v28 = vpack.c.bf16 %v435_v26, %v427_v25  ;;  %v452_v31 = vld [vmem:[#allocation4 + $0x148] sm:$0xff]  ;;  %v384_v32 = vld [vmem:[%s5078_s22 + $0x9] sm:$0x7f]  ;;  %3973 = vmatprep.subr.bf16.mxu1 %v3972_v24  ;;  %v3974_v33 = vpack.c.bf16 %v437_v29, %v429_v27  ;;  %v446_v35 = vld [vmem:[#allocation4 + $0x118] sm:$0xff] }
  0x51   : > { %v3952_v34 = vpack.c.bf16 %v452_v31, %v444_v30  ;;  %v454_v36 = vld [vmem:[#allocation4 + $0x158] sm:$0xff]  ;;  %v443_v37 = vld [vmem:[#allocation4 + $0x100] sm:$0xff]  ;;  %v445_v40 = vld [vmem:[#allocation4 + $0x110] sm:$0xff] }
  0x52   : > { %393 = vrot.lane.b32.xlu1 %v383_v5, %s4931_s24  ;;  %v3976_v38 = vpack.c.bf16 %v454_v36, %v446_v35  ;;  %v451_v39 = vld [vmem:[#allocation4 + $0x140] sm:$0xff]  ;;  %v453_v41 = vld [vmem:[#allocation4 + $0x150] sm:$0xff]  ;;  %v460_v42 = vld [vmem:[#allocation4 + $0x188] sm:$0xff]  ;;  %3951 = vmatpush1.bf16.msra.mxu0 %v3950_v28 }
  0x53   : > { %371 = vrot.lane.b32.xlu0 %v359_v2, %s4931_s24  ;;  %v468_v43 = vld [vmem:[#allocation4 + $0x1c8] sm:$0xff]  ;;  %v462_v44 = vld [vmem:[#allocation4 + $0x198] sm:$0xff]  ;;  %3975 = vmatpush1.bf16.msra.mxu1 %v3974_v33  ;;  %v3954_v45 = vpack.c.bf16 %v451_v39, %v443_v37  ;;  %v3978_v46 = vpack.c.bf16 %v453_v41, %v445_v40  ;;  %v459_v48 = vld [vmem:[#allocation4 + $0x180] sm:$0xff] }
  0x54   : > { %v470_v47 = vld [vmem:[#allocation4 + $0x1d8] sm:$0xff]  ;;  %v467_v49 = vld [vmem:[#allocation4 + $0x1c0] sm:$0xff]  ;;  %3953 = vmatprep.subr.bf16.mxu0 %v3952_v34  ;;  %3977 = vmatprep.subr.bf16.mxu1 %v3976_v38  ;;  %v3956_v50 = vpack.c.bf16 %v468_v43, %v460_v42  ;;  %v461_v52 = vld [vmem:[#allocation4 + $0x190] sm:$0xff] }
  0x55   : > { %v3980_v51 = vpack.c.bf16 %v470_v47, %v462_v44  ;;  %v469_v53 = vld [vmem:[#allocation4 + $0x1d0] sm:$0xff]  ;;  %v476_v54 = vld [vmem:[#allocation4 + $0x208] sm:$0xff]  ;;  %v478_v56 = vld [vmem:[#allocation4 + $0x218] sm:$0xff]  ;;  %v3958_v58 = vpack.c.bf16 %v467_v49, %v459_v48 }
  0x56   : > { %373 = vrot.lane.b32.xlu1 %v360_v13, %s4931_s24  ;;  %v484_v55 = vld [vmem:[#allocation4 + $0x248] sm:$0xff]  ;;  %v486_v57 = vld [vmem:[#allocation4 + $0x258] sm:$0xff]  ;;  %3955 = vmatpush1.bf16.msra.mxu0 %v3954_v45  ;;  %v3982_v59 = vpack.c.bf16 %v469_v53, %v461_v52  ;;  %v475_v60 = vld [vmem:[#allocation4 + $0x200] sm:$0xff] }
  0x57   : > { %365 = vrot.lane.b32.xlu0 %v5089_v12, %s4930_s23  ;;  %3979 = vmatpush1.bf16.msra.mxu1 %v3978_v46  ;;  %v483_v61 = vld [vmem:[#allocation4 + $0x240] sm:$0xff]  ;;  %v3960_v62 = vpack.c.bf16 %v484_v55, %v476_v54  ;;  %v3984_v63 = vpack.c.bf16 %v486_v57, %v478_v56  ;;  %v477_v0 = vld [vmem:[#allocation4 + $0x210] sm:$0xff]  ;;  %v492_v4 = vld [vmem:[#allocation4 + $0x288] sm:$0xff] }
  0x58   : > { %3957 = vmatprep.subr.bf16.mxu0 %v3956_v50  ;;  %3981 = vmatprep.subr.bf16.mxu1 %v3980_v51  ;;  %v485_v2 = vld [vmem:[#allocation4 + $0x250] sm:$0xff]  ;;  %v500_v5 = vld [vmem:[#allocation4 + $0x2c8] sm:$0xff]  ;;  %v494_v6 = vld [vmem:[#allocation4 + $0x298] sm:$0xff]  ;;  %v3962_v8 = vpack.c.bf16 %v483_v61, %v475_v60 }
  0x59   : > { %v502_v7 = vld [vmem:[#allocation4 + $0x2d8] sm:$0xff]  ;;  %v3986_v9 = vpack.c.bf16 %v485_v2, %v477_v0  ;;  %v491_v10 = vld [vmem:[#allocation4 + $0x280] sm:$0xff]  ;;  %v493_v15 = vld [vmem:[#allocation4 + $0x290] sm:$0xff] }
  0x5a   : > { %395 = vrot.lane.b32.xlu1 %v384_v32, %s4931_s24  ;;  %3959 = vmatpush1.bf16.msra.mxu0 %v3958_v58  ;;  %v499_v11 = vld [vmem:[#allocation4 + $0x2c0] sm:$0xff]  ;;  %v3988_v14 = vpack.c.bf16 %v502_v7, %v494_v6  ;;  %v501_v16 = vld [vmem:[#allocation4 + $0x2d0] sm:$0xff]  ;;  %v416_v17 = vld [vmem:[#allocation4 + $0x28] sm:$0xff] }
  0x5b   : > { %387 = vrot.lane.b32.xlu0 %v360_v13, %s4930_s23  ;;  %3983 = vmatpush1.bf16.msra.mxu1 %v3982_v59  ;;  %v3964_v13 = vpack.c.bf16 %v500_v5, %v492_v4  ;;  %v424_v18 = vld [vmem:[#allocation4 + $0x68] sm:$0xff]  ;;  %v418_v19 = vld [vmem:[#allocation4 + $0x38] sm:$0xff]  ;;  %v3966_v21 = vpack.c.bf16 %v499_v11, %v491_v10  ;;  %v3990_v22 = vpack.c.bf16 %v501_v16, %v493_v15  ;;  %v415_v26 = vld [vmem:[#allocation4 + $0x20] sm:$0xff] }
  0x5c   : > { %3961 = vmatprep.subr.bf16.mxu0 %v3960_v62  ;;  %3985 = vmatprep.subr.bf16.mxu1 %v3984_v63  ;;  %v426_v20 = vld [vmem:[#allocation4 + $0x78] sm:$0xff]  ;;  %v3992_v23 = vpack.c.bf16 %v424_v18, %v416_v17  ;;  %v423_v27 = vld [vmem:[#allocation4 + $0x60] sm:$0xff]  ;;  %v417_v30 = vld [vmem:[#allocation4 + $0x30] sm:$0xff] }
  0x5d   : > { %v4016_v24 = vpack.c.bf16 %v426_v20, %v418_v19  ;;  %v355_v25 = vld [vmem:[%s5073_s19] sm:$0xff]  ;;  %v432_v32 = vld [vmem:[#allocation4 + $0xa8] sm:$0xff]  ;;  %v3994_v36 = vpack.c.bf16 %v423_v27, %v415_v26  ;;  %v431_v38 = vld [vmem:[#allocation4 + $0xa0] sm:$0xff] }
  0x5e   : > { %3963 = vmatpush1.bf16.msra.mxu0 %v3962_v8  ;;  %v425_v31 = vld [vmem:[#allocation4 + $0x70] sm:$0xff]  ;;  %v440_v33 = vld [vmem:[#allocation4 + $0xe8] sm:$0xff]  ;;  %v434_v34 = vld [vmem:[#allocation4 + $0xb8] sm:$0xff] }
  0x5f   : > { %3987 = vmatpush1.bf16.msra.mxu1 %v3986_v9  ;;  %3965 = vmatprep.subr.bf16.mxu0 %v3964_v13  ;;  %v442_v35 = vld [vmem:[#allocation4 + $0xf8] sm:$0xff]  ;;  %v4018_v37 = vpack.c.bf16 %v425_v31, %v417_v30  ;;  %v3996_v42 = vpack.c.bf16 %v440_v33, %v432_v32  ;;  %v439_v44 = vld [vmem:[#allocation4 + $0xe0] sm:$0xff]  ;;  %v433_v45 = vld [vmem:[#allocation4 + $0xb0] sm:$0xff] }
  0x60   : > { %3989 = vmatprep.subr.bf16.mxu1 %v3988_v14  ;;  %v4020_v43 = vpack.c.bf16 %v442_v35, %v434_v34  ;;  %v441_v46 = vld [vmem:[#allocation4 + $0xf0] sm:$0xff]  ;;  %v356_v49 = vld [vmem:[%s5073_s19 + $0x8] sm:$0x7f]  ;;  %v448_v50 = vld [vmem:[#allocation4 + $0x128] sm:$0xff] }
  0x61   : > { %v456_v52 = vld [vmem:[#allocation4 + $0x168] sm:$0xff]  ;;  %v450_v53 = vld [vmem:[#allocation4 + $0x138] sm:$0xff]  ;;  %v4022_v55 = vpack.c.bf16 %v441_v46, %v433_v45  ;;  %v447_v56 = vld [vmem:[#allocation4 + $0x120] sm:$0xff] }
  0x62   : > { %3967 = vmatpush1.bf16.msra.mxu0 %v3966_v21  ;;  %v458_v54 = vld [vmem:[#allocation4 + $0x178] sm:$0xff]  ;;  %v455_v57 = vld [vmem:[#allocation4 + $0x160] sm:$0xff]  ;;  %v449_v60 = vld [vmem:[#allocation4 + $0x130] sm:$0xff]  ;;  %v4000_v2 = vpack.c.bf16 %v456_v52, %v448_v50 }
  0x63   : > { %3991 = vmatpush1.bf16.msra.mxu1 %v3990_v22  ;;  %3993 = vmatprep.subr.bf16.mxu0 %v3992_v23  ;;  %v457_v61 = vld [vmem:[#allocation4 + $0x170] sm:$0xff]  ;;  %v464_v62 = vld [vmem:[#allocation4 + $0x1a8] sm:$0xff]  ;;  %v4024_v4 = vpack.c.bf16 %v458_v54, %v450_v53  ;;  %v466_v6 = vld [vmem:[#allocation4 + $0x1b8] sm:$0xff]  ;;  %v4002_v10 = vpack.c.bf16 %v455_v57, %v447_v56 }
  0x64   : > { %4017 = vmatprep.subr.bf16.mxu1 %v4016_v24  ;;  %v472_v5 = vld [vmem:[#allocation4 + $0x1e8] sm:$0xff]  ;;  %v474_v7 = vld [vmem:[#allocation4 + $0x1f8] sm:$0xff]  ;;  %v4026_v11 = vpack.c.bf16 %v457_v61, %v449_v60  ;;  %v463_v13 = vld [vmem:[#allocation4 + $0x1a0] sm:$0xff] }
  0x65   : > { %v4004_v16 = vpack.c.bf16 %v472_v5, %v464_v62  ;;  %v4028_v17 = vpack.c.bf16 %v474_v7, %v466_v6  ;;  %v471_v18 = vld [vmem:[#allocation4 + $0x1e0] sm:$0xff]  ;;  %v465_v19 = vld [vmem:[#allocation4 + $0x1b0] sm:$0xff]  ;;  %v480_v22 = vld [vmem:[#allocation4 + $0x228] sm:$0xff] }
  0x66   : > { %v473_v20 = vld [vmem:[#allocation4 + $0x1f0] sm:$0xff]  ;;  %v488_v24 = vld [vmem:[#allocation4 + $0x268] sm:$0xff]  ;;  %v490_v26 = vld [vmem:[#allocation4 + $0x278] sm:$0xff] }
  0x67   : > { %v479_v30 = vld [vmem:[#allocation4 + $0x220] sm:$0xff]  ;;  %v489_v32 = vld [vmem:[#allocation4 + $0x270] sm:$0xff]  ;;  %v496_v33 = vld [vmem:[#allocation4 + $0x2a8] sm:$0xff]  ;;  %v4008_v35 = vpack.c.bf16 %v488_v24, %v480_v22 }
  0x68   : > { %v487_v31 = vld [vmem:[#allocation4 + $0x260] sm:$0xff]  ;;  %v497_v46 = vld [vmem:[#allocation4 + $0x2b0] sm:$0xff] }
  0x69   : > { %v503_v45 = vld [vmem:[#allocation4 + $0x2e0] sm:$0xff] }
  0xc0   : > { %v386_v28 = vpop.permute.xlu1 %385 }
  0xc1   : > { %v364_v29 = vpop.permute.xlu0 %363  ;;  %v399_v47 = vsel %vm377_vm0, %v5082_v3, %v386_v28  ;;  %v3998_v3 = vpack.c.bf16 %v439_v44, %v431_v38  ;;  %v4006_v28 = vpack.c.bf16 %v471_v18, %v463_v13  ;;  %v498_v38 = vld [vmem:[#allocation4 + $0x2b8] sm:$0xff] }
  0xc2   : > { %v378_v39 = vsel %vm377_vm0, %v355_v25, %v364_v29  ;;  %v482_v25 = vld [vmem:[#allocation4 + $0x238] sm:$0xff]  ;;  %v4030_v29 = vpack.c.bf16 %v473_v20, %v465_v19 }
  0xc4   : > { %v394_v40 = vpop.permute.xlu1 %393 }
  0xc5   : > { %v372_v41 = vpop.permute.xlu0 %371  ;;  %v5109_v51 = vsel %vm380_vm1, %v399_v47, %v394_v40  ;;  %v4010_v40 = vpack.c.bf16 %v487_v31, %v479_v30  ;;  %v505_v47 = vld [vmem:[#allocation4 + $0x2f0] sm:$0xff] }
  0xc6   : > { %v5105_v48 = vsel %vm380_vm1, %v378_v39, %v372_v41  ;;  %v406_v63 = vrot.slane %v5109_v51, 1  ;;  %v506_v39 = vld [vmem:[#allocation4 + $0x2f8] sm:$0xff]  ;;  %v4038_v50 = vpack.c.bf16 %v505_v47, %v497_v46 }
  0xc7   : > { %3714 = vmatmul.mubr.msk.f32.vlgmr.msra.gmra.mrb[0].mxu0 %vm507_vm2, %v5105_v48  ;;  %3718 = vmatmul.mubr.msk.f32.vlgmr.msra.gmra.mrb[0].mxu1 %vm507_vm2, %v5105_v48  ;;  %v4036_v44 = vpack.c.bf16 %v506_v39, %v498_v38 }
  0xc8   : > { %3995 = vmatpush1.bf16.msra.mxu0 %v3994_v36  ;;  %4019 = vmatpush1.bf16.msra.mxu1 %v4018_v37  ;;  %v374_v59 = vpop.permute.xlu1 %373  ;;  %v4032_v36 = vpack.c.bf16 %v490_v26, %v482_v25  ;;  %v504_v37 = vld [vmem:[#allocation4 + $0x2e8] sm:$0xff] }
  0xc9   : > { %v366_v58 = vpop.permute.xlu0 %365  ;;  %3997 = vmatprep.subr.bf16.mxu0 %v3996_v42  ;;  %4021 = vmatprep.subr.bf16.mxu1 %v4020_v43  ;;  %v495_v42 = vld [vmem:[#allocation4 + $0x2a0] sm:$0xff]  ;;  %v4012_v43 = vpack.c.bf16 %v504_v37, %v496_v33 }
  0xca   : > { %v379_v0 = vsel %vm377_vm0, %v356_v49, %v366_v58  ;;  %588 = vmatprep.mubr.f32.mxu0 %v4929_v1  ;;  %677 = vmatprep.mubr.f32.mxu1 %v4929_v1  ;;  %v4014_v49 = vpack.c.bf16 %v503_v45, %v495_v42 }
  0xcb   : > { %v382_v8 = vsel %vm380_vm1, %v379_v0, %v374_v59 }
  0xcc   : > { %3999 = vmatpush1.bf16.msra.mxu0 %v3998_v3  ;;  %4023 = vmatpush1.bf16.msra.mxu1 %v4022_v55  ;;  %v5121_v9 = vsel %vm405_vm3, %v382_v8, %v406_v63  ;;  %v396_v15 = vpop.permute.xlu1 %395 }
  0xcd   : > { %v388_v14 = vpop.permute.xlu0 %387  ;;  %3715 = vmatmul.mubr.msk.f32.gmra.mrb[2].mxu0 %vm507_vm2, %v5121_v9  ;;  %3719 = vmatmul.mubr.msk.f32.gmra.mrb[2].mxu1 %vm507_vm2, %v5121_v9 }
  0xce   : > { %v400_v21 = vsel %vm377_vm0, %v5089_v12, %v388_v14  ;;  %4001 = vmatprep.subr.bf16.mxu0 %v4000_v2  ;;  %4025 = vmatprep.subr.bf16.mxu1 %v4024_v4  ;;  %v481_v12 = vld [vmem:[#allocation4 + $0x230] sm:$0xff] }
  0xcf   : > { %v402_v23 = vsel %vm380_vm1, %v400_v21, %v396_v15  ;;  %594 = vmatprep.mubr.f32.mxu0 %v4929_v1  ;;  %683 = vmatprep.mubr.f32.mxu1 %v4929_v1  ;;  %v4034_v41 = vpack.c.bf16 %v489_v32, %v481_v12 }
  0xd0   : > { %v407_v27 = vrot.slane %v402_v23, 1  ;;  %4003 = vmatpush1.bf16.msra.mxu0 %v4002_v10  ;;  %4027 = vmatpush1.bf16.msra.mxu1 %v4026_v11 }
  0xd1   : > { %4005 = vmatprep.subr.bf16.mxu0 %v4004_v16  ;;  %4029 = vmatprep.subr.bf16.mxu1 %v4028_v17 }
  0xd2   : > { %v408_v34 = vsel %vm405_vm3, %v406_v63, %v407_v27 }
  0xd3   : > { %3716 = vmatmul.mubr.msk.f32.gmra.mrb[4].mxu0 %vm507_vm2, %v408_v34  ;;  %3720 = vmatmul.mubr.msk.f32.gmra.mrb[4].mxu1 %vm507_vm2, %v408_v34 }
  0xd4   : > { %4007 = vmatpush1.bf16.msra.mxu0 %v4006_v28  ;;  %4031 = vmatpush1.bf16.msra.mxu1 %v4030_v29 }
  0xd5   : > { %600 = vmatprep.mubr.f32.mxu0 %v4929_v1  ;;  %689 = vmatprep.mubr.f32.mxu1 %v4929_v1 }
  0xd6   : > { %4009 = vmatprep.subr.bf16.mxu0 %v4008_v35  ;;  %4033 = vmatprep.subr.bf16.mxu1 %v4032_v36 }
  0xd7   : > { %3717 = vmatmul.mubr.msk.f32.gmra.mrb[6].mxu0 %vm507_vm2, %v407_v27  ;;  %3721 = vmatmul.mubr.msk.f32.gmra.mrb[6].mxu1 %vm507_vm2, %v407_v27 }
  0xd8   : > { %4011 = vmatpush1.bf16.msra.mxu0 %v4010_v40  ;;  %4035 = vmatpush1.bf16.msra.mxu1 %v4034_v41 }
  0xd9   : > { %4013 = vmatprep.subr.bf16.mxu0 %v4012_v43  ;;  %4037 = vmatprep.subr.bf16.mxu1 %v4036_v44 }
  0xda   : > { %760 = vmatprep.mubr.f32.mxu0 %v4929_v1  ;;  %849 = vmatprep.mubr.f32.mxu1 %v4929_v1 }
  0xdc   : > { %4015 = vmatpush1.bf16.msra.mxu0 %v4014_v49  ;;  %4039 = vmatpush1.bf16.msra.mxu1 %v4038_v50 }
  0xdf   : > { %3722 = vmatmul.mubr.msk.f32.vlgmr.msra.gmra.mrb[8].mxu0 %vm507_vm2, %v5105_v48  ;;  %3726 = vmatmul.mubr.msk.f32.vlgmr.msra.gmra.mrb[8].mxu1 %vm507_vm2, %v5105_v48  ;;  %v5162_v48 = vld [vmem:[%s6640_s3] ss:$0 sm:$0xff] }
  0xe0   : > { %766 = vmatprep.mubr.f32.mxu0 %v4929_v1  ;;  %855 = vmatprep.mubr.f32.mxu1 %v4929_v1 }
  0xe1   : > { %999 = vrot.lane.b32.xlu1 %v5162_v48, %s4931_s24 }
  0xe3   : > { %3723 = vmatmul.mubr.msk.f32.gmra.mrb[10].mxu0 %vm507_vm2, %v5121_v9  ;;  %3727 = vmatmul.mubr.msk.f32.gmra.mrb[10].mxu1 %vm507_vm2, %v5121_v9 }
  0xe4   : > { %772 = vmatprep.mubr.f32.mxu0 %v4929_v1  ;;  %861 = vmatprep.mubr.f32.mxu1 %v4929_v1 }
  0xe7   : > { %3724 = vmatmul.mubr.msk.f32.gmra.mrb[12].mxu0 %vm507_vm2, %v408_v34  ;;  %3728 = vmatmul.mubr.msk.f32.gmra.mrb[12].mxu1 %vm507_vm2, %v408_v34 }
  0xe8   : > { %778 = vmatprep.mubr.f32.mxu0 %v4929_v1  ;;  %867 = vmatprep.mubr.f32.mxu1 %v4929_v1 }
  0xeb   : > { %3725 = vmatmul.mubr.msk.f32.gmra.mrb[14].mxu0 %vm507_vm2, %v407_v27  ;;  %3729 = vmatmul.mubr.msk.f32.gmra.mrb[14].mxu1 %vm507_vm2, %v407_v27 }
 0x19a   : > { %v584_v51 = vpop.f32.mrb[0].mxu0  ;;  %v673_v52 = vpop.f32.mrb[0].mxu1 }
 0x19b   : > { %v586_v53 = vpop.f32.mrb[1].mxu0  ;;  %v675_v54 = vpop.f32.mrb[1].mxu1 }
 0x1a0   : > { %v590_v3 = vpop.f32.mrb[2].mxu0  ;;  %v679_v55 = vpop.f32.mrb[2].mxu1 }
 0x1a1   : > { %v592_v56 = vpop.f32.mrb[3].mxu0  ;;  %v681_v1 = vpop.f32.mrb[3].mxu1  ;;  %v899_v59 = vrot.slane %v590_v3, 7  ;;  %v905_v60 = vrot.slane %v679_v55, 7 }
 0x1a2   : > { %v902_v2 = vrot.slane %v592_v56, 7  ;;  %v908_v4 = vrot.slane %v681_v1, 7 }
 0x1a6   : > { %v596_v57 = vpop.f32.mrb[4].mxu0  ;;  %v685_v58 = vpop.f32.mrb[4].mxu1 }
 0x1a7   : > { %v900_v61 = vrot.slane %v596_v57, 7  ;;  %v906_v62 = vrot.slane %v685_v58, 7  ;;  %v598_v63 = vpop.f32.mrb[5].mxu0  ;;  %v687_v0 = vpop.f32.mrb[5].mxu1 }
 0x1a8   : > { %v903_v5 = vrot.slane %v598_v63, 7  ;;  %v909_v6 = vrot.slane %v687_v0, 7 }
 0x1a9   : > { %v907_v7 = vsel %vm898_vm4, %v905_v60, %v906_v62  ;;  %v901_v8 = vsel %vm898_vm4, %v899_v59, %v900_v61 }
 0x1aa   : > { %v602_v9 = vpop.f32.mrb[6].mxu0  ;;  %v691_v10 = vpop.f32.mrb[6].mxu1  ;;  %v5168_v11 = vmax.f32 %v673_v52, %v907_v7  ;;  %v5170_v13 = vmax.f32 %v584_v51, %v901_v8  ;;  %v904_v14 = vsel %vm898_vm4, %v902_v2, %v903_v5  ;;  %v910_v15 = vsel %vm898_vm4, %v908_v4, %v909_v6 }
 0x1ab   : > { %v923_v16 = vrot.slane %v602_v9, 7  ;;  %v927_v17 = vrot.slane %v691_v10, 7  ;;  %v604_v18 = vpop.f32.mrb[7].mxu0  ;;  %v693_v19 = vpop.f32.mrb[7].mxu1  ;;  %v5174_v20 = vmax.f32 %v586_v53, %v904_v14  ;;  %v5176_v21 = vmax.f32 %v675_v54, %v910_v15 }
 0x1ac   : > { %v925_v22 = vrot.slane %v604_v18, 7  ;;  %v929_v23 = vrot.slane %v693_v19, 7  ;;  %1060 = vrot.lane.b32.xlu1 %v5168_v11, %s4932_s27  ;;  %974 = vrot.lane.b32.xlu0 %v5170_v13, %s4932_s27  ;;  %v5246_v15 = vpop.permute.xlu1 %999 }
 0x1ad   : > { %v924_v24 = vsel %vm898_vm4, %v900_v61, %v923_v16  ;;  %v928_v25 = vsel %vm898_vm4, %v906_v62, %v927_v17 }
 0x1ae   : > { %v5184_v26 = vmax.f32 %v590_v3, %v924_v24  ;;  %v5186_v27 = vmax.f32 %v679_v55, %v928_v25  ;;  %v926_v28 = vsel %vm898_vm4, %v903_v5, %v925_v22  ;;  %v930_v29 = vsel %vm898_vm4, %v909_v6, %v929_v23 }
 0x1af   : > { %v5190_v30 = vmax.f32 %v592_v56, %v926_v28  ;;  %v5192_v31 = vmax.f32 %v681_v1, %v930_v29 }
 0x1b0   : > { %1022 = vrot.lane.b32.xlu0 %v5174_v20, %s4932_s27  ;;  %976 = vrot.lane.b32.xlu1 %v5184_v26, %s4932_s27 }
 0x1b2   : > { %v762_v12 = vpop.f32.mrb[8].mxu0  ;;  %v851_v32 = vpop.f32.mrb[8].mxu1 }
 0x1b3   : > { %v764_v33 = vpop.f32.mrb[9].mxu0  ;;  %v853_v34 = vpop.f32.mrb[9].mxu1 }
 0x1b4   : > { %1098 = vrot.lane.b32.xlu0 %v5176_v21, %s4932_s27 }
 0x1b6   : > { %v768_v35 = vpop.f32.mrb[10].mxu0  ;;  %v857_v36 = vpop.f32.mrb[10].mxu1 }
 0x1b7   : > { %v770_v37 = vpop.f32.mrb[11].mxu0  ;;  %v859_v38 = vpop.f32.mrb[11].mxu1  ;;  %v911_v41 = vrot.slane %v768_v35, 7  ;;  %v917_v42 = vrot.slane %v857_v36, 7 }
 0x1b8   : > { %1062 = vrot.lane.b32.xlu0 %v5186_v27, %s4932_s27  ;;  %v914_v47 = vrot.slane %v770_v37, 7  ;;  %v920_v49 = vrot.slane %v859_v38, 7 }
 0x1ba   : > { %v774_v39 = vpop.f32.mrb[12].mxu0  ;;  %v863_v40 = vpop.f32.mrb[12].mxu1 }
 0x1bb   : > { %v912_v43 = vrot.slane %v774_v39, 7  ;;  %v918_v44 = vrot.slane %v863_v40, 7  ;;  %v776_v45 = vpop.f32.mrb[13].mxu0  ;;  %v865_v46 = vpop.f32.mrb[13].mxu1 }
 0x1bc   : > { %v915_v50 = vrot.slane %v776_v45, 7  ;;  %v921_v51 = vrot.slane %v865_v46, 7  ;;  %1024 = vrot.lane.b32.xlu0 %v5190_v30, %s4932_s27 }
 0x1bd   : > { %v919_v52 = vsel %vm898_vm4, %v917_v42, %v918_v44  ;;  %v913_v53 = vsel %vm898_vm4, %v911_v41, %v912_v43 }
 0x1be   : > { %v780_v54 = vpop.f32.mrb[14].mxu0  ;;  %v869_v3 = vpop.f32.mrb[14].mxu1  ;;  %v5206_v55 = vmax.f32 %v851_v32, %v919_v52  ;;  %v916_v56 = vsel %vm898_vm4, %v914_v47, %v915_v50  ;;  %v5209_v1 = vmax.f32 %v762_v12, %v913_v53  ;;  %v922_v57 = vsel %vm898_vm4, %v920_v49, %v921_v51 }
 0x1bf   : > { %v931_v58 = vrot.slane %v780_v54, 7  ;;  %v935_v59 = vrot.slane %v869_v3, 7  ;;  %v782_v60 = vpop.f32.mrb[15].mxu0  ;;  %v871_v61 = vpop.f32.mrb[15].mxu1  ;;  %v5212_v62 = vmax.f32 %v764_v33, %v916_v56  ;;  %v5214_v63 = vmax.f32 %v853_v34, %v922_v57 }
 0x1c0   : > { %v933_v0 = vrot.slane %v782_v60, 7  ;;  %v937_v2 = vrot.slane %v871_v61, 7  ;;  %1212 = vrot.lane.b32.xlu1 %v5206_v55, %s4932_s27  ;;  %1100 = vrot.lane.b32.xlu0 %v5192_v31, %s4932_s27 }
 0x1c1   : > { %v936_v4 = vsel %vm898_vm4, %v918_v44, %v935_v59  ;;  %v932_v5 = vsel %vm898_vm4, %v912_v43, %v931_v58 }
 0x1c2   : > { %v5222_v6 = vmax.f32 %v857_v36, %v936_v4  ;;  %v5224_v7 = vmax.f32 %v768_v35, %v932_v5  ;;  %v934_v8 = vsel %vm898_vm4, %v915_v50, %v933_v0  ;;  %v938_v9 = vsel %vm898_vm4, %v921_v51, %v937_v2 }
 0x1c3   : > { %v5228_v10 = vmax.f32 %v770_v37, %v934_v8  ;;  %v5230_v14 = vmax.f32 %v859_v38, %v938_v9 }
 0x1c4   : > { %1174 = vrot.lane.b32.xlu1 %v5212_v62, %s4932_s27  ;;  %1136 = vrot.lane.b32.xlu0 %v5209_v1, %s4932_s27 }
 0x1c8   : > { %1250 = vrot.lane.b32.xlu1 %v5214_v63, %s4932_s27  ;;  %1214 = vrot.lane.b32.xlu0 %v5222_v6, %s4932_s27 }
 0x1cc   : > { %1138 = vrot.lane.b32.xlu1 %v5224_v7, %s4932_s27  ;;  %1176 = vrot.lane.b32.xlu0 %v5228_v10, %s4932_s27 }
 0x1d0   : > { %1252 = vrot.lane.b32.xlu0 %v5230_v14, %s4932_s27 }
 0x21e   : > { %v1061_v16 = vpop.permute.xlu1 %1060  ;;  %v975_v17 = vpop.permute.xlu0 %974 }
 0x21f   : > { %v1066_v18 = vmax.f32 %v5168_v11, %v1061_v16  ;;  %v980_v19 = vmax.f32 %v5170_v13, %v975_v17 }
 0x221   : > { %v1068_v22 = vadd.f32 %v5162_v48, %v1066_v18  ;;  %v988_v23 = vadd.f32 %v5162_v48, %v980_v19  ;;  %v1002_v24 = vadd.f32 %v5246_v15, %v980_v19  ;;  %v1078_v25 = vadd.f32 %v1066_v18, %v5246_v15 }
 0x222   : > { %v1023_v28 = vpop.permute.xlu0 %1022  ;;  %v977_v29 = vpop.permute.xlu1 %976 }
 0x223   : > { %vm1070_vm5 = vcmp.gt.f32.partialorder %v1068_v22, 0.0  ;;  %v1072_v12 = vmul.f32 0.2, %v1068_v22  ;;  %vm990_vm6 = vcmp.gt.f32.partialorder %v988_v23, 0.0  ;;  %v992_v32 = vmul.f32 0.2, %v988_v23 }
 0x224   : > { %v1028_v33 = vmax.f32 %v5174_v20, %v1023_v28  ;;  %v981_v11 = vmax.f32 %v5184_v26, %v977_v29  ;;  %vm1004_vm7 = vcmp.gt.f32.partialorder %v1002_v24, 0.0  ;;  %v1006_v13 = vmul.f32 0.2, %v1002_v24 }
 0x225   : > { %v1074_v34 = vsel %vm1070_vm5, %v1068_v22, %v1072_v12  ;;  %v994_v35 = vsel %vm990_vm6, %v988_v23, %v992_v32  ;;  %v1082_v40 = vmul.f32 0.2, %v1078_v25  ;;  %vm1080_vm9 = vcmp.gt.f32.partialorder %v1078_v25, 0.0 }
 0x226   : > { %1076 = vst.msk [vmem:[#allocation2 + $0x3c] sm:$0xff] %vm377_vm0, %v1074_v34  ;;  %996 = vst.msk [vmem:[#allocation2] sm:$0xff] %vm377_vm0, %v994_v35  ;;  %v1030_v36 = vadd.f32 %v5162_v48, %v1028_v33  ;;  %v1040_v37 = vadd.f32 %v1028_v33, %v5246_v15  ;;  %v989_v38 = vadd.f32 %v5162_v48, %v981_v11  ;;  %v1099_v39 = vpop.permute.xlu0 %1098 }
 0x227   : > { %v1104_v20 = vmax.f32 %v5176_v21, %v1099_v39  ;;  %v1008_v26 = vsel %vm1004_vm7, %v1002_v24, %v1006_v13  ;;  %v1003_v49 = vadd.f32 %v5246_v15, %v981_v11  ;;  %v1084_v21 = vsel %vm1080_vm9, %v1078_v25, %v1082_v40 }
 0x228   : > { %vm1032_vm10 = vcmp.gt.f32.partialorder %v1030_v36, 0.0  ;;  %v1034_v41 = vmul.f32 0.2, %v1030_v36  ;;  %vm991_vm11 = vcmp.gt.f32.partialorder %v989_v38, 0.0  ;;  %v993_v42 = vmul.f32 0.2, %v989_v38  ;;  %1012 = vrot.lane.b32.xlu1 %v1008_v26, %s4931_s24 }
 0x229   : > { %v1106_v43 = vadd.f32 %v5162_v48, %v1104_v20  ;;  %v1116_v44 = vadd.f32 %v1104_v20, %v5246_v15  ;;  %vm1042_vm12 = vcmp.gt.f32.partialorder %v1040_v37, 0.0  ;;  %v1044_v45 = vmul.f32 0.2, %v1040_v37 }
 0x22a   : > { %v1036_v46 = vsel %vm1032_vm10, %v1030_v36, %v1034_v41  ;;  %v995_v47 = vsel %vm991_vm11, %v989_v38, %v993_v42  ;;  %v1063_v50 = vpop.permute.xlu0 %1062  ;;  %vm1005_vm15 = vcmp.gt.f32.partialorder %v1003_v49, 0.0  ;;  %v1007_v60 = vmul.f32 0.2, %v1003_v49 }
 0x22b   : > { %1038 = vst.msk [vmem:[#allocation2 + $0x1e] sm:$0xff] %vm377_vm0, %v1036_v46  ;;  %vm1108_vm13 = vcmp.gt.f32.partialorder %v1106_v43, 0.0  ;;  %v1110_v51 = vmul.f32 0.2, %v1106_v43  ;;  %v1067_v52 = vmax.f32 %v5186_v27, %v1063_v50  ;;  %v1046_v53 = vsel %vm1042_vm12, %v1040_v37, %v1044_v45 }
 0x22c   : > { %998 = vst.msk [vmem:[#allocation2 + $0x8] sm:$0x7f] %vm997_vm8, %v995_v47  ;;  %1088 = vrot.lane.b32.xlu1 %v1084_v21, %s4931_s24  ;;  %1050 = vrot.lane.b32.xlu0 %v1046_v53, %s4931_s24  ;;  %vm1118_vm14 = vcmp.gt.f32.partialorder %v1116_v44, 0.0  ;;  %v1120_v54 = vmul.f32 0.2, %v1116_v44  ;;  %v1009_v16 = vsel %vm1005_vm15, %v1003_v49, %v1007_v60 }
 0x22d   : > { %v1112_v3 = vsel %vm1108_vm13, %v1106_v43, %v1110_v51  ;;  %v1069_v56 = vadd.f32 %v5162_v48, %v1067_v52  ;;  %v1079_v57 = vadd.f32 %v1067_v52, %v5246_v15 }
 0x22e   : > { %1114 = vst.msk [vmem:[#allocation2 + $0x5a] sm:$0xff] %vm377_vm0, %v1112_v3  ;;  %v1025_v58 = vpop.permute.xlu0 %1024  ;;  %v1122_v59 = vsel %vm1118_vm14, %v1116_v44, %v1120_v54 }
 0x22f   : > { %vm1071_vm3 = vcmp.gt.f32.partialorder %v1069_v56, 0.0  ;;  %v1073_v27 = vmul.f32 0.2, %v1069_v56  ;;  %v1029_v61 = vmax.f32 %v5190_v30, %v1025_v58  ;;  %vm1081_vm5 = vcmp.gt.f32.partialorder %v1079_v57, 0.0 }
 0x230   : > { %1126 = vrot.lane.b32.xlu1 %v1122_v59, %s4931_s24  ;;  %v1083_v0 = vmul.f32 0.2, %v1079_v57 }
 0x231   : > { %v1075_v2 = vsel %vm1071_vm3, %v1069_v56, %v1073_v27  ;;  %v1031_v4 = vadd.f32 %v5162_v48, %v1029_v61  ;;  %v1041_v5 = vadd.f32 %v1029_v61, %v5246_v15 }
 0x232   : > { %1077 = vst.msk [vmem:[#allocation2 + $0x44] sm:$0x7f] %vm997_vm8, %v1075_v2  ;;  %v1213_v8 = vpop.permute.xlu1 %1212  ;;  %v1101_v9 = vpop.permute.xlu0 %1100  ;;  %v1085_v17 = vsel %vm1081_vm5, %v1079_v57, %v1083_v0 }
 0x233   : > { %vm1033_vm6 = vcmp.gt.f32.partialorder %v1031_v4, 0.0  ;;  %v1035_v18 = vmul.f32 0.2, %v1031_v4  ;;  %v1218_v19 = vmax.f32 %v5206_v55, %v1213_v8  ;;  %v1105_v30 = vmax.f32 %v5192_v31, %v1101_v9  ;;  %1090 = vrot.lane.b32.xlu0 %v1085_v17, %s4931_s24 }
 0x234   : > { %1014 = vrot.lane.b32.xlu1 %v1009_v16, %s4931_s24  ;;  %vm1043_vm7 = vcmp.gt.f32.partialorder %v1041_v5, 0.0  ;;  %v1045_v22 = vmul.f32 0.2, %v1041_v5 }
 0x235   : > { %v1037_v23 = vsel %vm1033_vm6, %v1031_v4, %v1035_v18  ;;  %v1220_v24 = vadd.f32 %v5162_v48, %v1218_v19  ;;  %v1107_v25 = vadd.f32 %v5162_v48, %v1105_v30  ;;  %v1117_v28 = vadd.f32 %v1105_v30, %v5246_v15 }
 0x236   : > { %1039 = vst.msk [vmem:[#allocation2 + $0x26] sm:$0x7f] %vm997_vm8, %v1037_v23  ;;  %v1175_v29 = vpop.permute.xlu1 %1174  ;;  %v1137_v12 = vpop.permute.xlu0 %1136  ;;  %v1047_v55 = vsel %vm1043_vm7, %v1041_v5, %v1045_v22  ;;  %v1230_v35 = vadd.f32 %v1218_v19, %v5246_v15 }
 0x237   : > { %vm1222_vm9 = vcmp.gt.f32.partialorder %v1220_v24, 0.0  ;;  %v1224_v31 = vmul.f32 0.2, %v1220_v24  ;;  %vm1109_vm10 = vcmp.gt.f32.partialorder %v1107_v25, 0.0  ;;  %v1111_v32 = vmul.f32 0.2, %v1107_v25 }
 0x238   : > { %v1180_v33 = vmax.f32 %v5212_v62, %v1175_v29  ;;  %v1142_v11 = vmax.f32 %v5209_v1, %v1137_v12  ;;  %1052 = vrot.lane.b32.xlu1 %v1047_v55, %s4931_s24  ;;  %vm1119_vm11 = vcmp.gt.f32.partialorder %v1117_v28, 0.0  ;;  %v1121_v13 = vmul.f32 0.2, %v1117_v28 }
 0x239   : > { %v1226_v34 = vsel %vm1222_vm9, %v1220_v24, %v1224_v31  ;;  %v1113_v36 = vsel %vm1109_vm10, %v1107_v25, %v1111_v32  ;;  %v1234_v45 = vmul.f32 0.2, %v1230_v35  ;;  %vm1232_vm5 = vcmp.gt.f32.partialorder %v1230_v35, 0.0  ;;  %v1318_v32 = vld [vmem:[#allocation2 + $0x3e] sm:$0xff] }
 0x23a   : > { %1228 = vst.msk [vmem:[#allocation2 + $0xb4] sm:$0xff] %vm377_vm0, %v1226_v34  ;;  %v1182_v37 = vadd.f32 %v5162_v48, %v1180_v33  ;;  %v1144_v38 = vadd.f32 %v5162_v48, %v1142_v11  ;;  %v1154_v62 = vadd.f32 %v1142_v11, %v5246_v15  ;;  %v1251_v39 = vpop.permute.xlu1 %1250  ;;  %v1215_v1 = vpop.permute.xlu0 %1214  ;;  %v1123_v26 = vsel %vm1119_vm11, %v1117_v28, %v1121_v13  ;;  %v1297_v13 = vld [vmem:[#allocation2 + $0x3f] sm:$0xff] }
 0x23b   : > { %1115 = vst.msk [vmem:[#allocation2 + $0x62] sm:$0x7f] %vm997_vm8, %v1113_v36  ;;  %v1256_v40 = vmax.f32 %v5214_v63, %v1251_v39  ;;  %v1219_v20 = vmax.f32 %v5222_v6, %v1215_v1  ;;  %1128 = vrot.lane.b32.xlu0 %v1123_v26, %s4931_s24  ;;  %v1192_v47 = vadd.f32 %v1180_v33, %v5246_v15 }
 0x23c   : > { %vm1184_vm12 = vcmp.gt.f32.partialorder %v1182_v37, 0.0  ;;  %v1186_v41 = vmul.f32 0.2, %v1182_v37  ;;  %vm1146_vm13 = vcmp.gt.f32.partialorder %v1144_v38, 0.0  ;;  %v1148_v42 = vmul.f32 0.2, %v1144_v38 }
 0x23d   : > { %v1258_v43 = vadd.f32 %v5162_v48, %v1256_v40  ;;  %v1221_v44 = vadd.f32 %v5162_v48, %v1219_v20  ;;  %vm1156_vm14 = vcmp.gt.f32.partialorder %v1154_v62, 0.0  ;;  %v1158_v50 = vmul.f32 0.2, %v1154_v62 }
 0x23e   : > { %v1188_v46 = vsel %vm1184_vm12, %v1182_v37, %v1186_v41  ;;  %v1150_v49 = vsel %vm1146_vm13, %v1144_v38, %v1148_v42  ;;  %v1139_v63 = vpop.permute.xlu1 %1138  ;;  %v1177_v6 = vpop.permute.xlu0 %1176  ;;  %v1231_v57 = vadd.f32 %v1219_v20, %v5246_v15  ;;  %v1236_v27 = vsel %vm1232_vm5, %v1230_v35, %v1234_v45  ;;  %v5339_v20 = vld [vmem:[#allocation2 + $0x40] sm:$0xff] }
 0x23f   : > { %1190 = vst.msk [vmem:[#allocation2 + $0x96] sm:$0xff] %vm377_vm0, %v1188_v46  ;;  %1152 = vst.msk [vmem:[#allocation2 + $0x78] sm:$0xff] %vm377_vm0, %v1150_v49  ;;  %vm1260_vm15 = vcmp.gt.f32.partialorder %v1258_v43, 0.0  ;;  %v1262_v21 = vmul.f32 0.2, %v1258_v43  ;;  %vm1223_vm3 = vcmp.gt.f32.partialorder %v1221_v44, 0.0  ;;  %v1143_v52 = vmax.f32 %v5224_v7, %v1139_v63 }
 0x240   : > { %v1225_v51 = vmul.f32 0.2, %v1221_v44  ;;  %v1160_v53 = vsel %vm1156_vm14, %v1154_v62, %v1158_v50  ;;  %v1181_v54 = vmax.f32 %v5228_v10, %v1177_v6  ;;  %v1196_v61 = vmul.f32 0.2, %v1192_v47  ;;  %v1339_v62 = vld [vmem:[#allocation2 + $0x3d] sm:$0xff] }
 0x241   : > { %v1264_v3 = vsel %vm1260_vm15, %v1258_v43, %v1262_v21  ;;  %1164 = vrot.lane.b32.xlu1 %v1160_v53, %s4931_s24  ;;  %v1145_v58 = vadd.f32 %v5162_v48, %v1143_v52  ;;  %v1155_v59 = vadd.f32 %v1143_v52, %v5246_v15  ;;  %vm1194_vm10 = vcmp.gt.f32.partialorder %v1192_v47, 0.0  ;;  %v1368_v42 = vld [vmem:[#allocation2 + $0x41] sm:$0xff] }
 0x242   : > { %v1227_v56 = vsel %vm1223_vm3, %v1221_v44, %v1225_v51  ;;  %1266 = vst.msk [vmem:[#allocation2 + $0xd2] sm:$0xff] %vm377_vm0, %v1264_v3  ;;  %v1183_v7 = vadd.f32 %v5162_v48, %v1181_v54  ;;  %v1253_v60 = vpop.permute.xlu0 %1252  ;;  %v1235_v16 = vmul.f32 0.2, %v1231_v57  ;;  %v1198_v19 = vsel %vm1194_vm10, %v1192_v47, %v1196_v61  ;;  %v1400_v50 = vld [vmem:[#allocation2 + $0x42] sm:$0xff] }
 0x243   : > { %1229 = vst.msk [vmem:[#allocation2 + $0xbc] sm:$0x7f] %vm997_vm8, %v1227_v56  ;;  %v1257_v10 = vmax.f32 %v5230_v14, %v1253_v60  ;;  %vm1147_vm6 = vcmp.gt.f32.partialorder %v1145_v58, 0.0  ;;  %v1149_v0 = vmul.f32 0.2, %v1145_v58  ;;  %vm1157_vm9 = vcmp.gt.f32.partialorder %v1155_v59, 0.0 }
 0x244   : > { %vm1185_vm7 = vcmp.gt.f32.partialorder %v1183_v7, 0.0  ;;  %v1187_v2 = vmul.f32 0.2, %v1183_v7  ;;  %v1159_v5 = vmul.f32 0.2, %v1155_v59  ;;  %v1193_v14 = vadd.f32 %v1181_v54, %v5246_v15  ;;  %v1314_v6 = vld [vmem:[#allocation2 + $0x1e] sm:$0xff] }
 0x245   : > { %1240 = vrot.lane.b32.xlu1 %v1236_v27, %s4931_s24  ;;  %v1259_v4 = vadd.f32 %v5162_v48, %v1257_v10  ;;  %v1151_v8 = vsel %vm1147_vm6, %v1145_v58, %v1149_v0  ;;  %vm1233_vm12 = vcmp.gt.f32.partialorder %v1231_v57, 0.0  ;;  %v1364_v56 = vld [vmem:[#allocation2 + $0x21] sm:$0xff]  ;;  %vm3330_vm15 = vcmask 1045504  }
 0x246   : > { %v1189_v9 = vsel %vm1185_vm7, %v1183_v7, %v1187_v2  ;;  %1153 = vst.msk [vmem:[#allocation2 + $0x80] sm:$0x7f] %vm997_vm8, %v1151_v8  ;;  %v1161_v18 = vsel %vm1157_vm9, %v1155_v59, %v1159_v5  ;;  %v1237_v30 = vsel %vm1233_vm12, %v1231_v57, %v1235_v16  ;;  %v1197_v22 = vmul.f32 0.2, %v1193_v14  ;;  %v1293_v57 = vld [vmem:[#allocation2 + $0x1f] sm:$0xff] }
 0x247   : > { %1191 = vst.msk [vmem:[#allocation2 + $0x9e] sm:$0x7f] %vm997_vm8, %v1189_v9  ;;  %vm1261_vm11 = vcmp.gt.f32.partialorder %v1259_v4, 0.0  ;;  %v1263_v17 = vmul.f32 0.2, %v1259_v4  ;;  %1166 = vrot.lane.b32.xlu0 %v1161_v18, %s4931_s24  ;;  %vm1195_vm13 = vcmp.gt.f32.partialorder %v1193_v14, 0.0 }
 0x248   : > { %v1199_v23 = vsel %vm1195_vm13, %v1193_v14, %v1197_v22  ;;  %v1343_v10 = vld [vmem:[#allocation2 + $0x5d] sm:$0xff]  ;;  %vm3618_vm9 = vcmask 0  }
 0x249   : > { %v1265_v48 = vsel %vm1261_vm11, %v1259_v4, %v1263_v17  ;;  %1202 = vrot.lane.b32.xlu1 %v1198_v19, %s4931_s24  ;;  %v1301_v61 = vld [vmem:[#allocation2 + $0x5f] sm:$0xff] }
 0x24a   : > { %1267 = vst.msk [vmem:[#allocation2 + $0xda] sm:$0x7f] %vm997_vm8, %v1265_v48  ;;  %v1385_v24 = vld [vmem:[#allocation2 + $0xc0] sm:$0x1]  ;;  %v5370_v8 = vld [vmem:[#allocation2 + $0x61] sm:$0xff] }
 0x24b   : > { %1242 = vrot.lane.b32.xlu0 %v1237_v30, %s4931_s24  ;;  %v5323_v15 = vld [vmem:[#allocation2 + $0xb9] sm:$0xff] }
 0x24c   : > { %6701 = vst [vmem:[#allocation10_spill] sm:$0xff] %v5323_v15  ;;  %v4076_v25 = vpack.i.bf16 %v1385_v24, %v5323_v15  ;;  %v1272_v19 = vld [vmem:[#allocation2 + $0x20] sm:$0xff] }
 0x24d   : > { %v1396_v24 = vld [vmem:[#allocation2 + $0x22] sm:$0xff] }
 0x24f   : > { %1204 = vrot.lane.b32.xlu0 %v1199_v23, %s4931_s24 }
 0x253   : > { %4077 = vrot.lane.b32.xlu0 %v4076_v25, %s4930_s23 }
 0x29a   : > { %v1013_v28 = vpop.permute.xlu1 %1012 }
 0x29b   : > { %1018 = vst.msk [vmem:[#allocation2 + $0xf] sm:$0xff] %vm377_vm0, %v1013_v28 }
 0x29e   : > { %v1089_v29 = vpop.permute.xlu1 %1088  ;;  %v1051_v12 = vpop.permute.xlu0 %1050 }
 0x29f   : > { %1094 = vst.msk [vmem:[#allocation2 + $0x4b] sm:$0xff] %vm377_vm0, %v1089_v29  ;;  %1056 = vst.msk [vmem:[#allocation2 + $0x2d] sm:$0xff] %vm377_vm0, %v1051_v12 }
 0x2a2   : > { %v1127_v55 = vpop.permute.xlu1 %1126  ;;  %v1291_v18 = vld [vmem:[#allocation2 + $0xf] sm:$0xff] }
 0x2a3   : > { %1132 = vst.msk [vmem:[#allocation2 + $0x69] sm:$0xff] %vm377_vm0, %v1127_v55 }
 0x2a5   : > { %v1091_v31 = vpop.permute.xlu0 %1090 }
 0x2a6   : > { %v1015_v33 = vpop.permute.xlu1 %1014  ;;  %1095 = vst.msk [vmem:[#allocation2 + $0x53] sm:$0x7f] %vm997_vm8, %v1091_v31  ;;  %v1319_v11 = vld [vmem:[#allocation2 + $0x46] sm:$0xff]  ;;  %v1322_v31 = vld [vmem:[#allocation2 + $0x5e] sm:$0xff] }
 0x2a7   : > { %v1298_v34 = vld [vmem:[#allocation2 + $0x47] sm:$0xff]  ;;  %1019 = vst.msk [vmem:[#allocation2 + $0x17] sm:$0x7f] %vm997_vm8, %v1015_v33  ;;  %v4086_v35 = vpack.i.bf16 %v1319_v11, %v1318_v32 }
 0x2a8   : > { %v4081_v36 = vpack.i.bf16 %v1298_v34, %v1297_v13  ;;  %v1340_v37 = vld [vmem:[#allocation2 + $0x45] sm:$0xff] }
 0x2a9   : > { %4087 = vrot.lane.b32.xlu1 %v4086_v35, %s4931_s24  ;;  %v4101_v39 = vpack.i.bf16 %v1340_v37, %v1339_v62  ;;  %v1277_v1 = vld [vmem:[#allocation2 + $0x48] sm:$0xff]  ;;  %v5388_v34 = vld [vmem:[#allocation2 + $0x60] sm:$0xff] }
 0x2aa   : > { %4082 = vrot.lane.b32.xlu0 %v4081_v36, %s4930_s23  ;;  %v1053_v38 = vpop.permute.xlu1 %1052  ;;  %v4096_v26 = vpack.i.bf16 %v1277_v1, %v5339_v20  ;;  %v5343_v41 = vld [vmem:[#allocation2 + $0x49] sm:$0xff]  ;;  %v4126_v51 = vpack.i.bf16 %v1400_v50, %v1277_v1 }
 0x2ab   : > { %1057 = vst.msk [vmem:[#allocation2 + $0x35] sm:$0x7f] %vm997_vm8, %v1053_v38  ;;  %v4116_v44 = vpack.i.bf16 %v5343_v41, %v1368_v42  ;;  %v1401_v45 = vld [vmem:[#allocation2 + $0x4a] sm:$0xff] }
 0x2ac   : > { %v4131_v47 = vpack.i.bf16 %v1368_v42, %v1401_v45  ;;  %v1315_v49 = vld [vmem:[#allocation2 + $0x26] sm:$0xff]  ;;  %v4769_v45 = vld [vmem:[#allocation6 + $0xc8] sm:$0xff]  }
 0x2ad   : > { %4092 = vrot.lane.b32.xlu1 %v4086_v35, %s4932_s27  ;;  %v1129_v40 = vpop.permute.xlu0 %1128  ;;  %v4146_v52 = vpack.i.bf16 %v1315_v49, %v1314_v6  ;;  %v1397_v53 = vld [vmem:[#allocation2 + $0x2a] sm:$0xff]  ;;  %v1300_v23 = vld [vmem:[#allocation2 + $0x57] sm:$0xff]  ;;  %v1313_v6 = vld [vmem:[#allocation2 + $0xbf] sm:$0x1] }
 0x2ae   : > { %4102 = vrot.lane.b32.xlu0 %v4101_v39, %s4932_s27  ;;  %1133 = vst.msk [vmem:[#allocation2 + $0x71] sm:$0x7f] %vm997_vm8, %v1129_v40  ;;  %v1294_v54 = vld [vmem:[#allocation2 + $0x27] sm:$0xff]  ;;  %v4171_v58 = vpack.i.bf16 %v1364_v56, %v1397_v53  ;;  %v1292_v14 = vld [vmem:[#allocation2 + $0x17] sm:$0xff]  ;;  %v1299_v22 = vld [vmem:[#allocation2 + $0x4f] sm:$0xff] }
 0x2af   : > { %v4136_v59 = vpack.i.bf16 %v1294_v54, %v1293_v57  ;;  %v1344_v7 = vld [vmem:[#allocation2 + $0x65] sm:$0xff]  ;;  %v4221_v48 = vpack.i.bf16 %v1292_v14, %v1291_v18  ;;  %v5379_v28 = vpack.i.bf16 %v1300_v23, %v1299_v22  ;;  %v1362_v12 = vld [vmem:[#allocation2 + $0x11] sm:$0xff]  ;;  %v1395_v55 = vld [vmem:[#allocation2 + $0x1a] sm:$0xff] }
 0x2b0   : > { %v1302_v60 = vld [vmem:[#allocation2 + $0x67] sm:$0xff]  ;;  %v4186_v0 = vpack.i.bf16 %v1344_v7, %v1343_v10  ;;  %v4241_v33 = vpack.i.bf16 %v1362_v12, %v1395_v55  ;;  %v5384_v13 = vld [vmem:[#allocation2 + $0x19] sm:$0xff]  ;;  %v1278_v39 = vld [vmem:[#allocation2 + $0x50] sm:$0xff] }
 0x2b1   : > { %4097 = vrot.lane.b32.xlu1 %v4096_v26, %s4932_s27  ;;  %v4141_v2 = vpack.i.bf16 %v1302_v60, %v1301_v61  ;;  %v5364_v4 = vld [vmem:[#allocation2 + $0x69] sm:$0xff]  ;;  %6702 = vst [vmem:[#allocation11_spill] sm:$0xff] %v5384_v13  ;;  %v1321_v38 = vld [vmem:[#allocation2 + $0x56] sm:$0xff]  ;;  %v4276_v49 = vpack.i.bf16 %v1278_v39, %v5343_v41  ;;  %v4777_v57 = vld [vmem:[#allocation6 + $0xd8] sm:$0xff]  }
 0x2b2   : > { %4112 = vrot.lane.b32.xlu0 %v4081_v36, %s4931_s24  ;;  %v5366_v5 = vld [vmem:[#allocation2 + $0x29] sm:$0xff]  ;;  %v4201_v9 = vpack.i.bf16 %v5364_v4, %v5370_v8  ;;  %v5394_v1 = vld [vmem:[#allocation2 + $0x58] sm:$0xff]  ;;  %v4779_v7 = vld [vmem:[#allocation6 + $0x98] sm:$0xff]  }
 0x2b3   : > { %v1165_v43 = vpop.permute.xlu1 %1164  ;;  %v4156_v16 = vpack.i.bf16 %v5366_v5, %v1364_v56  ;;  %v1273_v17 = vld [vmem:[#allocation2 + $0x28] sm:$0xff]  ;;  %v4256_v40 = vpack.i.bf16 %v5394_v1, %v1278_v39  ;;  %v5405_v50 = vld [vmem:[#allocation2 + $0x10] sm:$0xff]  ;;  %v4775_v54 = vld [vmem:[#allocation6 + $0x90] sm:$0xff]  }
 0x2b4   : > { %1170 = vst.msk [vmem:[#allocation2 + $0x87] sm:$0xff] %vm377_vm0, %v1165_v43  ;;  %v4161_v30 = vpack.i.bf16 %v1273_v17, %v1272_v19  ;;  %v4166_v25 = vpack.i.bf16 %v1396_v24, %v1273_v17  ;;  %v1323_v29 = vld [vmem:[#allocation2 + $0x66] sm:$0xff]  ;;  %v1320_v37 = vld [vmem:[#allocation2 + $0x4e] sm:$0xff]  ;;  %v4231_v53 = vpack.i.bf16 %v5405_v50, %v1313_v6  ;;  %v4776_v56 = vld [vmem:[#allocation6 + $0x50] sm:$0xff]  }
 0x2b5   : > { %4107 = vrot.lane.b32.xlu1 %v4081_v36, %s4932_s27  ;;  %v4176_v32 = vpack.i.bf16 %v1323_v29, %v1322_v31  ;;  %v1281_v11 = vld [vmem:[#allocation2 + $0x68] sm:$0xff]  ;;  %v4246_v36 = vpack.i.bf16 %v1272_v19, %v5384_v13  ;;  %v4251_v62 = vpack.i.bf16 %v1321_v38, %v1320_v37  ;;  %v5412_v41 = vld [vmem:[#allocation2 + $0x12] sm:$0xff] }
 0x2b6   : > { %4117 = vrot.lane.b32.xlu0 %v4116_v44, %s4931_s24  ;;  %v4181_v35 = vpack.i.bf16 %v1281_v11, %v5388_v34  ;;  %v4767_v42 = vld [vmem:[#allocation6 + $0x80] sm:$0xff]   ;;  %v1402_v10 = vld [vmem:[#allocation2 + $0x52] sm:$0xff]  ;;  %v4780_v61 = vld [vmem:[#allocation6 + $0x58] sm:$0xff]  }
 0x2b7   : > { %v1241_v46 = vpop.permute.xlu1 %1240  ;;  %v1404_v43 = vld [vmem:[#allocation2 + $0x62] sm:$0xff]  ;;  %v1341_v60 = vld [vmem:[#allocation2 + $0x4d] sm:$0xff]  ;;  %v1296_v18 = vld [vmem:[#allocation2 + $0x37] sm:$0xff] }
 0x2b8   : > { %1246 = vst.msk [vmem:[#allocation2 + $0xc3] sm:$0xff] %vm377_vm0, %v1241_v46  ;;  %v4768_v44 = vld [vmem:[#allocation6 + $0x40] sm:$0xff]   ;;  %v1370_v23 = vld [vmem:[#allocation2 + $0x51] sm:$0xff]  ;;  %v4789_v31 = vld [vmem:[#allocation6 + $0xf0] sm:$0xff]  }
 0x2b9   : > { %4132 = vrot.lane.b32.xlu1 %v4131_v47, %s4930_s23  ;;  %v1167_v63 = vpop.permute.xlu0 %1166  ;;  %v4770_v46 = vld [vmem:[#allocation6] sm:$0xff]   ;;  %v4216_v47 = vpack.i.bf16 %v1404_v43, %v1281_v11  ;;  %3768 = vmatprep.subr.bf16.mxu0 %v4768_v44  ;;  %v4787_v24 = vld [vmem:[#allocation6 + $0xa8] sm:$0xff]   ;;  %v4792_v39 = vld [vmem:[#allocation6 + $0x70] sm:$0xff]  }
 0x2ba   : > { %4122 = vrot.lane.b32.xlu0 %v4096_v26, %s4931_s24  ;;  %1171 = vst.msk [vmem:[#allocation2 + $0x8f] sm:$0x7f] %vm997_vm8, %v1167_v63  ;;  %v4766_v26 = vld [vmem:[#allocation6 + $0xc0] sm:$0xff]   ;;  %v4771_v63 = vld [vmem:[#allocation6 + $0x88] sm:$0xff]   ;;  %3769 = vmatpush3.bf16.msra.mxu0 %v4770_v46  ;;  %v4795_v43 = vld [vmem:[#allocation6 + $0xb8] sm:$0xff]  }
 0x2bb   : > { %v1203_v21 = vpop.permute.xlu1 %1202  ;;  %3856 = vmatprep.subr.bf16.mxu1 %v4766_v26  ;;  %v4783_v14 = vld [vmem:[#allocation6 + $0xa0] sm:$0xff]   ;;  %v1304_v12 = vld [vmem:[#allocation2 + $0x77] sm:$0xff]  ;;  %v4796_v46 = vld [vmem:[#allocation6 + $0x78] sm:$0xff]  }
 0x2bc   : > { %1208 = vst.msk [vmem:[#allocation2 + $0xa5] sm:$0xff] %vm377_vm0, %v1203_v21  ;;  %3857 = vmatpush3.bf16.msra.mxu1 %v4767_v42  ;;  %v4772_v21 = vld [vmem:[#allocation6 + $0x48] sm:$0xff]   ;;  %v4784_v19 = vld [vmem:[#allocation6 + $0x60] sm:$0xff]  }
 0x2bd   : > { %4147 = vrot.lane.b32.xlu1 %v4146_v52, %s4931_s24  ;;  %v1243_v3 = vpop.permute.xlu0 %1242  ;;  %3858 = vmatprep.subr.bf16.mxu1 %v4769_v45  ;;  %v4774_v52 = vld [vmem:[#allocation6 + $0x8] sm:$0xff]  }
 0x2be   : > { %4127 = vrot.lane.b32.xlu0 %v4126_v51, %s4930_s23  ;;  %1247 = vst.msk [vmem:[#allocation2 + $0xcb] sm:$0x7f] %vm997_vm8, %v1243_v3  ;;  %v4773_v51 = vld [vmem:[#allocation6 + $0xd0] sm:$0xff]   ;;  %3770 = vmatprep.subr.bf16.mxu0 %v4772_v21  ;;  %v1295_v17 = vld [vmem:[#allocation2 + $0x2f] sm:$0xff] }
 0x2bf   : > { %v5410_v3 = vld [vmem:[#allocation2 + $0x18] sm:$0xff]  ;;  %3771 = vmatpush3.bf16.msra.mxu0 %v4774_v52  ;;  %v4311_v22 = vpack.i.bf16 %v1296_v18, %v1295_v17  ;;  %v1303_v29 = vld [vmem:[#allocation2 + $0x6f] sm:$0xff] }
 0x2c0   : > { %3859 = vmatpush3.bf16.msra.mxu1 %v4771_v63  ;;  %3772 = vmatprep.subr.bf16.mxu0 %v4776_v56  ;;  %v4788_v55 = vld [vmem:[#allocation6 + $0x68] sm:$0xff]   ;;  %v5426_v11 = vpack.i.bf16 %v1304_v12, %v1303_v29 }
 0x2c1   : > { %4172 = vrot.lane.b32.xlu1 %v4171_v58, %s4930_s23  ;;  %v1205_v27 = vpop.permute.xlu0 %1204  ;;  %3860 = vmatprep.subr.bf16.mxu1 %v4773_v51  ;;  %v4778_v58 = vld [vmem:[#allocation6 + $0x10] sm:$0xff]   ;;  %v5431_v26 = vld [vmem:[#allocation2 + $0x30] sm:$0xff] }
 0x2c2   : > { %4137 = vrot.lane.b32.xlu0 %v4136_v59, %s4930_s23  ;;  %1209 = vst.msk [vmem:[#allocation2 + $0xad] sm:$0x7f] %vm997_vm8, %v1205_v27  ;;  %v1342_v27 = vld [vmem:[#allocation2 + $0x55] sm:$0xff]  ;;  %v1337_v63 = vld [vmem:[#allocation2 + $0x2d] sm:$0xff]  ;;  %v4351_v6 = vpack.i.bf16 %v5431_v26, %v5366_v5  ;;  %vm3316_vm8 = vcmask 1044480  }
 0x2c3   : > { %3773 = vmatpush3.bf16.msra.mxu0 %v4778_v58  ;;  %v1317_v37 = vld [vmem:[#allocation2 + $0x36] sm:$0xff] }
 0x2c4   : > { %3861 = vmatpush3.bf16.msra.mxu1 %v4775_v54  ;;  %3774 = vmatprep.subr.bf16.mxu0 %v4780_v61  ;;  %v5433_v42 = vld [vmem:[#allocation2 + $0x38] sm:$0xff] }
 0x2c5   : > { %4187 = vrot.lane.b32.xlu1 %v4186_v0, %s4932_s27  ;;  %3862 = vmatprep.subr.bf16.mxu1 %v4777_v57  ;;  %v4781_v0 = vld [vmem:[#allocation6 + $0xe0] sm:$0xff]   ;;  %v4331_v45 = vpack.i.bf16 %v5433_v42, %v5431_v26  ;;  %v5446_v21 = vld [vmem:[#allocation2 + $0x31] sm:$0xff]  ;;  %v5448_v51 = vld [vmem:[#allocation2 + $0x3a] sm:$0xff]  ;;  %v5458_v54 = vpop.permute.xlu0 %4077 }
 0x2c6   : > { %4142 = vrot.lane.b32.xlu0 %v4141_v2, %s4930_s23  ;;  %6703 = vst [vmem:[#allocation12_spill] sm:$0xff] %v5446_v21  ;;  %6704 = vst [vmem:[#allocation13_spill] sm:$0xff] %v5448_v51  ;;  %v4371_v52 = vpack.i.bf16 %v5446_v21, %v5448_v51  ;;  %v1324_v57 = vld [vmem:[#allocation2 + $0x6e] sm:$0xff]  ;;  %v1325_v58 = vld [vmem:[#allocation2 + $0x76] sm:$0xff] }
 0x2c7   : > { %6705 = vst [vmem:[#allocation14_spill] sm:$0xff] %v5458_v54  ;;  %v1283_v61 = vld [vmem:[#allocation2 + $0x78] sm:$0xff]  ;;  %v1419_v54 = vld [vmem:[#allocation2 + $0xc8] sm:$0xff] }
 0x2c8   : > { %3863 = vmatpush3.bf16.msra.mxu1 %v4779_v7  ;;  %v1312_v13 = vld [vmem:[#allocation2 + $0xb7] sm:$0xff] }
 0x2c9   : > { %4197 = vrot.lane.b32.xlu1 %v4141_v2, %s4931_s24  ;;  %3864 = vmatprep.subr.bf16.mxu1 %v4781_v0 }
 0x2ca   : > { %4152 = vrot.lane.b32.xlu0 %v4136_v59, %s4931_s24  ;;  %v4236_v59 = vpack.i.bf16 %v5412_v41, %v5410_v3 }
 0x2cc   : > { %3865 = vmatpush3.bf16.msra.mxu1 %v4783_v14  ;;  %v1346_v14 = vld [vmem:[#allocation2 + $0x75] sm:$0xff] }
 0x2cd   : > { %4202 = vrot.lane.b32.xlu1 %v4201_v9, %s4931_s24  ;;  %v4261_v9 = vpack.i.bf16 %v1342_v27, %v1341_v60  ;;  %v4381_v60 = vpack.i.bf16 %v1325_v58, %v1324_v57  ;;  %v5470_v27 = vld [vmem:[#allocation2 + $0x32] sm:$0xff]  ;;  %v1351_v57 = vld [vmem:[#allocation2 + $0x9d] sm:$0xff] }
 0x2ce   : > { %4157 = vrot.lane.b32.xlu0 %v4156_v16, %s4931_s24  ;;  %v4296_v16 = vpack.i.bf16 %v1402_v10, %v5394_v1  ;;  %v4793_v1 = vld [vmem:[#allocation6 + $0xf8] sm:$0xff]   ;;  %v1282_v10 = vld [vmem:[#allocation2 + $0x70] sm:$0xff] }
 0x2d1   : > { %4222 = vrot.lane.b32.xlu1 %v4221_v48, %s4930_s23  ;;  %v4785_v48 = vld [vmem:[#allocation6 + $0xe8] sm:$0xff]  }
 0x2d2   : > { %4162 = vrot.lane.b32.xlu0 %v4161_v30, %s4931_s24  ;;  %v4786_v30 = vld [vmem:[#allocation6 + $0x20] sm:$0xff]   ;;  %3866 = vmatprep.subr.bf16.mxu1 %v4785_v48 }
 0x2d3   : > { %3867 = vmatpush3.bf16.msra.mxu1 %v4787_v24  ;;  %v1405_v48 = vld [vmem:[#allocation2 + $0x6a] sm:$0xff] }
 0x2d4   : > { %3868 = vmatprep.subr.bf16.mxu1 %v4789_v31  ;;  %v1374_v24 = vld [vmem:[#allocation2 + $0x71] sm:$0xff]  ;;  %v4411_v31 = vpack.i.bf16 %v1282_v10, %v5364_v4 }
 0x2d5   : > { %4227 = vrot.lane.b32.xlu1 %v5379_v28, %s4930_s23 }
 0x2d6   : > { %4167 = vrot.lane.b32.xlu0 %v4166_v25, %s4930_s23  ;;  %v1371_v25 = vld [vmem:[#allocation2 + $0x59] sm:$0xff] }
 0x2d7   : > { %v4306_v44 = vpack.i.bf16 %v5388_v34, %v1371_v25 }
 0x2d9   : > { %4242 = vrot.lane.b32.xlu1 %v4241_v33, %s4930_s23  ;;  %v4281_v33 = vpack.i.bf16 %v1371_v25, %v1370_v23  ;;  %v1375_v25 = vld [vmem:[#allocation2 + $0x79] sm:$0xff] }
 0x2da   : > { %4177 = vrot.lane.b32.xlu0 %v4176_v32, %s4932_s27 }
 0x2dd   : > { %4247 = vrot.lane.b32.xlu1 %v4246_v36, %s4930_s23  ;;  %v1316_v36 = vld [vmem:[#allocation2 + $0x2e] sm:$0xff] }
 0x2de   : > { %4182 = vrot.lane.b32.xlu0 %v4181_v35, %s4932_s27 }
 0x2e1   : > { %4252 = vrot.lane.b32.xlu1 %v4251_v62, %s4932_s27 }
 0x2e2   : > { %4192 = vrot.lane.b32.xlu0 %v4141_v2, %s4932_s27  ;;  %v4782_v2 = vld [vmem:[#allocation6 + $0x18] sm:$0xff]  }
 0x2e3   : > { %3775 = vmatpush3.bf16.msra.mxu0 %v4782_v2  ;;  %v4366_v2 = vpack.i.bf16 %v5470_v27, %v5433_v42 }
 0x2e4   : > { %3776 = vmatprep.subr.bf16.mxu0 %v4784_v19 }
 0x2e5   : > { %4257 = vrot.lane.b32.xlu1 %v4256_v40, %s4932_s27 }
 0x2e6   : > { %4207 = vrot.lane.b32.xlu0 %v4176_v32, %s4931_s24  ;;  %v4790_v32 = vld [vmem:[#allocation6 + $0x28] sm:$0xff]  }
 0x2e7   : > { %3777 = vmatpush3.bf16.msra.mxu0 %v4786_v30 }
 0x2e8   : > { %3778 = vmatprep.subr.bf16.mxu0 %v4788_v55  ;;  %v4416_v55 = vpack.i.bf16 %v1375_v25, %v1374_v24 }
 0x2e9   : > { %4267 = vrot.lane.b32.xlu1 %v5379_v28, %s4932_s27 }
 0x2ea   : > { %4212 = vrot.lane.b32.xlu0 %v4181_v35, %s4931_s24  ;;  %v4791_v35 = vld [vmem:[#allocation6 + $0xb0] sm:$0xff]  }
 0x2eb   : > { %3779 = vmatpush3.bf16.msra.mxu0 %v4790_v32  ;;  %3869 = vmatpush3.bf16.msra.mxu1 %v4791_v35  ;;  %v1407_v32 = vld [vmem:[#allocation2 + $0x7a] sm:$0xff]  ;;  %v1306_v35 = vld [vmem:[#allocation2 + $0x87] sm:$0xff] }
 0x2ec   : > { %3780 = vmatprep.subr.bf16.mxu0 %v4792_v39  ;;  %3870 = vmatprep.subr.bf16.mxu1 %v4793_v1  ;;  %v1326_v39 = vld [vmem:[#allocation2 + $0x7e] sm:$0xff] }
 0x2ed   : > { %4277 = vrot.lane.b32.xlu1 %v4276_v49, %s4930_s23  ;;  %v1338_v49 = vld [vmem:[#allocation2 + $0x35] sm:$0xff] }
 0x2ee   : > { %4217 = vrot.lane.b32.xlu0 %v4216_v47, %s4930_s23  ;;  %v4797_v47 = vld [vmem:[#allocation6 + $0x38] sm:$0xff]   ;;  %v4336_v34 = vpack.i.bf16 %v1338_v49, %v1337_v63 }
 0x2ef   : > { %3871 = vmatpush3.bf16.msra.mxu1 %v4795_v43 }
 0x2f1   : > { %4287 = vrot.lane.b32.xlu1 %v4251_v62, %s4931_s24  ;;  %v4326_v62 = vpack.i.bf16 %v1317_v37, %v1316_v36  ;;  %v1305_v36 = vld [vmem:[#allocation2 + $0x7f] sm:$0xff] }
 0x2f2   : > { %4232 = vrot.lane.b32.xlu0 %v4231_v53, %s4930_s23  ;;  %v5454_v53 = vld [vmem:[#allocation2 + $0x39] sm:$0xff]  ;;  %v4441_v4 = vpack.i.bf16 %v1306_v35, %v1305_v36  ;;  %v1328_v36 = vld [vmem:[#allocation2 + $0x8e] sm:$0xff] }
 0x2f3   : > { %v4356_v5 = vpack.i.bf16 %v5454_v53, %v5446_v21  ;;  %v4376_v56 = vpack.i.bf16 %v5339_v20, %v5454_v53  ;;  %v5603_v21 = vld [vmem:[#allocation2 + $0xaa] sm:$0xff] }
 0x2f4   : > { %6723 = vst [vmem:[#allocation32_spill] sm:$0xff] %v5603_v21  ;;  %v5687_v21 = vld [vmem:[#allocation2 + $0xa2] sm:$0xff] }
 0x2f5   : > { %4292 = vrot.lane.b32.xlu1 %v4256_v40, %s4931_s24  ;;  %v4794_v40 = vld [vmem:[#allocation6 + $0x30] sm:$0xff]   ;;  %6738 = vst [vmem:[#allocation47_spill] sm:$0xff] %v5687_v21 }
 0x2f6   : > { %4237 = vrot.lane.b32.xlu0 %v4236_v59, %s4930_s23  ;;  %3781 = vmatpush3.bf16.msra.mxu0 %v4794_v40 }
 0x2f7   : > { %3782 = vmatprep.subr.bf16.mxu0 %v4796_v46  ;;  %v1347_v46 = vld [vmem:[#allocation2 + $0x7d] sm:$0xff] }
 0x2f9   : > { %4297 = vrot.lane.b32.xlu1 %v4296_v16, %s4930_s23  ;;  %v1345_v16 = vld [vmem:[#allocation2 + $0x6d] sm:$0xff] }
 0x2fa   : > { %4262 = vrot.lane.b32.xlu0 %v4261_v9, %s4932_s27  ;;  %3783 = vmatpush3.bf16.msra.mxu0 %v4797_v47  ;;  %v4386_v9 = vpack.i.bf16 %v1283_v61, %v1282_v10  ;;  %v4391_v19 = vpack.i.bf16 %v1346_v14, %v1345_v16  ;;  %v1308_v16 = vld [vmem:[#allocation2 + $0x97] sm:$0xff] }
 0x2fd   : > { %4312 = vrot.lane.b32.xlu1 %v4311_v22, %s4930_s23 }
 0x2fe   : > { %4272 = vrot.lane.b32.xlu0 %v5379_v28, %s4931_s24  ;;  %v1403_v28 = vld [vmem:[#allocation2 + $0x5a] sm:$0xff] }
 0x2ff   : > { %v4301_v38 = vpack.i.bf16 %v1370_v23, %v1403_v28  ;;  %v4401_v23 = vpack.i.bf16 %v5370_v8, %v1405_v48 }
 0x301   : > { %4317 = vrot.lane.b32.xlu1 %v5426_v11, %s4930_s23 }
 0x302   : > { %4282 = vrot.lane.b32.xlu0 %v4281_v33, %s4931_s24 }
 0x305   : > { %4327 = vrot.lane.b32.xlu1 %v4326_v62, %s4932_s27 }
 0x306   : > { %4302 = vrot.lane.b32.xlu0 %v4301_v38, %s4930_s23  ;;  %v1327_v38 = vld [vmem:[#allocation2 + $0x86] sm:$0xff] }
 0x307   : > { %v4446_v43 = vpack.i.bf16 %v1327_v38, %v1326_v39 }
 0x309   : > { %4332 = vrot.lane.b32.xlu1 %v4331_v45, %s4932_s27 }
 0x30a   : > { %4307 = vrot.lane.b32.xlu0 %v4306_v44, %s4930_s23 }
 0x30d   : > { %4342 = vrot.lane.b32.xlu1 %v4311_v22, %s4932_s27 }
 0x30e   : > { %4322 = vrot.lane.b32.xlu0 %v4326_v62, %s4931_s24  ;;  %v1406_v62 = vld [vmem:[#allocation2 + $0x72] sm:$0xff] }
 0x30f   : > { %v4431_v44 = vpack.i.bf16 %v1406_v62, %v1283_v61  ;;  %v5538_v61 = vld [vmem:[#allocation2 + $0xa0] sm:$0xff] }
 0x311   : > { %4352 = vrot.lane.b32.xlu1 %v4351_v6, %s4930_s23 }
 0x312   : > { %4337 = vrot.lane.b32.xlu0 %v4336_v34, %s4932_s27  ;;  %v1284_v34 = vld [vmem:[#allocation2 + $0x80] sm:$0xff] }
 0x315   : > { %4372 = vrot.lane.b32.xlu1 %v4371_v52, %s4930_s23 }
 0x316   : > { %4347 = vrot.lane.b32.xlu0 %v4311_v22, %s4931_s24 }
 0x319   : > { %4377 = vrot.lane.b32.xlu1 %v4376_v56, %s4930_s23  ;;  %v1352_v56 = vld [vmem:[#allocation2 + $0xa5] sm:$0xff] }
 0x31a   : > { %4357 = vrot.lane.b32.xlu0 %v4356_v5, %s4931_s24  ;;  %v4466_v5 = vpack.i.bf16 %v1284_v34, %v1375_v25  ;;  %v4476_v10 = vpack.i.bf16 %v1352_v56, %v1351_v57  ;;  %v1285_v25 = vld [vmem:[#allocation2 + $0x88] sm:$0xff] }
 0x31b   : > { %v5466_v59 = vpop.permute.xlu1 %4087  ;;  %v4491_v35 = vpack.i.bf16 %v1285_v25, %v1284_v34  ;;  %v1408_v57 = vld [vmem:[#allocation2 + $0x82] sm:$0xff] }
 0x31c   : > { %v5468_v7 = vpop.permute.xlu0 %4082 }
 0x31d   : > { %4382 = vrot.lane.b32.xlu1 %v4381_v60, %s4932_s27 }
 0x31e   : > { %4362 = vrot.lane.b32.xlu0 %v4331_v45, %s4931_s24  ;;  %v1348_v45 = vld [vmem:[#allocation2 + $0x85] sm:$0xff] }
 0x31f   : > { %v5474_v20 = vpop.permute.xlu1 %4092  ;;  %v4451_v63 = vpack.i.bf16 %v1348_v45, %v1347_v46  ;;  %v1350_v45 = vld [vmem:[#allocation2 + $0x95] sm:$0xff] }
 0x320   : > { %v5476_v0 = vpop.permute.xlu0 %4102  ;;  %v5570_v46 = vld [vmem:[#allocation2 + $0x98] sm:$0xff] }
 0x321   : > { %4387 = vrot.lane.b32.xlu1 %v4386_v9, %s4932_s27 }
 0x322   : > { %4367 = vrot.lane.b32.xlu0 %v4366_v2, %s4930_s23  ;;  %v1307_v2 = vld [vmem:[#allocation2 + $0x8f] sm:$0xff] }
 0x323   : > { %v5482_v17 = vpop.permute.xlu1 %4097 }
 0x324   : > { %v5484_v18 = vpop.permute.xlu0 %4112 }
 0x325   : > { %4397 = vrot.lane.b32.xlu1 %v5426_v11, %s4932_s27 }
 0x326   : > { %4392 = vrot.lane.b32.xlu0 %v4391_v19, %s4932_s27 }
 0x327   : > { %v5489_v30 = vpop.permute.xlu1 %4107 }
 0x328   : > { %v5491_v22 = vpop.permute.xlu0 %4117 }
 0x329   : > { %4402 = vrot.lane.b32.xlu1 %v4401_v23, %s4930_s23  ;;  %v4486_v23 = vpack.i.bf16 %v1308_v16, %v1307_v2  ;;  %v4526_v16 = vpack.i.bf16 %v1408_v57, %v1285_v25  ;;  %v1335_v25 = vld [vmem:[#allocation2 + $0xc6] sm:$0xff] }
 0x32a   : > { %4407 = vrot.lane.b32.xlu0 %v5426_v11, %s4931_s24  ;;  %v4436_v11 = vpack.i.bf16 %v1374_v24, %v1407_v32  ;;  %v5550_v24 = vld [vmem:[#allocation2 + $0x89] sm:$0xff]  ;;  %v1418_v57 = vld [vmem:[#allocation2 + $0xc0] sm:$0xff] }
 0x32b   : > { %v5497_v29 = vpop.permute.xlu1 %4132 }
 0x32c   : > { %v5499_v12 = vpop.permute.xlu0 %4122 }
 0x32d   : > { %4412 = vrot.lane.b32.xlu1 %v4411_v31, %s4930_s23 }
 0x32e   : > { %4417 = vrot.lane.b32.xlu0 %v4416_v55, %s4931_s24  ;;  %v1376_v55 = vld [vmem:[#allocation2 + $0x81] sm:$0xff] }
 0x32f   : > { %v5504_v8 = vpop.permute.xlu1 %4147 }
 0x330   : > { %v5506_v33 = vpop.permute.xlu0 %4127  ;;  %v4150_v15 = vunpack.i.h.bf16 %v5504_v8 }
 0x331   : > { %4422 = vrot.lane.b32.xlu1 %v4381_v60, %s4931_s24 }
 0x332   : > { %4437 = vrot.lane.b32.xlu0 %v4436_v11, %s4930_s23  ;;  %v4496_v11 = vpack.i.bf16 %v5550_v24, %v1376_v55 }
 0x333   : > { %v5510_v37 = vpop.permute.xlu1 %4172 }
 0x334   : > { %v5512_v28 = vpop.permute.xlu0 %4137 }
 0x335   : > { %4427 = vrot.lane.b32.xlu1 %v4386_v9, %s4931_s24  ;;  %v5542_v9 = vld [vmem:[#allocation2 + $0x99] sm:$0xff] }
 0x336   : > { %4442 = vrot.lane.b32.xlu0 %v4441_v4, %s4930_s23  ;;  %v4481_v48 = vpack.i.bf16 %v5538_v61, %v5542_v9 }
 0x337   : > { %v5516_v1 = vpop.permute.xlu1 %4187 }
 0x338   : > { %6706 = vst [vmem:[#allocation15_spill] sm:$0xff] %v5516_v1  ;;  %v5518_v40 = vpop.permute.xlu0 %4142 }
 0x339   : > { %6707 = vst [vmem:[#allocation16_spill] sm:$0xff] %v5518_v40  ;;  %4432 = vrot.lane.b32.xlu1 %v4431_v44, %s4930_s23  ;;  %v1349_v44 = vld [vmem:[#allocation2 + $0x8d] sm:$0xff]  ;;  %v5596_v40 = vld [vmem:[#allocation2 + $0xbd] sm:$0xff] }
 0x33a   : > { %4447 = vrot.lane.b32.xlu0 %v4446_v43, %s4932_s27  ;;  %v4516_v56 = vpack.i.bf16 %v1350_v45, %v1349_v44  ;;  %v1411_v44 = vld [vmem:[#allocation2 + $0x9a] sm:$0xff]  ;;  %v5592_v45 = vld [vmem:[#allocation2 + $0x92] sm:$0xff] }
 0x33b   : > { %v5522_v47 = vpop.permute.xlu1 %4197 }
 0x33c   : > { %6708 = vst [vmem:[#allocation17_spill] sm:$0xff] %v5522_v47  ;;  %v5524_v49 = vpop.permute.xlu0 %4152 }
 0x33d   : > { %4452 = vrot.lane.b32.xlu1 %v4451_v63, %s4932_s27 }
 0x33e   : > { %4457 = vrot.lane.b32.xlu0 %v4441_v4, %s4932_s27 }
 0x33f   : > { %v5528_v6 = vpop.permute.xlu1 %4202 }
 0x340   : > { %6709 = vst [vmem:[#allocation18_spill] sm:$0xff] %v5528_v6  ;;  %v5530_v52 = vpop.permute.xlu0 %4157 }
 0x341   : > { %4462 = vrot.lane.b32.xlu1 %v4441_v4, %s4931_s24  ;;  %v1329_v4 = vld [vmem:[#allocation2 + $0x96] sm:$0xff] }
 0x342   : > { %4467 = vrot.lane.b32.xlu0 %v4466_v5, %s4930_s23  ;;  %v5565_v39 = vpack.i.bf16 %v1329_v4, %v1328_v36  ;;  %v1378_v4 = vld [vmem:[#allocation2 + $0x91] sm:$0xff] }
 0x343   : > { %v5534_v58 = vpop.permute.xlu1 %4222 }
 0x344   : > { %v5536_v60 = vpop.permute.xlu0 %4162 }
 0x345   : > { %6710 = vst [vmem:[#allocation19_spill] sm:$0xff] %v5536_v60  ;;  %4477 = vrot.lane.b32.xlu1 %v4476_v10, %s4932_s27 }
 0x346   : > { %4472 = vrot.lane.b32.xlu0 %v4446_v43, %s4931_s24  ;;  %v1286_v43 = vld [vmem:[#allocation2 + $0x90] sm:$0xff] }
 0x347   : > { %v5544_v14 = vpop.permute.xlu1 %4227  ;;  %v5577_v5 = vpack.i.bf16 %v5570_v46, %v1286_v43 }
 0x348   : > { %6711 = vst [vmem:[#allocation20_spill] sm:$0xff] %v5544_v14  ;;  %v5546_v19 = vpop.permute.xlu0 %4167 }
 0x349   : > { %6712 = vst [vmem:[#allocation21_spill] sm:$0xff] %v5546_v19  ;;  %4487 = vrot.lane.b32.xlu1 %v4486_v23, %s4930_s23 }
 0x34a   : > { %4482 = vrot.lane.b32.xlu0 %v4481_v48, %s4930_s23  ;;  %v1409_v48 = vld [vmem:[#allocation2 + $0x8a] sm:$0xff] }
 0x34b   : > { %v5554_v31 = vpop.permute.xlu1 %4242  ;;  %v4531_v36 = vpack.i.bf16 %v1376_v55, %v1409_v48  ;;  %v1387_v55 = vld [vmem:[#allocation2 + $0xc7] sm:$0xff] }
 0x34c   : > { %6713 = vst [vmem:[#allocation22_spill] sm:$0xff] %v5554_v31  ;;  %v5556_v32 = vpop.permute.xlu0 %4177  ;;  %v5601_v48 = vld [vmem:[#allocation2 + $0xc9] sm:$0xff]  ;;  %v6747_v47 = vld [vmem:[#allocation19_spill] sm:$0xff] }
 0x34d   : > { %6714 = vst [vmem:[#allocation23_spill] sm:$0xff] %v5556_v32  ;;  %4497 = vrot.lane.b32.xlu1 %v4496_v11, %s4931_s24  ;;  %v5624_v32 = vpack.i.bf16 %v1419_v54, %v1418_v57  ;;  %v5654_v54 = vld [vmem:[#allocation2 + $0xb0] sm:$0xff] }
 0x34e   : > { %4492 = vrot.lane.b32.xlu0 %v4491_v35, %s4932_s27  ;;  %6730 = vst [vmem:[#allocation39_spill] sm:$0xff] %v5654_v54  ;;  %v5656_v57 = vld [vmem:[#allocation2 + $0xad] sm:$0xff] }
 0x34f   : > { %v5561_v38 = vpop.permute.xlu1 %4247  ;;  %6731 = vst [vmem:[#allocation40_spill] sm:$0xff] %v5656_v57 }
 0x350   : > { %6715 = vst [vmem:[#allocation24_spill] sm:$0xff] %v5561_v38  ;;  %v5563_v62 = vpop.permute.xlu0 %4182  ;;  %v5634_v38 = vld [vmem:[#allocation2 + $0xa9] sm:$0xff] }
 0x351   : > { %6716 = vst [vmem:[#allocation25_spill] sm:$0xff] %v5563_v62  ;;  %4502 = vrot.lane.b32.xlu1 %v5565_v39, %s4932_s27 }
 0x352   : > { %4507 = vrot.lane.b32.xlu0 %v4491_v35, %s4931_s24 }
 0x353   : > { %v5572_v63 = vpop.permute.xlu1 %4252 }
 0x354   : > { %6717 = vst [vmem:[#allocation26_spill] sm:$0xff] %v5572_v63  ;;  %v5574_v34 = vpop.permute.xlu0 %4192  ;;  %v5614_v63 = vld [vmem:[#allocation2 + $0xd6] sm:$0xff] }
 0x355   : > { %6718 = vst [vmem:[#allocation27_spill] sm:$0xff] %v5574_v34  ;;  %4512 = vrot.lane.b32.xlu1 %v5577_v5, %s4932_s27  ;;  %v5612_v34 = vld [vmem:[#allocation2 + $0xce] sm:$0xff] }
 0x356   : > { %4517 = vrot.lane.b32.xlu0 %v4516_v56, %s4932_s27  ;;  %v1334_v56 = vld [vmem:[#allocation2 + $0xbe] sm:$0xff] }
 0x357   : > { %v5582_v10 = vpop.permute.xlu1 %4257  ;;  %v5620_v62 = vpack.i.bf16 %v1335_v25, %v1334_v56  ;;  %v1309_v56 = vld [vmem:[#allocation2 + $0x9f] sm:$0xff]  ;;  %v5632_v25 = vld [vmem:[#allocation2 + $0xa8] sm:$0xff] }
 0x358   : > { %6719 = vst [vmem:[#allocation28_spill] sm:$0xff] %v5582_v10  ;;  %v5584_v2 = vpop.permute.xlu0 %4207  ;;  %v5610_v10 = vld [vmem:[#allocation2 + $0xc1] sm:$0xff]  ;;  %6727 = vst [vmem:[#allocation36_spill] sm:$0xff] %v5632_v25 }
 0x359   : > { %6720 = vst [vmem:[#allocation29_spill] sm:$0xff] %v5584_v2  ;;  %4522 = vrot.lane.b32.xlu1 %v4486_v23, %s4932_s27  ;;  %v4541_v2 = vpack.i.bf16 %v1286_v43, %v5550_v24  ;;  %v5616_v24 = vld [vmem:[#allocation2 + $0xd0] sm:$0xff]  ;;  %v5618_v43 = vld [vmem:[#allocation2 + $0xd8] sm:$0xff] }
 0x35a   : > { %4527 = vrot.lane.b32.xlu0 %v4526_v16, %s4930_s23  ;;  %v5598_v16 = vld [vmem:[#allocation2 + $0xc5] sm:$0xff]  ;;  %6726 = vst [vmem:[#allocation35_spill] sm:$0xff] %v5616_v24  ;;  %v5662_v24 = vpack.i.bf16 %v5632_v25, %v5538_v61  ;;  %v5677_v61 = vld [vmem:[#allocation2 + $0xb5] sm:$0xff] }
 0x35b   : > { %v5588_v11 = vpop.permute.xlu1 %4267  ;;  %6735 = vst [vmem:[#allocation44_spill] sm:$0xff] %v5677_v61  ;;  %v4130_v61 = vunpack.i.h.bf16 %v5506_v33 }
 0x35c   : > { %6721 = vst [vmem:[#allocation30_spill] sm:$0xff] %v5588_v11  ;;  %v5590_v35 = vpop.permute.xlu0 %4212  ;;  %v4566_v11 = vpack.i.bf16 %v1378_v4, %v1411_v44  ;;  %v1331_v44 = vld [vmem:[#allocation2 + $0xa6] sm:$0xff] }
 0x35d   : > { %6722 = vst [vmem:[#allocation31_spill] sm:$0xff] %v5590_v35  ;;  %4532 = vrot.lane.b32.xlu1 %v4531_v36, %s4930_s23  ;;  %v1386_v35 = vld [vmem:[#allocation2 + $0xbf] sm:$0xff] }
 0x35e   : > { %4537 = vrot.lane.b32.xlu0 %v4486_v23, %s4931_s24  ;;  %v4546_v23 = vpack.i.bf16 %v5542_v9, %v1378_v4  ;;  %v1310_v4 = vld [vmem:[#allocation2 + $0xa7] sm:$0xff]  ;;  %v5630_v14 = vpack.i.bf16 %v1387_v55, %v1386_v35 }
 0x35f   : > { %v5605_v51 = vpop.permute.xlu1 %4277  ;;  %v5648_v19 = vpack.i.bf16 %v1310_v4, %v1309_v56  ;;  %v1333_v4 = vld [vmem:[#allocation2 + $0xb6] sm:$0xff]  ;;  %v5679_v9 = vld [vmem:[#allocation2 + $0xcd] sm:$0xff] }
 0x360   : > { %6724 = vst [vmem:[#allocation33_spill] sm:$0xff] %v5605_v51  ;;  %v5607_v36 = vpop.permute.xlu0 %4217  ;;  %v1330_v51 = vld [vmem:[#allocation2 + $0x9e] sm:$0xff]  ;;  %v5666_v56 = vld [vmem:[#allocation2 + $0xb1] sm:$0xff]  ;;  %6736 = vst [vmem:[#allocation45_spill] sm:$0xff] %v5679_v9  ;;  %v4175_v9 = vunpack.i.h.bf16 %v5510_v37 }
 0x361   : > { %6725 = vst [vmem:[#allocation34_spill] sm:$0xff] %v5607_v36  ;;  %v1311_v36 = vld [vmem:[#allocation2 + $0xaf] sm:$0xff]  ;;  %4542 = vrot.lane.b32.xlu1 %v4541_v2, %s4930_s23  ;;  %v5642_v2 = vld [vmem:[#allocation2 + $0xa1] sm:$0xff]  ;;  %v5650_v60 = vpack.i.bf16 %v1331_v44, %v1330_v51  ;;  %6732 = vst [vmem:[#allocation41_spill] sm:$0xff] %v5666_v56  ;;  %v4084_v51 = vunpack.i.l.bf16 %v5468_v7 }
 0x362   : > { %4547 = vrot.lane.b32.xlu0 %v4546_v23, %s4931_s24  ;;  %v1332_v23 = vld [vmem:[#allocation2 + $0xae] sm:$0xff]  ;;  %v5652_v31 = vpack.i.bf16 %v1312_v13, %v1311_v36  ;;  %v4085_v13 = vunpack.i.h.bf16 %v5468_v7  ;;  %v5675_v44 = vld [vmem:[#allocation2 + $0xb8] sm:$0xff] }
 0x363   : > { %v5644_v35 = vpop.permute.xlu1 %4287  ;;  %v5673_v36 = vpack.i.bf16 %v1333_v4, %v1332_v23  ;;  %6734 = vst [vmem:[#allocation43_spill] sm:$0xff] %v5675_v44  ;;  %v4129_v23 = vunpack.i.l.bf16 %v5506_v33  ;;  %v1431_v7 = vld [vmem:[#allocation2 + $0x3b] sm:$0xff] }
 0x364   : > { %6728 = vst [vmem:[#allocation37_spill] sm:$0xff] %v5644_v35  ;;  %v5646_v55 = vpop.permute.xlu0 %4232  ;;  %v5683_v35 = vpack.i.bf16 %v5675_v44, %v5654_v54  ;;  %v5699_v44 = vld [vmem:[#allocation2 + $0xd5] sm:$0xff]  ;;  %v5711_v4 = vsel %vm377_vm0, %v5433_v42, %v4085_v13  ;;  %v4140_v42 = vunpack.i.h.bf16 %v5512_v28  ;;  %v4139_v13 = vunpack.i.l.bf16 %v5512_v28 }
 0x365   : > { %6729 = vst [vmem:[#allocation38_spill] sm:$0xff] %v5646_v55  ;;  %4552 = vrot.lane.b32.xlu1 %v5565_v39, %s4931_s24  ;;  %6733 = vst [vmem:[#allocation42_spill] sm:$0xff] %v5673_v36  ;;  %v5715_v36 = vsel %vm377_vm0, %v5431_v26, %v4084_v51  ;;  %v4135_v26 = vunpack.i.h.bf16 %v5497_v29  ;;  %v4134_v51 = vunpack.i.l.bf16 %v5497_v29  ;;  %v4174_v29 = vunpack.i.l.bf16 %v5510_v37 }
 0x366   : > { %4567 = vrot.lane.b32.xlu0 %v4566_v11, %s4930_s23  ;;  %6737 = vst [vmem:[#allocation46_spill] sm:$0xff] %v5683_v35  ;;  %6739 = vst [vmem:[#allocation48_spill] sm:$0xff] %v5699_v44  ;;  %v5701_v35 = vld [vmem:[#allocation2 + $0xba] sm:$0xff]  ;;  %v6741_v44 = vpack.i.bf16 %v5592_v45, %v5570_v46  ;;  %v4149_v28 = vunpack.i.l.bf16 %v5504_v8  ;;  %v4225_v45 = vunpack.i.h.bf16 %v5534_v58  ;;  %v4224_v46 = vunpack.i.l.bf16 %v5534_v58 }
 0x367   : > { %v5689_v39 = vpop.permute.xlu1 %4292  ;;  %6740 = vst [vmem:[#allocation49_spill] sm:$0xff] %v5701_v35  ;;  %v5753_v37 = vsel %vm377_vm0, %v5470_v27, %v4135_v26  ;;  %v5756_v56 = vsel %vm377_vm0, %v1431_v7, %v4134_v51  ;;  %v5771_v27 = vsel %vm377_vm0, %v5454_v53, %v4129_v23  ;;  %v1427_v7 = vld [vmem:[#allocation2 + $0x1b] sm:$0xff]  ;;  %v5775_v26 = vsel %vm377_vm0, %v5412_v41, %v4175_v9 }
 0x368   : > { %v5691_v11 = vpop.permute.xlu0 %4237  ;;  %6742 = vst [vmem:[#allocation50_spill] sm:$0xff] %v5753_v37  ;;  %v5778_v51 = vsel %vm377_vm0, %v1427_v7, %v4174_v29  ;;  %v6744_v8 = vpack.i.bf16 %v5598_v16, %v5596_v40  ;;  %v5790_v53 = vsel %vm377_vm0, %v5410_v3, %v4140_v42  ;;  %v5794_v41 = vsel %vm377_vm0, %v5405_v50, %v4139_v13  ;;  %v1268_v7 = vld [vmem:[#allocation2] sm:$0xff] }
 0x369   : > { %4557 = vrot.lane.b32.xlu1 %v5577_v5, %s4931_s24  ;;  %v4235_v9 = vunpack.i.h.bf16 %v5646_v55  ;;  %v4239_v58 = vunpack.i.l.bf16 %v5691_v11  ;;  %v4155_v42 = vunpack.i.h.bf16 %v5524_v49  ;;  %v4154_v50 = vunpack.i.l.bf16 %v5524_v49  ;;  %v1360_v55 = vld [vmem:[#allocation2 + $0x1] sm:$0xff]  ;;  %v6746_v49 = vld [vmem:[#allocation22_spill] sm:$0xff] }
 0x36a   : > { %4572 = vrot.lane.b32.xlu0 %v5620_v62, %s4932_s27  ;;  %v4159_v16 = vunpack.i.l.bf16 %v5530_v52  ;;  %v2440_v40 = vsel %vm377_vm0, %v1268_v7, %v4224_v46  ;;  %v4244_v13 = vunpack.i.l.bf16 %v6746_v49  ;;  %v4240_v6 = vunpack.i.h.bf16 %v5691_v11  ;;  %v6748_v7 = vld [vmem:[#allocation21_spill] sm:$0xff]  ;;  %v1425_v11 = vld [vmem:[#allocation2 + $0xb] sm:$0xff] }
 0x36b   : > { %v5729_v5 = vpop.permute.xlu1 %4297  ;;  %v4164_v46 = vunpack.i.l.bf16 %v6747_v47  ;;  %v4169_v1 = vunpack.i.l.bf16 %v6748_v7 }
 0x36c   : > { %v5731_v35 = vpop.permute.xlu0 %4262 }
 0x36d   : > { %4562 = vrot.lane.b32.xlu1 %v6741_v44, %s4930_s23  ;;  %v1430_v44 = vld [vmem:[#allocation2 + $0x33] sm:$0xff] }
 0x36e   : > { %4577 = vrot.lane.b32.xlu0 %v5624_v32, %s4932_s27  ;;  %v5767_v54 = vsel %vm377_vm0, %v1430_v44, %v4130_v61  ;;  %v4160_v61 = vunpack.i.h.bf16 %v5530_v52  ;;  %v2509_v44 = vsel %vm377_vm0, %v1360_v55, %v4235_v9  ;;  %v5830_v55 = vsel %vm380_vm1, %v2440_v40, %v4149_v28  ;;  %v6750_v9 = vld [vmem:[#allocation24_spill] sm:$0xff] }
 0x36f   : > { %v5760_v57 = vpop.permute.xlu1 %4312  ;;  %6743 = vst [vmem:[#allocation51_spill] sm:$0xff] %v5767_v54  ;;  %v1426_v28 = vld [vmem:[#allocation2 + $0x13] sm:$0xff]  ;;  %v2648_v40 = vsel %vm377_vm0, %v1425_v11, %v4244_v13 }
 0x370   : > { %v5762_v33 = vpop.permute.xlu0 %4272 }
 0x371   : > { %4582 = vrot.lane.b32.xlu1 %v6744_v8, %s4932_s27  ;;  %v1269_v8 = vld [vmem:[#allocation2 + $0x8] sm:$0xff] }
 0x372   : > { %4587 = vrot.lane.b32.xlu0 %v5630_v14, %s4932_s27  ;;  %v2441_v23 = vsel %vm377_vm0, %v1269_v8, %v4225_v45  ;;  %v4165_v45 = vunpack.i.h.bf16 %v6747_v47  ;;  %v4170_v8 = vunpack.i.h.bf16 %v6748_v7  ;;  %v6751_v47 = vpack.i.bf16 %v5601_v48, %v5610_v10  ;;  %v6752_v48 = vld [vmem:[#allocation20_spill] sm:$0xff] }
 0x373   : > { %v5802_v29 = vpop.permute.xlu1 %4317  ;;  %v2532_v7 = vsel %vm380_vm1, %v2509_v44, %v4154_v50  ;;  %v6753_v50 = vld [vmem:[#allocation11_spill] sm:$0xff] }
 0x374   : > { %6745 = vst [vmem:[#allocation52_spill] sm:$0xff] %v5802_v29  ;;  %v5804_v3 = vpop.permute.xlu0 %4282  ;;  %v1361_v29 = vld [vmem:[#allocation2 + $0x9] sm:$0xff] }
 0x375   : > { %4592 = vrot.lane.b32.xlu1 %v5630_v14, %s4931_s24  ;;  %v2510_v52 = vsel %vm377_vm0, %v1361_v29, %v4239_v58  ;;  %v4249_v58 = vunpack.i.l.bf16 %v6750_v9  ;;  %v1424_v29 = vld [vmem:[#allocation2 + $0x3] sm:$0xff] }
 0x376   : > { %4602 = vrot.lane.b32.xlu0 %v5620_v62, %s4931_s24  ;;  %v4245_v62 = vunpack.i.h.bf16 %v6746_v49  ;;  %v2533_v49 = vsel %vm380_vm1, %v2510_v52, %v4155_v42  ;;  %v5854_v42 = vsel %vm377_vm0, %v6753_v50, %v4169_v1  ;;  %v1393_v52 = vld [vmem:[#allocation2 + $0xa] sm:$0xff]  ;;  %v6754_v1 = vpack.i.bf16 %v5614_v63, %v5612_v34 }
 0x377   : > { %v4328_v14 = vpop.permute.xlu1 %4327 }
 0x378   : > { %v5826_v37 = vpop.permute.xlu0 %4302  ;;  %v4330_v25 = vunpack.i.h.bf16 %v4328_v14  ;;  %v4329_v21 = vunpack.i.l.bf16 %v4328_v14  ;;  %v5842_v14 = vsel %vm380_vm1, %v2441_v23, %v4150_v15  ;;  %v1392_v15 = vld [vmem:[#allocation2 + $0x2] sm:$0xff] }
 0x379   : > { %6749 = vst [vmem:[#allocation22_spill] sm:$0xff] %v5826_v37  ;;  %4597 = vrot.lane.b32.xlu1 %v6751_v47, %s4931_s24  ;;  %v2647_v37 = vsel %vm377_vm0, %v1424_v29, %v4240_v6  ;;  %v2578_v6 = vsel %vm377_vm0, %v1392_v15, %v4245_v62  ;;  %v2671_v62 = vsel %vm380_vm1, %v2648_v40, %v4160_v61  ;;  %v6759_v29 = vld [vmem:[#allocation33_spill] sm:$0xff] }
 0x37a   : > { %4612 = vrot.lane.b32.xlu0 %v5624_v32, %s4931_s24  ;;  %v2555_v54 = vsel %vm507_vm2, %v2532_v7, %v4329_v21  ;;  %v2556_v10 = vsel %vm507_vm2, %v2533_v49, %v4330_v25  ;;  %v5850_v32 = vsel %vm377_vm0, %v1426_v28, %v4170_v8  ;;  %v4250_v21 = vunpack.i.h.bf16 %v6750_v9  ;;  %v6755_v7 = vld [vmem:[#allocation23_spill] sm:$0xff] }
 0x37b   : > { %v4333_v23 = vpop.permute.xlu1 %4332  ;;  %v2717_v13 = vpack.c.bf16 %v2556_v10, %v2555_v54  ;;  %v2579_v8 = vsel %vm377_vm0, %v1393_v52, %v4249_v58  ;;  %v2670_v54 = vsel %vm380_vm1, %v2647_v37, %v4159_v16  ;;  %v6756_v10 = vld [vmem:[#allocation25_spill] sm:$0xff]  ;;  %v2601_v15 = vsel %vm380_vm1, %v2578_v6, %v4164_v46  ;;  %v4802_v16 = vld [vmem:[#allocation2 + $0x11] sm:$0xff] }
 0x37c   : > { %v5856_v44 = vpop.permute.xlu0 %4307  ;;  %v4335_v25 = vunpack.i.h.bf16 %v4333_v23  ;;  %v4334_v11 = vunpack.i.l.bf16 %v4333_v23  ;;  %v2511_v61 = vsel %vm377_vm0, %v4802_v16, %v4250_v21  ;;  %v4280_v47 = vunpack.i.h.bf16 %v6759_v29  ;;  %v6760_v46 = vld [vmem:[#allocation35_spill] sm:$0xff]  ;;  %v6763_v16 = vld [vmem:[#allocation37_spill] sm:$0xff]  ;;  %v6764_v21 = vld [vmem:[#allocation30_spill] sm:$0xff] }
 0x37d   : > { %4607 = vrot.lane.b32.xlu1 %v6754_v1, %s4932_s27  ;;  %3052 = vmatprep.mubr.bf16.mxu0 %v2717_v13  ;;  %v2602_v13 = vsel %vm380_vm1, %v2579_v8, %v4165_v45  ;;  %v6757_v1 = vld [vmem:[#allocation26_spill] sm:$0xff]  ;;  %v6761_v6 = vpack.i.bf16 %v5618_v43, %v6760_v46  ;;  %v4279_v45 = vunpack.i.l.bf16 %v6759_v29  ;;  %v4289_v9 = vunpack.i.l.bf16 %v6763_v16 }
 0x37e   : > { %4622 = vrot.lane.b32.xlu0 %v5648_v19, %s4930_s23  ;;  %v2693_v28 = vsel %vm507_vm2, %v2670_v54, %v4334_v11  ;;  %v2694_v58 = vsel %vm507_vm2, %v2671_v62, %v4335_v25  ;;  %v4255_v11 = vunpack.i.h.bf16 %v6757_v1  ;;  %v4254_v25 = vunpack.i.l.bf16 %v6757_v1  ;;  %v6758_v54 = vld [vmem:[#allocation27_spill] sm:$0xff] }
 0x37f   : > { %v4343_v34 = vpop.permute.xlu1 %4342  ;;  %v2719_v37 = vpack.c.bf16 %v2694_v58, %v2693_v28  ;;  %v6762_v58 = vld [vmem:[#allocation28_spill] sm:$0xff]  ;;  %v4290_v62 = vunpack.i.h.bf16 %v6763_v16  ;;  %v4314_v16 = vunpack.i.l.bf16 %v5760_v57 }
 0x380   : > { %v4323_v23 = vpop.permute.xlu0 %4322  ;;  %v4345_v40 = vunpack.i.h.bf16 %v4343_v34  ;;  %v4344_v52 = vunpack.i.l.bf16 %v4343_v34  ;;  %v4259_v50 = vunpack.i.l.bf16 %v6762_v58  ;;  %v5922_v34 = vsel %vm380_vm1, %v5715_v36, %v4289_v9  ;;  %v4804_v9 = vld [vmem:[#allocation2 + $0x20] sm:$0xff] }
 0x381   : > { %4617 = vrot.lane.b32.xlu1 %v6761_v6, %s4932_s27  ;;  %3180 = vmatprep.mubr.bf16.mxu1 %v2719_v37 }
 0x382   : > { %4632 = vrot.lane.b32.xlu0 %v5650_v60, %s4932_s27  ;;  %v2624_v8 = vsel %vm507_vm2, %v2601_v15, %v4344_v52  ;;  %v2625_v28 = vsel %vm507_vm2, %v2602_v13, %v4345_v40  ;;  %v4803_v40 = vld [vmem:[#allocation2 + $0x41] sm:$0xff]  ;;  %v4325_v52 = vunpack.i.h.bf16 %v4323_v23  ;;  %v4324_v13 = vunpack.i.l.bf16 %v4323_v23 }
 0x383   : > { %v2718_v43 = vpack.c.bf16 %v2625_v28, %v2624_v8  ;;  %v5896_v46 = vpop.permute.xlu1 %4352  ;;  %v5902_v37 = vsel %vm377_vm0, %v4803_v40, %v4280_v47  ;;  %v6765_v8 = vld [vmem:[#allocation13_spill] sm:$0xff]  ;;  %v4315_v23 = vunpack.i.h.bf16 %v5760_v57 }
 0x384   : > { %v4338_v6 = vpop.permute.xlu0 %4337  ;;  %v5910_v28 = vsel %vm377_vm0, %v6765_v8, %v4279_v45  ;;  %v5926_v45 = vsel %vm380_vm1, %v5711_v4, %v4290_v62  ;;  %v2465_v8 = vsel %vm380_vm1, %v5794_v41, %v4324_v13  ;;  %v2466_v36 = vsel %vm380_vm1, %v5790_v53, %v4325_v52  ;;  %v4805_v53 = vld [vmem:[#allocation2 + $0x28] sm:$0xff] }
 0x385   : > { %v4340_v29 = vunpack.i.h.bf16 %v4338_v6  ;;  %v4339_v49 = vunpack.i.l.bf16 %v4338_v6  ;;  %4627 = vrot.lane.b32.xlu1 %v5652_v31, %s4930_s23  ;;  %3181 = vmatmul.mubr.bf16.vlgmr.msra.gmra.mrb[16].mxu1 %v2718_v43  ;;  %v4275_v43 = vunpack.i.h.bf16 %v5762_v33  ;;  %v4265_v4 = vunpack.i.h.bf16 %v5731_v35 }
 0x386   : > { %4637 = vrot.lane.b32.xlu0 %v5662_v24, %s4932_s27  ;;  %v4264_v41 = vunpack.i.l.bf16 %v5731_v35  ;;  %v2445_v52 = vsel %vm377_vm0, %v4805_v53, %v4315_v23 }
 0x387   : > { %v2487_v6 = vsel %vm507_vm2, %v5842_v14, %v4340_v29  ;;  %v2486_v47 = vsel %vm507_vm2, %v5830_v55, %v4339_v49  ;;  %v5918_v15 = vpop.permute.xlu1 %4372  ;;  %v4294_v29 = vunpack.i.l.bf16 %v5689_v39  ;;  %v6767_v14 = vunpack.i.h.bf16 %v5474_v20 }
 0x388   : > { %v2716_v40 = vpack.c.bf16 %v2487_v6, %v2486_v47  ;;  %v4348_v63 = vpop.permute.xlu0 %4347 }
 0x389   : > { %v4350_v55 = vunpack.i.h.bf16 %v4348_v63  ;;  %v4349_v49 = vunpack.i.l.bf16 %v4348_v63  ;;  %4647 = vrot.lane.b32.xlu1 %v5648_v19, %s4931_s24  ;;  %v2444_v63 = vsel %vm377_vm0, %v4804_v9, %v4314_v16  ;;  %v5961_v9 = vsel %vm380_vm1, %v5771_v27, %v4275_v43 }
 0x38a   : > { %4642 = vrot.lane.b32.xlu0 %v5648_v19, %s4932_s27  ;;  %3053 = vmatmul.mubr.bf16.vlgmr.msra.gmra.mrb[16].mxu0 %v2716_v40  ;;  %v6766_v19 = vunpack.i.l.bf16 %v5474_v20  ;;  %v6770_v20 = vpack.i.bf16 %v5634_v38, %v5642_v2 }
 0x38b   : > { %v2534_v62 = vsel %vm380_vm1, %v2511_v61, %v4349_v49  ;;  %v2535_v6 = vsel %vm380_vm1, %v5854_v42, %v4350_v55  ;;  %v4378_v13 = vpop.permute.xlu1 %4377  ;;  %v6768_v42 = vunpack.i.l.bf16 %v5476_v0  ;;  %v6769_v55 = vunpack.i.h.bf16 %v5476_v0 }
 0x38c   : > { %v4358_v47 = vpop.permute.xlu0 %4357  ;;  %v2557_v57 = vsel %vm507_vm2, %v2534_v62, %v6766_v19  ;;  %v2558_v16 = vsel %vm507_vm2, %v2535_v6, %v6767_v14  ;;  %v4354_v62 = vunpack.i.l.bf16 %v5896_v46  ;;  %v6772_v6 = vunpack.i.h.bf16 %v5466_v59 }
 0x38d   : > { %v4360_v61 = vunpack.i.h.bf16 %v4358_v47  ;;  %v4359_v49 = vunpack.i.l.bf16 %v4358_v47  ;;  %v2488_v40 = vsel %vm507_vm2, %v2465_v8, %v6768_v42  ;;  %v2489_v23 = vsel %vm507_vm2, %v2466_v36, %v6769_v55  ;;  %4652 = vrot.lane.b32.xlu1 %v6770_v20, %s4931_s24  ;;  %v4806_v42 = vld [vmem:[#allocation2 + $0x1a] sm:$0xff] }
 0x38e   : > { %4657 = vrot.lane.b32.xlu0 %v5650_v60, %s4931_s24  ;;  %v2721_v14 = vpack.c.bf16 %v2558_v16, %v2557_v57  ;;  %v6771_v8 = vunpack.i.l.bf16 %v5466_v59  ;;  %v4355_v36 = vunpack.i.h.bf16 %v5896_v46  ;;  %v2468_v53 = vsel %vm380_vm1, %v2445_v52, %v6772_v6 }
 0x38f   : > { %v2673_v27 = vsel %vm380_vm1, %v5778_v51, %v4360_v61  ;;  %v2672_v43 = vsel %vm380_vm1, %v5850_v32, %v4359_v49  ;;  %v4374_v47 = vunpack.i.l.bf16 %v5918_v15  ;;  %v5982_v60 = vpop.permute.xlu1 %4382  ;;  %v2720_v19 = vpack.c.bf16 %v2489_v23, %v2488_v40  ;;  %v6775_v40 = vld [vmem:[#allocation42_spill] sm:$0xff] }
 0x390   : > { %v2467_v0 = vsel %vm380_vm1, %v2444_v63, %v6771_v8  ;;  %3060 = vmatprep.mubr.bf16.mxu0 %v2721_v14  ;;  %v4363_v57 = vpop.permute.xlu0 %4362  ;;  %v6773_v63 = vunpack.i.l.bf16 %v5482_v17  ;;  %v6774_v51 = vunpack.i.h.bf16 %v5482_v17  ;;  %v4380_v32 = vunpack.i.h.bf16 %v4378_v13  ;;  %v4807_v14 = vld [vmem:[#allocation2 + $0x21] sm:$0xff]  ;;  %v1429_v8 = vld [vmem:[#allocation2 + $0x2b] sm:$0xff] }
 0x391   : > { %v4379_v61 = vunpack.i.l.bf16 %v4378_v13  ;;  %v4365_v59 = vunpack.i.h.bf16 %v4363_v57  ;;  %v4364_v49 = vunpack.i.l.bf16 %v4363_v57  ;;  %v4285_v52 = vunpack.i.h.bf16 %v5804_v3  ;;  %4662 = vrot.lane.b32.xlu1 %v6775_v40, %s4932_s27 }
 0x392   : > { %v2695_v46 = vsel %vm507_vm2, %v2672_v43, %v6773_v63  ;;  %v2696_v16 = vsel %vm507_vm2, %v2673_v27, %v6774_v51  ;;  %v2581_v55 = vsel %vm377_vm0, %v4806_v42, %v4354_v62  ;;  %v4375_v20 = vunpack.i.h.bf16 %v5918_v15  ;;  %4667 = vrot.lane.b32.xlu0 %v5662_v24, %s4931_s24  ;;  %3061 = vmatmul.mubr.bf16.gmra.mrb[20].mxu0 %v2720_v19  ;;  %v4808_v19 = vld [vmem:[#allocation2 + $0x2a] sm:$0xff] }
 0x393   : > { %v2723_v17 = vpack.c.bf16 %v2696_v16, %v2695_v46  ;;  %v4284_v23 = vunpack.i.l.bf16 %v5804_v3  ;;  %v2513_v13 = vsel %vm377_vm0, %v4807_v14, %v4355_v36  ;;  %v2604_v27 = vsel %vm380_vm1, %v2581_v55, %v4365_v59  ;;  %v6003_v43 = vpop.permute.xlu1 %4387  ;;  %v6778_v46 = vld [vmem:[#allocation12_spill] sm:$0xff]  ;;  %v1428_v55 = vld [vmem:[#allocation2 + $0x23] sm:$0xff] }
 0x394   : > { %v2603_v62 = vsel %vm380_vm1, %v5775_v26, %v4364_v49  ;;  %v2652_v15 = vsel %vm377_vm0, %v1429_v8, %v4374_v47  ;;  %v4368_v6 = vpop.permute.xlu0 %4367  ;;  %v6776_v24 = vunpack.i.l.bf16 %v5489_v30  ;;  %v6777_v57 = vunpack.i.h.bf16 %v5489_v30  ;;  %v4809_v49 = vld [vmem:[#allocation2 + $0x22] sm:$0xff] }
 0x395   : > { %3188 = vmatprep.mubr.bf16.mxu1 %v2723_v17  ;;  %v2490_v63 = vsel %vm507_vm2, %v2467_v0, %v4264_v41  ;;  %v2515_v26 = vsel %vm377_vm0, %v6778_v46, %v4380_v32  ;;  %v2583_v47 = vsel %vm377_vm0, %v4808_v19, %v4379_v61  ;;  %v4370_v51 = vunpack.i.h.bf16 %v4368_v6  ;;  %v6779_v30 = vld [vmem:[#allocation46_spill] sm:$0xff]  ;;  %v6780_v17 = vld [vmem:[#allocation44_spill] sm:$0xff] }
 0x396   : > { %v2626_v3 = vsel %vm507_vm2, %v2603_v62, %v6776_v24  ;;  %v2627_v36 = vsel %vm507_vm2, %v2604_v27, %v6777_v57  ;;  %v4369_v16 = vunpack.i.l.bf16 %v4368_v6  ;;  %v4274_v59 = vunpack.i.l.bf16 %v5762_v33  ;;  %4672 = vrot.lane.b32.xlu1 %v6779_v30, %s4932_s27  ;;  %v6781_v41 = vld [vmem:[#allocation40_spill] sm:$0xff]  ;;  %v4810_v33 = vld [vmem:[#allocation2 + $0x29] sm:$0xff] }
 0x397   : > { %v2582_v42 = vsel %vm377_vm0, %v4809_v49, %v4375_v20  ;;  %v6782_v0 = vpack.i.bf16 %v6780_v17, %v6781_v41  ;;  %v2722_v32 = vpack.c.bf16 %v2627_v36, %v2626_v3  ;;  %v6783_v14 = vunpack.i.l.bf16 %v5484_v18  ;;  %v6034_v24 = vpop.permute.xlu1 %4397 }
 0x398   : > { %v2651_v8 = vsel %vm377_vm0, %v1428_v55, %v4370_v51  ;;  %v2514_v27 = vsel %vm377_vm0, %v4810_v33, %v4369_v16  ;;  %v6784_v20 = vunpack.i.h.bf16 %v5491_v22  ;;  %v2491_v6 = vsel %vm507_vm2, %v2468_v53, %v4265_v4  ;;  %v6036_v3 = vpop.permute.xlu0 %4392  ;;  %v6788_v53 = vld [vmem:[#allocation51_spill] sm:$0xff] }
 0x399   : > { %4677 = vrot.lane.b32.xlu0 %v6782_v0, %s4932_s27  ;;  %v2536_v61 = vsel %vm380_vm1, %v2513_v13, %v6783_v14  ;;  %3189 = vmatmul.mubr.bf16.gmra.mrb[20].mxu1 %v2722_v32  ;;  %v6785_v13 = vunpack.i.h.bf16 %v5484_v18  ;;  %v6786_v36 = vunpack.i.l.bf16 %v5491_v22  ;;  %v2538_v19 = vsel %vm380_vm1, %v2515_v26, %v4274_v59  ;;  %v6791_v59 = vld [vmem:[#allocation36_spill] sm:$0xff]  ;;  %v6796_v0 = vld [vmem:[#allocation22_spill] sm:$0xff] }
 0x39a   : > { %v2675_v62 = vsel %vm380_vm1, %v2652_v15, %v6784_v20  ;;  %v6787_v15 = vunpack.i.h.bf16 %v5499_v12  ;;  %v2677_v4 = vsel %vm380_vm1, %v5756_v56, %v4285_v52  ;;  %v2676_v51 = vsel %vm380_vm1, %v6788_v53, %v4284_v23  ;;  %4682 = vrot.lane.b32.xlu1 %v5652_v31, %s4932_s27 }
 0x39b   : > { %v2537_v57 = vsel %vm380_vm1, %v2514_v27, %v6785_v13  ;;  %v2674_v46 = vsel %vm380_vm1, %v2651_v8, %v6786_v36  ;;  %v2559_v18 = vsel %vm507_vm2, %v2536_v61, %v4254_v25  ;;  %v6789_v22 = vunpack.i.l.bf16 %v5499_v12  ;;  %v6081_v32 = vpop.permute.xlu1 %4402  ;;  %v6799_v27 = vld [vmem:[#allocation29_spill] sm:$0xff] }
 0x39c   : > { %v2606_v35 = vsel %vm380_vm1, %v2583_v47, %v6787_v15  ;;  %v4299_v26 = vunpack.i.l.bf16 %v5729_v5  ;;  %v6790_v47 = vld [vmem:[#allocation47_spill] sm:$0xff]  ;;  %v2560_v52 = vsel %vm507_vm2, %v2537_v57, %v4255_v11  ;;  %v2697_v12 = vsel %vm507_vm2, %v2674_v46, %v4259_v50  ;;  %v6083_v14 = vpop.permute.xlu0 %4407  ;;  %v6803_v46 = vld [vmem:[#allocation32_spill] sm:$0xff] }
 0x39d   : > { %v2605_v16 = vsel %vm380_vm1, %v2582_v42, %v6789_v22  ;;  %v6792_v56 = vpack.i.bf16 %v6790_v47, %v6791_v59  ;;  %v6793_v25 = vunpack.i.h.bf16 %v6762_v58  ;;  %v2725_v49 = vpack.c.bf16 %v2560_v52, %v2559_v18 }
 0x39e   : > { %v6794_v55 = vunpack.i.l.bf16 %v6755_v7  ;;  %v6795_v41 = vunpack.i.h.bf16 %v6764_v21  ;;  %v4304_v11 = vunpack.i.l.bf16 %v6796_v0  ;;  %v2724_v50 = vpack.c.bf16 %v2491_v6, %v2490_v63  ;;  %v6802_v6 = vld [vmem:[#allocation50_spill] sm:$0xff] }
 0x39f   : > { %4687 = vrot.lane.b32.xlu0 %v6792_v56, %s4930_s23  ;;  %v2698_v23 = vsel %vm507_vm2, %v2675_v62, %v6793_v25  ;;  %v6797_v58 = vunpack.i.l.bf16 %v6756_v10  ;;  %v6798_v8 = vunpack.i.h.bf16 %v6756_v10  ;;  %v4210_v20 = vunpack.i.h.bf16 %v6799_v27  ;;  %3068 = vmatprep.mubr.bf16.mxu0 %v2725_v49 }
 0x3a0   : > { %v2727_v42 = vpack.c.bf16 %v2698_v23, %v2697_v12  ;;  %v2561_v17 = vsel %vm507_vm2, %v2538_v19, %v6794_v55  ;;  %v2629_v1 = vsel %vm507_vm2, %v2606_v35, %v6795_v41  ;;  %v6800_v62 = vunpack.i.h.bf16 %v6755_v7  ;;  %3069 = vmatmul.mubr.bf16.gmra.mrb[24].mxu0 %v2724_v50  ;;  %v1432_v35 = vld [vmem:[#allocation2 + $0x43] sm:$0xff]  ;;  %v6125_v59 = vpop.permute.xlu0 %4417 }
 0x3a1   : > { %v2699_v61 = vsel %vm507_vm2, %v2676_v51, %v6797_v58  ;;  %v2700_v33 = vsel %vm507_vm2, %v2677_v4, %v6798_v8  ;;  %v6801_v57 = vunpack.i.l.bf16 %v6764_v21  ;;  %v2607_v10 = vsel %vm380_vm1, %v6802_v6, %v4294_v29  ;;  %v4811_v4 = vld [vmem:[#allocation2 + $0x49] sm:$0xff] }
 0x3a2   : > { %3196 = vmatprep.mubr.bf16.mxu1 %v2727_v42  ;;  %v2562_v13 = vsel %vm507_vm2, %v5961_v9, %v6800_v62  ;;  %v4209_v36 = vunpack.i.l.bf16 %v6799_v27  ;;  %v6804_v19 = vpack.i.bf16 %v5642_v2, %v6803_v46  ;;  %v6805_v9 = vunpack.i.h.bf16 %v5689_v39  ;;  %v1433_v29 = vld [vmem:[#allocation2 + $0x4b] sm:$0xff] }
 0x3a3   : > { %v2628_v63 = vsel %vm507_vm2, %v2605_v16, %v6801_v57  ;;  %v2729_v7 = vpack.c.bf16 %v2562_v13, %v2561_v17  ;;  %v2518_v53 = vsel %vm377_vm0, %v4811_v4, %v4299_v26  ;;  %v4385_v51 = vunpack.i.h.bf16 %v5982_v60  ;;  %4697 = vrot.lane.b32.xlu0 %v5652_v31, %s4931_s24  ;;  %v6123_v26 = vpop.permute.xlu1 %4412  ;;  %v6807_v31 = vld [vmem:[#allocation15_spill] sm:$0xff] }
 0x3a4   : > { %4692 = vrot.lane.b32.xlu1 %v6804_v19, %s4930_s23  ;;  %v2726_v15 = vpack.c.bf16 %v2629_v1, %v2628_v63  ;;  %v2608_v21 = vsel %vm380_vm1, %v5910_v28, %v6805_v9  ;;  %v4384_v18 = vunpack.i.l.bf16 %v5982_v60  ;;  %v2731_v2 = vpack.c.bf16 %v2700_v33, %v2699_v61  ;;  %v6812_v42 = vld [vmem:[#allocation39_spill] sm:$0xff]  ;;  %v6820_v61 = vld [vmem:[#allocation18_spill] sm:$0xff]  ;;  %v6169_v6 = vpop.permute.xlu0 %4437 }
 0x3a5   : > { %v6806_v22 = vunpack.i.h.bf16 %v5729_v5  ;;  %v2656_v16 = vsel %vm377_vm0, %v1433_v29, %v4304_v11  ;;  %v4390_v28 = vunpack.i.h.bf16 %v6003_v43  ;;  %v4389_v47 = vunpack.i.l.bf16 %v6003_v43  ;;  %3076 = vmatprep.mubr.bf16.mxu0 %v2729_v7  ;;  %v6810_v43 = vld [vmem:[#allocation17_spill] sm:$0xff]  ;;  %v4813_v4 = vld [vmem:[#allocation2 + $0x4a] sm:$0xff] }
 0x3a6   : > { %3197 = vmatmul.mubr.bf16.gmra.mrb[24].mxu1 %v2726_v15  ;;  %v4305_v60 = vunpack.i.h.bf16 %v6796_v0  ;;  %v6808_v56 = vunpack.i.l.bf16 %v6807_v31  ;;  %v6809_v52 = vunpack.i.h.bf16 %v6807_v31  ;;  %v6811_v25 = vunpack.i.l.bf16 %v6810_v43  ;;  %v6818_v11 = vld [vmem:[#allocation41_spill] sm:$0xff] }
 0x3a7   : > { %v2655_v39 = vsel %vm377_vm0, %v1432_v35, %v6806_v22  ;;  %3204 = vmatprep.mubr.bf16.mxu1 %v2731_v2  ;;  %v4309_v49 = vunpack.i.l.bf16 %v5856_v44  ;;  %v6813_v55 = vpack.i.bf16 %v6812_v42, %v5634_v38  ;;  %v6814_v17 = vunpack.i.h.bf16 %v6810_v43  ;;  %v6167_v63 = vpop.permute.xlu1 %4422  ;;  %v4812_v7 = vld [vmem:[#allocation2 + $0x42] sm:$0xff] }
 0x3a8   : > { %v2492_v5 = vsel %vm507_vm2, %v5922_v34, %v6808_v56  ;;  %v2493_v12 = vsel %vm507_vm2, %v5926_v45, %v6809_v52  ;;  %v2540_v23 = vsel %vm380_vm1, %v5902_v37, %v6811_v25  ;;  %v6815_v41 = vunpack.i.l.bf16 %v6758_v54  ;;  %v6817_v37 = vld [vmem:[#allocation10_spill] sm:$0xff]  ;;  %v1447_v25 = vld [vmem:[#allocation2 + $0xb2] sm:$0xff] }
 0x3a9   : > { %4702 = vrot.lane.b32.xlu1 %v6813_v55, %s4930_s23  ;;  %v2541_v34 = vsel %vm380_vm1, %v2518_v53, %v6814_v17  ;;  %v6816_v1 = vunpack.i.h.bf16 %v6758_v54  ;;  %v6819_v50 = vpack.i.bf16 %v6817_v37, %v6818_v11  ;;  %v2563_v38 = vsel %vm507_vm2, %v2540_v23, %v4384_v18  ;;  %v6823_v54 = vld [vmem:[#allocation31_spill] sm:$0xff]  ;;  %v4814_v2 = vld [vmem:[#allocation2 + $0x48] sm:$0xff]  ;;  %v1417_v23 = vld [vmem:[#allocation2 + $0xc1] sm:$0x1] }
 0x3aa   : > { %v2630_v45 = vsel %vm507_vm2, %v2607_v10, %v6815_v41  ;;  %v2564_v58 = vsel %vm507_vm2, %v2541_v34, %v4385_v51  ;;  %v6821_v8 = vunpack.i.l.bf16 %v6820_v61  ;;  %v6822_v62 = vunpack.i.h.bf16 %v6820_v61 }
 0x3ab   : > { %v2631_v0 = vsel %vm507_vm2, %v2608_v21, %v6816_v1  ;;  %4707 = vrot.lane.b32.xlu0 %v6819_v50, %s4931_s24  ;;  %v4214_v57 = vunpack.i.l.bf16 %v6823_v54  ;;  %v2728_v10 = vpack.c.bf16 %v2493_v12, %v2492_v5  ;;  %v2586_v15 = vsel %vm377_vm0, %v4812_v7, %v4305_v60  ;;  %v6826_v60 = vld [vmem:[#allocation48_spill] sm:$0xff]  ;;  %v6193_v52 = vpop.permute.xlu1 %4427  ;;  %v6195_v12 = vpop.permute.xlu0 %4442  ;;  %v1420_v7 = vld [vmem:[#allocation2 + $0xd0] sm:$0x1] }
 0x3ac   : > { %v2678_v33 = vsel %vm380_vm1, %v2655_v39, %v6821_v8  ;;  %v2679_v13 = vsel %vm380_vm1, %v2656_v16, %v6822_v62  ;;  %v4395_v9 = vunpack.i.h.bf16 %v6036_v3  ;;  %v4394_v21 = vunpack.i.l.bf16 %v6036_v3  ;;  %v4815_v16 = vld [vmem:[#allocation2 + $0x40] sm:$0xff] }
 0x3ad   : > { %v2701_v46 = vsel %vm507_vm2, %v2678_v33, %v4389_v47  ;;  %v2702_v19 = vsel %vm507_vm2, %v2679_v13, %v4390_v28  ;;  %v2730_v35 = vpack.c.bf16 %v2631_v0, %v2630_v45  ;;  %v2587_v53 = vsel %vm377_vm0, %v4813_v4, %v4309_v49  ;;  %3077 = vmatmul.mubr.bf16.gmra.mrb[28].mxu0 %v2728_v10  ;;  %v1449_v49 = vld [vmem:[#allocation2 + $0xc2] sm:$0x1]  ;;  %v6832_v0 = vld [vmem:[#allocation43_spill] sm:$0xff] }
 0x3ae   : > { %v4400_v29 = vunpack.i.h.bf16 %v6034_v24  ;;  %v4399_v51 = vunpack.i.l.bf16 %v6034_v24  ;;  %4717 = vrot.lane.b32.xlu1 %v6775_v40, %s4931_s24  ;;  %v2733_v18 = vpack.c.bf16 %v2564_v58, %v2563_v38  ;;  %v6824_v22 = vunpack.i.h.bf16 %v6752_v48  ;;  %v6827_v24 = vld [vmem:[#allocation45_spill] sm:$0xff]  ;;  %v6829_v40 = vld [vmem:[#allocation34_spill] sm:$0xff]  ;;  %v6833_v38 = vld [vmem:[#allocation16_spill] sm:$0xff] }
 0x3af   : > { %v6825_v3 = vunpack.i.l.bf16 %v6752_v48  ;;  %v4215_v47 = vunpack.i.h.bf16 %v6823_v54  ;;  %v6828_v31 = vpack.i.bf16 %v6826_v60, %v6827_v24  ;;  %v2735_v56 = vpack.c.bf16 %v2702_v19, %v2701_v46  ;;  %3205 = vmatmul.mubr.bf16.gmra.mrb[28].mxu1 %v2730_v35  ;;  %v4448_v33 = vpop.permute.xlu0 %4447  ;;  %v4817_v13 = vld [vmem:[#allocation2 + $0x51] sm:$0xff]  ;;  %v1336_v19 = vld [vmem:[#allocation2 + $0xce] sm:$0x1]  ;;  %v1388_v24 = vld [vmem:[#allocation2 + $0xcf] sm:$0x1] }
 0x3b0   : > { %v2449_v39 = vsel %vm377_vm0, %v4814_v2, %v6824_v22  ;;  %v4219_v5 = vunpack.i.l.bf16 %v6829_v40  ;;  %3084 = vmatprep.mubr.bf16.mxu0 %v2733_v18  ;;  %v2609_v42 = vsel %vm380_vm1, %v2586_v15, %v4214_v57  ;;  %v4310_v55 = vunpack.i.h.bf16 %v5856_v44  ;;  %v6830_v44 = vld [vmem:[#allocation49_spill] sm:$0xff]  ;;  %v1421_v46 = vld [vmem:[#allocation2 + $0xcf] sm:$0xff]  ;;  %v1422_v4 = vld [vmem:[#allocation2 + $0xd7] sm:$0xff] }
 0x3b1   : > { %v2448_v28 = vsel %vm377_vm0, %v4815_v16, %v6825_v3  ;;  %4712 = vrot.lane.b32.xlu0 %v6828_v31, %s4932_s27  ;;  %v2472_v43 = vsel %vm380_vm1, %v2449_v39, %v4210_v20  ;;  %3212 = vmatprep.mubr.bf16.mxu1 %v2735_v56  ;;  %v2610_v41 = vsel %vm380_vm1, %v2587_v53, %v4215_v47  ;;  %v4409_v27 = vunpack.i.l.bf16 %v6083_v14  ;;  %v4818_v16 = vld [vmem:[#allocation2 + $0x58] sm:$0xff]  ;;  %v4819_v3 = vld [vmem:[#allocation2 + $0x50] sm:$0xff] }
 0x3b2   : > { %v2471_v48 = vsel %vm380_vm1, %v2448_v28, %v4209_v36  ;;  %v2495_v34 = vsel %vm507_vm2, %v2472_v43, %v4395_v9  ;;  %v4410_v36 = vunpack.i.h.bf16 %v6083_v14  ;;  %4722 = vrot.lane.b32.xlu1 %v6779_v30, %s4931_s24  ;;  %v2632_v20 = vsel %vm507_vm2, %v2609_v42, %v4399_v51  ;;  %v4816_v14 = vld [vmem:[#allocation2 + $0x59] sm:$0xff]  ;;  %v6222_v30 = vpop.permute.xlu1 %4432  ;;  %v1452_v31 = vld [vmem:[#allocation2 + $0xd1] sm:$0x1] }
 0x3b3   : > { %v2494_v17 = vsel %vm507_vm2, %v2471_v48, %v4394_v21  ;;  %v2633_v45 = vsel %vm507_vm2, %v2610_v41, %v4400_v29  ;;  %v6831_v1 = vpack.i.bf16 %v6818_v11, %v6830_v44  ;;  %v4726_v37 = vpack.i.bf16 %v1447_v25, %v6832_v0  ;;  %v6233_v18 = vpop.permute.xlu0 %4457  ;;  %v1359_v48 = vld [vmem:[#allocation2 + $0xdd] sm:$0x1]  ;;  %v1423_v43 = vld [vmem:[#allocation2 + $0xdf] sm:$0x1]  ;;  %v1391_v41 = vld [vmem:[#allocation2 + $0xde] sm:$0x1] }
 0x3b4   : > { %v4741_v50 = vpack.i.bf16 %v1417_v23, %v1449_v49  ;;  %v4145_v58 = vunpack.i.h.bf16 %v6833_v38  ;;  %v4144_v61 = vunpack.i.l.bf16 %v6833_v38  ;;  %v2520_v8 = vsel %vm377_vm0, %v4816_v14, %v4219_v5 }
 0x3b5   : > { %4737 = vrot.lane.b32.xlu0 %v6831_v1, %s4930_s23  ;;  %v2732_v62 = vpack.c.bf16 %v2495_v34, %v2494_v17  ;;  %v2519_v54 = vsel %vm377_vm0, %v4817_v13, %v4310_v55  ;;  %v4450_v57 = vunpack.i.h.bf16 %v4448_v33  ;;  %v4449_v11 = vunpack.i.l.bf16 %v4448_v33  ;;  %v6834_v1 = vld [vmem:[#allocation52_spill] sm:$0xff] }
 0x3b6   : > { %v2734_v10 = vpack.c.bf16 %v2633_v45, %v2632_v20  ;;  %v2542_v15 = vsel %vm380_vm1, %v2519_v54, %v4409_v27  ;;  %v2543_v9 = vsel %vm380_vm1, %v2520_v8, %v4410_v36  ;;  %v4425_v21 = vunpack.i.h.bf16 %v6167_v63  ;;  %4727 = vrot.lane.b32.xlu1 %v4726_v37, %s4930_s23  ;;  %v4453_v51 = vpop.permute.xlu1 %4452  ;;  %v1455_v36 = vld [vmem:[#allocation2 + $0xe0] sm:$0x1]  ;;  %v1434_v13 = vld [vmem:[#allocation2 + $0x53] sm:$0xff] }
 0x3b7   : > { %v4424_v35 = vunpack.i.l.bf16 %v6167_v63  ;;  %3085 = vmatmul.mubr.bf16.gmra.mrb[32].mxu0 %v2732_v62  ;;  %v2565_v53 = vsel %vm507_vm2, %v2542_v15, %v4449_v11  ;;  %v2566_v29 = vsel %vm507_vm2, %v2543_v9, %v4450_v57  ;;  %v4731_v2 = vpack.i.bf16 %v1422_v4, %v1421_v46  ;;  %v6245_v42 = vpop.permute.xlu0 %4467 }
 0x3b8   : > { %3213 = vmatmul.mubr.bf16.gmra.mrb[32].mxu1 %v2734_v10  ;;  %v4751_v22 = vpack.i.bf16 %v1420_v7, %v1336_v19  ;;  %v2737_v39 = vpack.c.bf16 %v2566_v29, %v2565_v53  ;;  %v2451_v63 = vsel %vm377_vm0, %v4818_v16, %v4145_v58  ;;  %v2450_v28 = vsel %vm377_vm0, %v4819_v3, %v4144_v61  ;;  %v1435_v10 = vld [vmem:[#allocation2 + $0x5b] sm:$0xff]  ;;  %v4822_v7 = vld [vmem:[#allocation2 + $0x52] sm:$0xff] }
 0x3b9   : > { %4742 = vrot.lane.b32.xlu0 %v4741_v50, %s4930_s23  ;;  %v4455_v47 = vunpack.i.h.bf16 %v4453_v51  ;;  %v4454_v60 = vunpack.i.l.bf16 %v4453_v51  ;;  %v2473_v56 = vsel %vm380_vm1, %v2450_v28, %v4424_v35  ;;  %v2474_v5 = vsel %vm380_vm1, %v2451_v63, %v4425_v21  ;;  %v4823_v21 = vld [vmem:[#allocation2 + $0x61] sm:$0xff]  ;;  %s353_s23 = scalar_lea.vmem %s6645_s8, %s6838_s30 }
 0x3ba   : > { %4732 = vrot.lane.b32.xlu1 %v4731_v2, %s4932_s27  ;;  %3092 = vmatprep.mubr.bf16.mxu0 %v2737_v39  ;;  %v6243_v49 = vpop.permute.xlu1 %4462  ;;  %v4746_v55 = vpack.i.bf16 %v1452_v31, %v1388_v24  ;;  %v4761_v34 = vpack.i.bf16 %v1423_v43, %v1359_v48  ;;  %v4756_v45 = vpack.i.bf16 %v1455_v36, %v1391_v41  ;;  %v4220_v44 = vunpack.i.h.bf16 %v6829_v40  ;;  %v4824_v35 = vld [vmem:[#allocation2 + $0x5a] sm:$0xff] }
 0x3bb   : > { %v2496_v25 = vsel %vm507_vm2, %v2473_v56, %v4454_v60  ;;  %v2497_v23 = vsel %vm507_vm2, %v2474_v5, %v4455_v47  ;;  %v6251_v20 = vpop.permute.xlu0 %4472  ;;  %v4320_v0 = vunpack.i.h.bf16 %v6834_v1  ;;  %v4319_v37 = vunpack.i.l.bf16 %v6834_v1 }
 0x3bc   : > { %v2736_v17 = vpack.c.bf16 %v2497_v23, %v2496_v25  ;;  %v4405_v50 = vunpack.i.h.bf16 %v6081_v32  ;;  %v4404_v38 = vunpack.i.l.bf16 %v6081_v32  ;;  %v4415_v58 = vunpack.i.h.bf16 %v6123_v26  ;;  %v4820_v32 = vld [vmem:[#allocation2 + $0x68] sm:$0xff] }
 0x3bd   : > { %4752 = vrot.lane.b32.xlu0 %v4751_v22, %s4931_s24  ;;  %v4414_v61 = vunpack.i.l.bf16 %v6123_v26  ;;  %v4420_v14 = vunpack.i.h.bf16 %v6125_v59  ;;  %v4419_v8 = vunpack.i.l.bf16 %v6125_v59  ;;  %v4429_v40 = vunpack.i.l.bf16 %v6193_v52  ;;  %v4821_v59 = vld [vmem:[#allocation2 + $0x60] sm:$0xff] }
 0x3be   : > { %4747 = vrot.lane.b32.xlu1 %v4746_v55, %s4931_s24  ;;  %v6249_v27 = vpop.permute.xlu1 %4477  ;;  %v4430_v54 = vunpack.i.h.bf16 %v6193_v52  ;;  %v2657_v57 = vsel %vm377_vm0, %v1434_v13, %v4220_v44  ;;  %v2453_v11 = vsel %vm377_vm0, %v4820_v32, %v4320_v0  ;;  %v4460_v26 = vunpack.i.h.bf16 %v6233_v18  ;;  %v1436_v44 = vld [vmem:[#allocation2 + $0x63] sm:$0xff] }
 0x3bf   : > { %3093 = vmatmul.mubr.bf16.gmra.mrb[36].mxu0 %v2736_v17  ;;  %v6266_v62 = vpop.permute.xlu0 %4482  ;;  %v4459_v46 = vunpack.i.l.bf16 %v6233_v18  ;;  %v2452_v19 = vsel %vm377_vm0, %v4821_v59, %v4319_v37  ;;  %v2588_v15 = vsel %vm377_vm0, %v4822_v7, %v4405_v50  ;;  %v2658_v9 = vsel %vm377_vm0, %v1435_v10, %v4404_v38  ;;  %v4825_v17 = vld [vmem:[#allocation2 + $0x69] sm:$0xff] }
 0x3c0   : > { %v2521_v52 = vsel %vm377_vm0, %v4823_v21, %v4415_v58  ;;  %v2589_v4 = vsel %vm377_vm0, %v4824_v35, %v4414_v61  ;;  %v2681_v53 = vsel %vm380_vm1, %v2658_v9, %v4420_v14  ;;  %v2680_v29 = vsel %vm380_vm1, %v2657_v57, %v4419_v8 }
 0x3c1   : > { %4762 = vrot.lane.b32.xlu0 %v4761_v34, %s4932_s27  ;;  %v2611_v51 = vsel %vm380_vm1, %v2588_v15, %v4429_v40  ;;  %v2612_v22 = vsel %vm380_vm1, %v2589_v4, %v4430_v54  ;;  %v4434_v39 = vunpack.i.l.bf16 %v6222_v30  ;;  %v4465_v3 = vunpack.i.h.bf16 %v6243_v49 }
 0x3c2   : > { %4757 = vrot.lane.b32.xlu1 %v4756_v45, %s4932_s27  ;;  %v6264_v33 = vpop.permute.xlu1 %4487  ;;  %v4464_v28 = vunpack.i.l.bf16 %v6243_v49  ;;  %v2634_v47 = vsel %vm507_vm2, %v2611_v51, %v4459_v46  ;;  %v2635_v60 = vsel %vm507_vm2, %v2612_v22, %v4460_v26  ;;  %v4439_v24 = vunpack.i.l.bf16 %v6169_v6 }
 0x3c3   : > { %v4493_v2 = vpop.permute.xlu0 %4492  ;;  %v4435_v31 = vunpack.i.h.bf16 %v6222_v30  ;;  %v4440_v48 = vunpack.i.h.bf16 %v6169_v6  ;;  %v4475_v43 = vunpack.i.h.bf16 %v6251_v20  ;;  %v4474_v25 = vunpack.i.l.bf16 %v6251_v20  ;;  %v1437_v30 = vld [vmem:[#allocation2 + $0x6b] sm:$0xff] }
 0x3c4   : > { %v4495_v16 = vunpack.i.h.bf16 %v4493_v2  ;;  %v4494_v63 = vunpack.i.l.bf16 %v4493_v2  ;;  %v2522_v34 = vsel %vm377_vm0, %v4825_v17, %v4434_v39  ;;  %v2738_v45 = vpack.c.bf16 %v2635_v60, %v2634_v47 }
 0x3c5   : > { %v2544_v1 = vsel %vm380_vm1, %v2521_v52, %v4464_v28  ;;  %v2545_v0 = vsel %vm380_vm1, %v2522_v34, %v4465_v3  ;;  %v2660_v20 = vsel %vm377_vm0, %v1437_v30, %v4439_v24  ;;  %v2659_v50 = vsel %vm377_vm0, %v1436_v44, %v4435_v31 }
 0x3c6   : > { %v4498_v18 = vpop.permute.xlu1 %4497  ;;  %v2703_v56 = vsel %vm507_vm2, %v2680_v29, %v4494_v63  ;;  %v2704_v5 = vsel %vm507_vm2, %v2681_v53, %v4495_v16  ;;  %v4469_v61 = vunpack.i.l.bf16 %v6245_v42  ;;  %v2476_v14 = vsel %vm380_vm1, %v2453_v11, %v4475_v43  ;;  %v4826_v29 = vld [vmem:[#allocation2 + $0x62] sm:$0xff] }
 0x3c7   : > { %v4508_v49 = vpop.permute.xlu0 %4507  ;;  %v2739_v55 = vpack.c.bf16 %v2704_v5, %v2703_v56  ;;  %v4500_v6 = vunpack.i.h.bf16 %v4498_v18  ;;  %v4499_v37 = vunpack.i.l.bf16 %v4498_v18  ;;  %v2475_v8 = vsel %vm380_vm1, %v2452_v19, %v4474_v25  ;;  %v4827_v18 = vld [vmem:[#allocation2 + $0x6a] sm:$0xff] }
 0x3c8   : > { %v4510_v7 = vunpack.i.h.bf16 %v4508_v49  ;;  %v4509_v15 = vunpack.i.l.bf16 %v4508_v49  ;;  %v2590_v51 = vsel %vm377_vm0, %v4826_v29, %v4440_v48  ;;  %v2591_v2 = vsel %vm377_vm0, %v4827_v18, %v4469_v61  ;;  %v4828_v61 = vld [vmem:[#allocation2 + $0x78] sm:$0xff] }
 0x3c9   : > { %3220 = vmatprep.mubr.bf16.mxu1 %v2739_v55  ;;  %v2682_v46 = vsel %vm380_vm1, %v2659_v50, %v4499_v37  ;;  %v2683_v59 = vsel %vm380_vm1, %v2660_v20, %v4500_v6  ;;  %v4445_v30 = vunpack.i.h.bf16 %v6195_v12  ;;  %v4444_v44 = vunpack.i.l.bf16 %v6195_v12  ;;  %v1439_v29 = vld [vmem:[#allocation2 + $0x7b] sm:$0xff] }
 0x3ca   : > { %v4503_v23 = vpop.permute.xlu1 %4502  ;;  %3221 = vmatmul.mubr.bf16.gmra.mrb[36].mxu1 %v2738_v45  ;;  %v2613_v16 = vsel %vm380_vm1, %v2590_v51, %v4509_v15  ;;  %v2614_v63 = vsel %vm380_vm1, %v2591_v2, %v4510_v7 }
 0x3cb   : > { %v4505_v41 = vunpack.i.h.bf16 %v4503_v23  ;;  %v4504_v36 = vunpack.i.l.bf16 %v4503_v23  ;;  %v4518_v13 = vpop.permute.xlu0 %4517 }
 0x3cc   : > { %v4520_v10 = vunpack.i.h.bf16 %v4518_v13  ;;  %v4519_v26 = vunpack.i.l.bf16 %v4518_v13  ;;  %v4830_v13 = vld [vmem:[#allocation2 + $0x71] sm:$0xff] }
 0x3cd   : > { %v2567_v38 = vsel %vm507_vm2, %v2544_v1, %v4504_v36  ;;  %v2568_v58 = vsel %vm507_vm2, %v2545_v0, %v4505_v41  ;;  %v4470_v1 = vunpack.i.h.bf16 %v6245_v42  ;;  %v4480_v42 = vunpack.i.h.bf16 %v6249_v27 }
 0x3ce   : > { %v4513_v40 = vpop.permute.xlu1 %4512  ;;  %v2741_v54 = vpack.c.bf16 %v2568_v58, %v2567_v38  ;;  %v2498_v9 = vsel %vm507_vm2, %v2475_v8, %v4519_v26  ;;  %v2499_v11 = vsel %vm507_vm2, %v2476_v14, %v4520_v10  ;;  %v2455_v14 = vsel %vm377_vm0, %v4828_v61, %v4445_v30  ;;  %v4829_v8 = vld [vmem:[#allocation2 + $0x70] sm:$0xff]  ;;  %v4831_v26 = vld [vmem:[#allocation2 + $0x79] sm:$0xff] }
 0x3cf   : > { %v4515_v57 = vunpack.i.h.bf16 %v4513_v40  ;;  %v4514_v32 = vunpack.i.l.bf16 %v4513_v40  ;;  %v6310_v35 = vpop.permute.xlu0 %4527  ;;  %v2740_v4 = vpack.c.bf16 %v2499_v11, %v2498_v9  ;;  %v2454_v40 = vsel %vm377_vm0, %v4829_v8, %v4444_v44 }
 0x3d0   : > { %3100 = vmatprep.mubr.bf16.mxu0 %v2741_v54  ;;  %v4529_v37 = vunpack.i.l.bf16 %v6310_v35  ;;  %v2523_v12 = vsel %vm377_vm0, %v4830_v13, %v4470_v1  ;;  %v4530_v10 = vunpack.i.h.bf16 %v6310_v35 }
 0x3d1   : > { %v2705_v19 = vsel %vm507_vm2, %v2682_v46, %v4514_v32  ;;  %v2706_v21 = vsel %vm507_vm2, %v2683_v59, %v4515_v57  ;;  %3101 = vmatmul.mubr.bf16.gmra.mrb[40].mxu0 %v2740_v4  ;;  %v4479_v32 = vunpack.i.l.bf16 %v6249_v27 }
 0x3d2   : > { %v4523_v52 = vpop.permute.xlu1 %4522  ;;  %v2743_v53 = vpack.c.bf16 %v2706_v21, %v2705_v19  ;;  %v2524_v46 = vsel %vm377_vm0, %v4831_v26, %v4529_v37  ;;  %v4489_v26 = vunpack.i.l.bf16 %v6264_v33 }
 0x3d3   : > { %v4525_v22 = vunpack.i.h.bf16 %v4523_v52  ;;  %v4524_v39 = vunpack.i.l.bf16 %v4523_v52  ;;  %v4538_v60 = vpop.permute.xlu0 %4537 }
 0x3d4   : > { %3228 = vmatprep.mubr.bf16.mxu1 %v2743_v53  ;;  %v4540_v38 = vunpack.i.h.bf16 %v4538_v60  ;;  %v4539_v58 = vunpack.i.l.bf16 %v4538_v60  ;;  %v1438_v53 = vld [vmem:[#allocation2 + $0x73] sm:$0xff] }
 0x3d5   : > { %v2636_v3 = vsel %vm507_vm2, %v2613_v16, %v4524_v39  ;;  %v2637_v28 = vsel %vm507_vm2, %v2614_v63, %v4525_v22  ;;  %v2661_v2 = vsel %vm377_vm0, %v1438_v53, %v4530_v10  ;;  %v4490_v10 = vunpack.i.h.bf16 %v6264_v33 }
 0x3d6   : > { %v6318_v47 = vpop.permute.xlu1 %4532  ;;  %v2742_v24 = vpack.c.bf16 %v2637_v28, %v2636_v3  ;;  %v2546_v9 = vsel %vm380_vm1, %v2523_v12, %v4539_v58  ;;  %v2547_v11 = vsel %vm380_vm1, %v2524_v46, %v4540_v38  ;;  %v4832_v58 = vld [vmem:[#allocation2 + $0x72] sm:$0xff] }
 0x3d7   : > { %v6322_v56 = vpop.permute.xlu0 %4547  ;;  %v4534_v59 = vunpack.i.l.bf16 %v6318_v47  ;;  %v4535_v22 = vunpack.i.h.bf16 %v6318_v47 }
 0x3d8   : > { %3229 = vmatmul.mubr.bf16.gmra.mrb[40].mxu1 %v2742_v24  ;;  %v4550_v52 = vunpack.i.h.bf16 %v6322_v56  ;;  %v4549_v27 = vunpack.i.l.bf16 %v6322_v56 }
 0x3d9   : > { %v2662_v39 = vsel %vm377_vm0, %v1439_v29, %v4534_v59  ;;  %v2592_v61 = vsel %vm377_vm0, %v4832_v58, %v4535_v22  ;;  %v4835_v29 = vld [vmem:[#allocation2 + $0x80] sm:$0xff] }
 0x3da   : > { %v6320_v31 = vpop.permute.xlu1 %4542  ;;  %v2684_v30 = vsel %vm380_vm1, %v2661_v2, %v4549_v27 }
 0x3db   : > { %v6324_v48 = vpop.permute.xlu0 %4567  ;;  %v4544_v28 = vunpack.i.l.bf16 %v6320_v31 }
 0x3dc   : > { %v4569_v33 = vunpack.i.l.bf16 %v6324_v48  ;;  %v4570_v58 = vunpack.i.h.bf16 %v6324_v48 }
 0x3de   : > { %v4553_v5 = vpop.permute.xlu1 %4552 }
 0x3df   : > { %v6328_v25 = vpop.permute.xlu0 %4572  ;;  %v4555_v0 = vunpack.i.h.bf16 %v4553_v5  ;;  %v4554_v6 = vunpack.i.l.bf16 %v4553_v5  ;;  %v2685_v5 = vsel %vm380_vm1, %v2662_v39, %v4550_v52 }
 0x3e1   : > { %v2477_v54 = vsel %vm380_vm1, %v2454_v40, %v4554_v6  ;;  %v2478_v57 = vsel %vm380_vm1, %v2455_v14, %v4555_v0  ;;  %v4833_v14 = vld [vmem:[#allocation2 + $0x7a] sm:$0xff] }
 0x3e2   : > { %v6326_v43 = vpop.permute.xlu1 %4557  ;;  %v2500_v35 = vsel %vm507_vm2, %v2477_v54, %v4479_v32  ;;  %v2501_v4 = vsel %vm507_vm2, %v2478_v57, %v4480_v42  ;;  %v2593_v8 = vsel %vm377_vm0, %v4833_v14, %v4544_v28  ;;  %v6835_v57 = vld [vmem:[#allocation14_spill] sm:$0xff] }
 0x3e3   : > { %v6332_v49 = vpop.permute.xlu0 %4577  ;;  %v2744_v56 = vpack.c.bf16 %v2501_v4, %v2500_v35  ;;  %v4560_v44 = vunpack.i.h.bf16 %v6326_v43  ;;  %v4559_v1 = vunpack.i.l.bf16 %v6326_v43  ;;  %v4079_v32 = vunpack.i.l.bf16 %v6835_v57 }
 0x3e4   : > { %v4485_v35 = vunpack.i.h.bf16 %v6266_v62  ;;  %v4484_v4 = vunpack.i.l.bf16 %v6266_v62 }
 0x3e5   : > { %v2615_v12 = vsel %vm380_vm1, %v2592_v61, %v4559_v1  ;;  %v2616_v43 = vsel %vm380_vm1, %v2593_v8, %v4560_v44 }
 0x3e6   : > { %v6330_v23 = vpop.permute.xlu1 %4562 }
 0x3e7   : > { %v6336_v17 = vpop.permute.xlu0 %4587  ;;  %v4565_v53 = vunpack.i.h.bf16 %v6330_v23 }
 0x3ea   : > { %v6334_v55 = vpop.permute.xlu1 %4582 }
 0x3eb   : > { %v6340_v41 = vpop.permute.xlu0 %4602 }
 0x3ee   : > { %v6338_v34 = vpop.permute.xlu1 %4592 }
 0x3ef   : > { %v6344_v45 = vpop.permute.xlu0 %4612 }
 0x3f2   : > { %v6342_v36 = vpop.permute.xlu1 %4597 }
 0x3f3   : > { %v6352_v50 = vpop.permute.xlu0 %4622 }
 0x3f6   : > { %v6350_v20 = vpop.permute.xlu1 %4607 }
 0x3f7   : > { %v4633_v15 = vpop.permute.xlu0 %4632 }
 0x3f8   : > { %v4635_v19 = vunpack.i.h.bf16 %v4633_v15  ;;  %v4634_v21 = vunpack.i.l.bf16 %v4633_v15 }
 0x3fa   : > { %v6364_v7 = vpop.permute.xlu1 %4617  ;;  %v2569_v51 = vsel %vm507_vm2, %v2546_v9, %v4634_v21  ;;  %v2570_v18 = vsel %vm507_vm2, %v2547_v11, %v4635_v19  ;;  %v4545_v9 = vunpack.i.h.bf16 %v6320_v31  ;;  %v4564_v11 = vunpack.i.l.bf16 %v6330_v23  ;;  %v4834_v19 = vld [vmem:[#allocation2 + $0xaa] sm:$0xff] }
 0x3fb   : > { %v4638_v63 = vpop.permute.xlu0 %4637  ;;  %v2745_v3 = vpack.c.bf16 %v2570_v18, %v2569_v51  ;;  %v6398_v21 = vsel %vm377_vm0, %v4834_v19, %v4079_v32  ;;  %v2456_v31 = vsel %vm377_vm0, %v4835_v29, %v4489_v26  ;;  %v4836_v51 = vld [vmem:[#allocation2 + $0x88] sm:$0xff] }
 0x3fc   : > { %v4640_v60 = vunpack.i.h.bf16 %v4638_v63  ;;  %v4639_v24 = vunpack.i.l.bf16 %v4638_v63  ;;  %v2457_v18 = vsel %vm377_vm0, %v4836_v51, %v4490_v10  ;;  %v1440_v23 = vld [vmem:[#allocation2 + $0x83] sm:$0xff] }
 0x3fd   : > { %3108 = vmatprep.mubr.bf16.mxu0 %v2745_v3  ;;  %v4837_v3 = vld [vmem:[#allocation2 + $0x81] sm:$0xff] }
 0x3fe   : > { %v6377_v16 = vpop.permute.xlu1 %4627  ;;  %3109 = vmatmul.mubr.bf16.gmra.mrb[44].mxu0 %v2744_v56  ;;  %v2707_v47 = vsel %vm507_vm2, %v2684_v30, %v4639_v24  ;;  %v2708_v0 = vsel %vm507_vm2, %v2685_v5, %v4640_v60  ;;  %v2525_v28 = vsel %vm377_vm0, %v4837_v3, %v4545_v9  ;;  %v4838_v60 = vld [vmem:[#allocation2 + $0x89] sm:$0xff]  ;;  %v4580_v3 = vunpack.i.h.bf16 %v6332_v49 }
 0x3ff   : > { %v4643_v37 = vpop.permute.xlu0 %4642  ;;  %v2747_v38 = vpack.c.bf16 %v2708_v0, %v2707_v47  ;;  %v2526_v62 = vsel %vm377_vm0, %v4838_v60, %v4564_v11  ;;  %v1441_v5 = vld [vmem:[#allocation2 + $0x8b] sm:$0xff]  ;;  %v4841_v51 = vld [vmem:[#allocation2 + $0x82] sm:$0xff] }
 0x400   : > { %v4645_v40 = vunpack.i.h.bf16 %v4643_v37  ;;  %v4644_v13 = vunpack.i.l.bf16 %v4643_v37  ;;  %v2664_v0 = vsel %vm377_vm0, %v1441_v5, %v4569_v33  ;;  %v4839_v11 = vld [vmem:[#allocation2 + $0x91] sm:$0xff]  ;;  %v4584_v5 = vunpack.i.l.bf16 %v6334_v55 }
 0x401   : > { %3236 = vmatprep.mubr.bf16.mxu1 %v2747_v38  ;;  %v2527_v19 = vsel %vm377_vm0, %v4839_v11, %v4485_v35  ;;  %v1443_v11 = vld [vmem:[#allocation2 + $0x9b] sm:$0xff] }
 0x402   : > { %v4648_v6 = vpop.permute.xlu1 %4647  ;;  %v2638_v42 = vsel %vm507_vm2, %v2615_v12, %v4644_v13  ;;  %v2639_v54 = vsel %vm507_vm2, %v2616_v43, %v4645_v40 }
 0x403   : > { %v4658_v59 = vpop.permute.xlu0 %4657  ;;  %v2746_v15 = vpack.c.bf16 %v2639_v54, %v2638_v42  ;;  %v4650_v52 = vunpack.i.h.bf16 %v4648_v6  ;;  %v4649_v27 = vunpack.i.l.bf16 %v4648_v6  ;;  %v2663_v6 = vsel %vm377_vm0, %v1440_v23, %v4565_v53 }
 0x404   : > { %v4660_v1 = vunpack.i.h.bf16 %v4658_v59  ;;  %v4659_v47 = vunpack.i.l.bf16 %v4658_v59 }
 0x405   : > { %3237 = vmatmul.mubr.bf16.gmra.mrb[44].mxu1 %v2746_v15  ;;  %v2549_v30 = vsel %vm380_vm1, %v2526_v62, %v4650_v52  ;;  %v2548_v44 = vsel %vm380_vm1, %v2525_v28, %v4649_v27  ;;  %v4840_v52 = vld [vmem:[#allocation2 + $0x8a] sm:$0xff] }
 0x406   : > { %v4653_v46 = vpop.permute.xlu1 %4652  ;;  %v2480_v32 = vsel %vm380_vm1, %v2457_v18, %v4660_v1  ;;  %v2479_v10 = vsel %vm380_vm1, %v2456_v31, %v4659_v47  ;;  %v2595_v27 = vsel %vm377_vm0, %v4840_v52, %v4484_v4  ;;  %v2594_v18 = vsel %vm377_vm0, %v4841_v51, %v4570_v58 }
 0x407   : > { %v4655_v2 = vunpack.i.h.bf16 %v4653_v46  ;;  %v4654_v22 = vunpack.i.l.bf16 %v4653_v46  ;;  %v4668_v63 = vpop.permute.xlu0 %4667  ;;  %v4579_v4 = vunpack.i.l.bf16 %v6332_v49  ;;  %v4595_v1 = vunpack.i.h.bf16 %v6338_v34 }
 0x408   : > { %v4670_v26 = vunpack.i.h.bf16 %v4668_v63  ;;  %v4669_v46 = vunpack.i.l.bf16 %v4668_v63  ;;  %v4574_v63 = vunpack.i.l.bf16 %v6328_v25  ;;  %v4594_v49 = vunpack.i.l.bf16 %v6338_v34 }
 0x409   : > { %v2686_v61 = vsel %vm380_vm1, %v2663_v6, %v4654_v22  ;;  %v2687_v14 = vsel %vm380_vm1, %v2664_v0, %v4655_v2  ;;  %v4575_v2 = vunpack.i.h.bf16 %v6328_v25  ;;  %v4590_v25 = vunpack.i.h.bf16 %v6336_v17 }
 0x40a   : > { %v4663_v39 = vpop.permute.xlu1 %4662  ;;  %v2617_v35 = vsel %vm380_vm1, %v2594_v18, %v4669_v46  ;;  %v2618_v28 = vsel %vm380_vm1, %v2595_v27, %v4670_v26  ;;  %v4605_v47 = vunpack.i.h.bf16 %v6340_v41  ;;  %v4604_v6 = vunpack.i.l.bf16 %v6340_v41 }
 0x40b   : > { %v4665_v24 = vunpack.i.h.bf16 %v4663_v39  ;;  %v4664_v56 = vunpack.i.l.bf16 %v4663_v39  ;;  %v4678_v40 = vpop.permute.xlu0 %4677  ;;  %v4610_v26 = vunpack.i.h.bf16 %v6350_v20  ;;  %v4630_v18 = vunpack.i.h.bf16 %v6377_v16 }
 0x40c   : > { %v4680_v42 = vunpack.i.h.bf16 %v4678_v40  ;;  %v4679_v54 = vunpack.i.l.bf16 %v4678_v40 }
 0x40d   : > { %v2571_v37 = vsel %vm507_vm2, %v2548_v44, %v4664_v56  ;;  %v2572_v38 = vsel %vm507_vm2, %v2549_v30, %v4665_v24  ;;  %v4585_v56 = vunpack.i.h.bf16 %v6334_v55  ;;  %v4589_v44 = vunpack.i.l.bf16 %v6336_v17 }
 0x40e   : > { %v4673_v8 = vpop.permute.xlu1 %4672  ;;  %v2749_v13 = vpack.c.bf16 %v2572_v38, %v2571_v37  ;;  %v2502_v48 = vsel %vm507_vm2, %v2479_v10, %v4679_v54  ;;  %v2503_v59 = vsel %vm507_vm2, %v2480_v32, %v4680_v42  ;;  %v4600_v37 = vunpack.i.h.bf16 %v6342_v36 }
 0x40f   : > { %v4675_v12 = vunpack.i.h.bf16 %v4673_v8  ;;  %v4674_v43 = vunpack.i.l.bf16 %v4673_v8  ;;  %v2748_v29 = vpack.c.bf16 %v2503_v59, %v2502_v48  ;;  %v4842_v8 = vld [vmem:[#allocation2 + $0x99] sm:$0xff]  ;;  %v4614_v10 = vunpack.i.l.bf16 %v6344_v45 }
 0x410   : > { %3116 = vmatprep.mubr.bf16.mxu0 %v2749_v13 }
 0x411   : > { %v2709_v15 = vsel %vm507_vm2, %v2686_v61, %v4674_v43  ;;  %v2710_v9 = vsel %vm507_vm2, %v2687_v14, %v4675_v12  ;;  %v4688_v53 = vpop.permute.xlu0 %4687  ;;  %3117 = vmatmul.mubr.bf16.gmra.mrb[48].mxu0 %v2748_v29  ;;  %v4625_v61 = vunpack.i.h.bf16 %v6352_v50  ;;  %v4599_v12 = vunpack.i.l.bf16 %v6342_v36 }
 0x412   : > { %v4683_v33 = vpop.permute.xlu1 %4682  ;;  %v2751_v31 = vpack.c.bf16 %v2710_v9, %v2709_v15  ;;  %v4689_v60 = vunpack.i.l.bf16 %v4688_v53  ;;  %v4690_v14 = vunpack.i.h.bf16 %v4688_v53  ;;  %v4615_v43 = vunpack.i.h.bf16 %v6344_v45  ;;  %v1442_v9 = vld [vmem:[#allocation2 + $0x93] sm:$0xff] }
 0x413   : > { %v4685_v22 = vunpack.i.h.bf16 %v4683_v33  ;;  %v4684_v39 = vunpack.i.l.bf16 %v4683_v33  ;;  %v4624_v15 = vunpack.i.l.bf16 %v6352_v50 }
 0x414   : > { %3244 = vmatprep.mubr.bf16.mxu1 %v2751_v31  ;;  %v2528_v40 = vsel %vm377_vm0, %v4842_v8, %v4689_v60  ;;  %v2665_v29 = vsel %vm377_vm0, %v1442_v9, %v4690_v14  ;;  %v2622_v34 = vsel %vm380_vm1, %v6398_v21, %v4615_v43  ;;  %v1382_v21 = vld [vmem:[#allocation2 + $0xb1] sm:$0x1]  ;;  %v4080_v43 = vunpack.i.h.bf16 %v6835_v57 }
 0x415   : > { %v2640_v62 = vsel %vm507_vm2, %v2617_v35, %v4684_v39  ;;  %v2641_v24 = vsel %vm507_vm2, %v2618_v28, %v4685_v22  ;;  %v4698_v0 = vpop.permute.xlu0 %4697  ;;  %v4629_v22 = vunpack.i.l.bf16 %v6377_v16 }
 0x416   : > { %v6437_v23 = vpop.permute.xlu1 %4692  ;;  %v2750_v30 = vpack.c.bf16 %v2641_v24, %v2640_v62  ;;  %v4700_v38 = vunpack.i.h.bf16 %v4698_v0  ;;  %v4699_v58 = vunpack.i.l.bf16 %v4698_v0  ;;  %v4844_v24 = vld [vmem:[#allocation2 + $0x90] sm:$0xff] }
 0x417   : > { %v4694_v13 = vunpack.i.l.bf16 %v6437_v23  ;;  %v4695_v0 = vunpack.i.h.bf16 %v6437_v23 }
 0x418   : > { %3245 = vmatmul.mubr.bf16.gmra.mrb[48].mxu1 %v2750_v30  ;;  %v2550_v42 = vsel %vm380_vm1, %v2527_v19, %v4699_v58  ;;  %v2551_v54 = vsel %vm380_vm1, %v2528_v40, %v4700_v38  ;;  %v4843_v19 = vld [vmem:[#allocation2 + $0x98] sm:$0xff]  ;;  %v2458_v30 = vsel %vm377_vm0, %v4844_v24, %v4624_v15  ;;  %v4609_v58 = vunpack.i.l.bf16 %v6350_v20 }
 0x419   : > { %v2573_v48 = vsel %vm507_vm2, %v2550_v42, %v4574_v63  ;;  %v2574_v59 = vsel %vm507_vm2, %v2551_v54, %v4575_v2  ;;  %v2459_v53 = vsel %vm377_vm0, %v4843_v19, %v4625_v61  ;;  %v2666_v31 = vsel %vm377_vm0, %v1443_v11, %v4694_v13  ;;  %v4845_v61 = vld [vmem:[#allocation2 + $0xa1] sm:$0xff]  ;;  %v4848_v11 = vld [vmem:[#allocation2 + $0x92] sm:$0xff] }
 0x41a   : > { %v2753_v33 = vpack.c.bf16 %v2574_v59, %v2573_v48  ;;  %v4846_v13 = vld [vmem:[#allocation2 + $0xa0] sm:$0xff] }
 0x41b   : > { %v4703_v32 = vpop.permute.xlu1 %4702 }
 0x41c   : > { %v4705_v51 = vunpack.i.h.bf16 %v4703_v32  ;;  %3124 = vmatprep.mubr.bf16.mxu0 %v2753_v33  ;;  %v4704_v16 = vunpack.i.l.bf16 %v4703_v32  ;;  %v4847_v32 = vld [vmem:[#allocation2 + $0xa8] sm:$0xff] }
 0x41d   : > { %v4708_v46 = vpop.permute.xlu0 %4707 }
 0x41e   : > { %v4710_v52 = vunpack.i.h.bf16 %v4708_v46  ;;  %v4709_v27 = vunpack.i.l.bf16 %v4708_v46  ;;  %v2529_v14 = vsel %vm377_vm0, %v4845_v61, %v4705_v51  ;;  %v2461_v46 = vsel %vm377_vm0, %v4847_v32, %v4630_v18 }
 0x41f   : > { %v2552_v55 = vsel %vm380_vm1, %v2529_v14, %v4594_v49  ;;  %v2484_v17 = vsel %vm380_vm1, %v2461_v46, %v4605_v47 }
 0x420   : > { %v2689_v2 = vsel %vm380_vm1, %v2666_v31, %v4710_v52  ;;  %v2688_v50 = vsel %vm380_vm1, %v2665_v29, %v4709_v27  ;;  %v4718_v39 = vpop.permute.xlu1 %4717  ;;  %v2596_v52 = vsel %vm377_vm0, %v4848_v11, %v4695_v0  ;;  %v4849_v27 = vld [vmem:[#allocation2 + $0x9a] sm:$0xff]  ;;  %v1445_v29 = vld [vmem:[#allocation2 + $0xab] sm:$0xff]  ;;  %v2575_v24 = vsel %vm507_vm2, %v2552_v55, %v4609_v58 }
 0x421   : > { %v4720_v63 = vunpack.i.h.bf16 %v4718_v39  ;;  %v4719_v35 = vunpack.i.l.bf16 %v4718_v39  ;;  %v2711_v60 = vsel %vm507_vm2, %v2688_v50, %v4579_v4  ;;  %v2712_v62 = vsel %vm507_vm2, %v2689_v2, %v4580_v3 }
 0x422   : > { %v2755_v38 = vpack.c.bf16 %v2712_v62, %v2711_v60  ;;  %v4620_v4 = vunpack.i.h.bf16 %v6364_v7  ;;  %v2460_v3 = vsel %vm377_vm0, %v4846_v13, %v4629_v22  ;;  %v2597_v33 = vsel %vm377_vm0, %v4849_v27, %v4704_v16  ;;  %v1444_v62 = vld [vmem:[#allocation2 + $0xa3] sm:$0xff]  ;;  %v1414_v27 = vld [vmem:[#allocation2 + $0xb2] sm:$0x1] }
 0x423   : > { %v6464_v28 = vpop.permute.xlu0 %4712  ;;  %v2481_v8 = vsel %vm380_vm1, %v2458_v30, %v4719_v35  ;;  %v2482_v40 = vsel %vm380_vm1, %v2459_v53, %v4720_v63  ;;  %v4851_v16 = vld [vmem:[#allocation2 + $0xa9] sm:$0xff] }
 0x424   : > { %3252 = vmatprep.mubr.bf16.mxu1 %v2755_v38  ;;  %v4723_v42 = vpop.permute.xlu1 %4722  ;;  %v2504_v23 = vsel %vm507_vm2, %v2481_v8, %v4584_v5  ;;  %v2505_v54 = vsel %vm507_vm2, %v2482_v40, %v4585_v56  ;;  %v4714_v56 = vunpack.i.l.bf16 %v6464_v28  ;;  %v4715_v51 = vunpack.i.h.bf16 %v6464_v28 }
 0x425   : > { %v4725_v48 = vunpack.i.h.bf16 %v4723_v42  ;;  %v4724_v59 = vunpack.i.l.bf16 %v4723_v42  ;;  %v2752_v9 = vpack.c.bf16 %v2505_v54, %v2504_v23  ;;  %v4619_v28 = vunpack.i.l.bf16 %v6364_v7  ;;  %v6836_v42 = vld [vmem:[#allocation38_spill] sm:$0xff] }
 0x426   : > { %v2507_v58 = vsel %vm507_vm2, %v2484_v17, %v4715_v51 }
 0x427   : > { %v4738_v15 = vpop.permute.xlu0 %4737  ;;  %v2619_v5 = vsel %vm380_vm1, %v2596_v52, %v4724_v59  ;;  %v2620_v53 = vsel %vm380_vm1, %v2597_v33, %v4725_v48  ;;  %3125 = vmatmul.mubr.bf16.gmra.mrb[52].mxu0 %v2752_v9  ;;  %v1290_v52 = vld [vmem:[#allocation2 + $0xb0] sm:$0x1]  ;;  %v1446_v33 = vld [vmem:[#allocation2 + $0xb3] sm:$0x1] }
 0x428   : > { %v4739_v19 = vunpack.i.l.bf16 %v4738_v15  ;;  %v4740_v31 = vunpack.i.h.bf16 %v4738_v15  ;;  %v4728_v22 = vpop.permute.xlu1 %4727  ;;  %v2642_v2 = vsel %vm507_vm2, %v2619_v5, %v4589_v44  ;;  %v2643_v49 = vsel %vm507_vm2, %v2620_v53, %v4590_v25  ;;  %v4850_v25 = vld [vmem:[#allocation2 + $0xa2] sm:$0xff] }
 0x429   : > { %v4730_v50 = vunpack.i.h.bf16 %v4728_v22  ;;  %v4729_v39 = vunpack.i.l.bf16 %v4728_v22  ;;  %v2754_v35 = vpack.c.bf16 %v2643_v49, %v2642_v2  ;;  %v2483_v44 = vsel %vm380_vm1, %v2460_v3, %v4604_v6 }
 0x42a   : > { %v2668_v18 = vsel %vm377_vm0, %v1445_v29, %v4739_v19  ;;  %v2598_v30 = vsel %vm377_vm0, %v4850_v25, %v4740_v31  ;;  %v2506_v7 = vsel %vm507_vm2, %v2483_v44, %v4714_v56  ;;  %v2531_v19 = vsel %vm377_vm0, %v1382_v21, %v4080_v43 }
 0x42b   : > { %v4743_v63 = vpop.permute.xlu0 %4742  ;;  %v2691_v60 = vsel %vm380_vm1, %v2668_v18, %v4600_v37  ;;  %v2667_v0 = vsel %vm377_vm0, %v1444_v62, %v4730_v50  ;;  %v2530_v37 = vsel %vm377_vm0, %v4851_v16, %v4729_v39  ;;  %3253 = vmatmul.mubr.bf16.gmra.mrb[52].mxu1 %v2754_v35 }
 0x42c   : > { %v4733_v38 = vpop.permute.xlu1 %4732  ;;  %v2553_v6 = vsel %vm380_vm1, %v2530_v37, %v4595_v1  ;;  %v2690_v41 = vsel %vm380_vm1, %v2667_v0, %v4599_v12  ;;  %v2714_v47 = vsel %vm507_vm2, %v2691_v60, %v4620_v4  ;;  %v2621_v12 = vsel %vm380_vm1, %v2598_v30, %v4614_v10 }
 0x42d   : > { %v4735_v61 = vunpack.i.h.bf16 %v4733_v38  ;;  %v4734_v14 = vunpack.i.l.bf16 %v4733_v38  ;;  %v2576_v40 = vsel %vm507_vm2, %v2553_v6, %v4610_v26  ;;  %v2713_v13 = vsel %vm507_vm2, %v2690_v41, %v4619_v28 }
 0x42e   : > { %v2757_v36 = vpack.c.bf16 %v2576_v40, %v2575_v24  ;;  %v2759_v1 = vpack.c.bf16 %v2714_v47, %v2713_v13  ;;  %v2756_v4 = vpack.c.bf16 %v2507_v58, %v2506_v7  ;;  %v4234_v26 = vunpack.i.l.bf16 %v6836_v42 }
 0x42f   : > { %v4753_v8 = vpop.permute.xlu0 %4752  ;;  %v2644_v3 = vsel %vm507_vm2, %v2621_v12, %v4734_v14  ;;  %v2645_v20 = vsel %vm507_vm2, %v2622_v34, %v4735_v61  ;;  %v4745_v23 = vunpack.i.h.bf16 %v4743_v63  ;;  %v4744_v54 = vunpack.i.l.bf16 %v4743_v63 }
 0x430   : > { %v4748_v32 = vpop.permute.xlu1 %4747  ;;  %3132 = vmatprep.mubr.bf16.mxu0 %v2757_v36  ;;  %3260 = vmatprep.mubr.bf16.mxu1 %v2759_v1  ;;  %v2758_v46 = vpack.c.bf16 %v2645_v20, %v2644_v3  ;;  %v4755_v48 = vunpack.i.h.bf16 %v4753_v8  ;;  %v4754_v45 = vunpack.i.l.bf16 %v4753_v8  ;;  %v2462_v55 = vsel %vm377_vm0, %v1290_v52, %v4234_v26 }
 0x431   : > { %3133 = vmatmul.mubr.bf16.gmra.mrb[56].mxu0 %v2756_v4  ;;  %v4750_v10 = vunpack.i.h.bf16 %v4748_v32  ;;  %v4749_v15 = vunpack.i.l.bf16 %v4748_v32  ;;  %v2600_v56 = vsel %vm377_vm0, %v1414_v27, %v4745_v23  ;;  %v2669_v57 = vsel %vm377_vm0, %v1446_v33, %v4744_v54 }
 0x432   : > { %v2485_v53 = vsel %vm380_vm1, %v2462_v55, %v4754_v45  ;;  %v2623_v29 = vsel %vm380_vm1, %v2600_v56, %v4755_v48  ;;  %vm3310_vm0 = vcmask 1041408  }
 0x433   : > { %v4763_v59 = vpop.permute.xlu0 %4762  ;;  %3261 = vmatmul.mubr.bf16.gmra.mrb[56].mxu1 %v2758_v46  ;;  %v2554_v18 = vsel %vm380_vm1, %v2531_v19, %v4749_v15  ;;  %v2692_v22 = vsel %vm380_vm1, %v2669_v57, %v4750_v10  ;;  %vm3312_vm1 = vcmask 1042432  }
 0x434   : > { %v4765_v9 = vunpack.i.h.bf16 %v4763_v59  ;;  %v4764_v11 = vunpack.i.l.bf16 %v4763_v59  ;;  %v4758_v5 = vpop.permute.xlu1 %4757 }
 0x435   : > { %v4760_v31 = vunpack.i.h.bf16 %v4758_v5  ;;  %v4759_v51 = vunpack.i.l.bf16 %v4758_v5 }
 0x436   : > { %v2508_v2 = vsel %vm507_vm2, %v2485_v53, %v4764_v11  ;;  %v2646_v49 = vsel %vm507_vm2, %v2623_v29, %v4765_v9 }
 0x437   : > { %v2577_v50 = vsel %vm507_vm2, %v2554_v18, %v4759_v51  ;;  %v2715_v39 = vsel %vm507_vm2, %v2692_v22, %v4760_v31  ;;  %v2760_v60 = vpack.c.bf16 %v2508_v2, %v2508_v2  ;;  %v2762_v28 = vpack.c.bf16 %v2646_v49, %v2646_v49 }
 0x438   : > { %v2761_v63 = vpack.c.bf16 %v2577_v50, %v2577_v50  ;;  %v2763_v35 = vpack.c.bf16 %v2715_v39, %v2715_v39  ;;  %vm3314_vm2 = vcmask 1043456  }
 0x43a   : > { %3140 = vmatprep.mubr.bf16.mxu0 %v2761_v63  ;;  %3268 = vmatprep.mubr.bf16.mxu1 %v2763_v35 }
 0x43b   : > { %3141 = vmatmul.mubr.bf16.gmra.mrb[60].mxu0 %v2760_v60  ;;  %3269 = vmatmul.mubr.bf16.gmra.mrb[60].mxu1 %v2762_v28 }
 0x458   : > { %v3872_v62 = vpop.f32.mrb[16].mxu1 }
 0x459   : > { %v3873_v24 = vpop.f32.mrb[17].mxu1 }
 0x45a   : > { %v3874_v44 = vadd.f32 %v3873_v24, %v3872_v62  ;;  %v3875_v17 = vpop.f32.mrb[18].mxu1 }
 0x45b   : > { %v3876_v25 = vpop.f32.mrb[19].mxu1 }
 0x45c   : > { %v3877_v30 = vadd.f32 %v3876_v25, %v3875_v17 }
 0x45d   : > { %v3784_v0 = vpop.f32.mrb[16].mxu0 }
 0x45e   : > { %v3785_v16 = vpop.f32.mrb[17].mxu0 }
 0x45f   : > { %v3786_v37 = vadd.f32 %v3785_v16, %v3784_v0  ;;  %v3787_v7 = vpop.f32.mrb[18].mxu0  ;;  %v6556_v16 = vld [vmem:[%s6642_s5] ss:$0 sm:$0xff] }
 0x460   : > { %v3788_v38 = vpop.f32.mrb[19].mxu0 }
 0x461   : > { %v3183_v6 = vadd.f32 %v3874_v44, %v3786_v37  ;;  %v3789_v41 = vadd.f32 %v3788_v38, %v3787_v7 }
 0x463   : > { %v3186_v47 = vadd.f32 %v3877_v30, %v3789_v41 }
 0x465   : > { %v3790_v58 = vpop.f32.mrb[20].mxu0  ;;  %v3280_v42 = vrot.slane %v3186_v47, 7 }
 0x466   : > { %v3791_v61 = vpop.f32.mrb[21].mxu0 }
 0x467   : > { %v3792_v14 = vadd.f32 %v3791_v61, %v3790_v58  ;;  %v3793_v8 = vpop.f32.mrb[22].mxu0 }
 0x468   : > { %v3794_v40 = vpop.f32.mrb[23].mxu0 }
 0x469   : > { %v3795_v13 = vadd.f32 %v3794_v40, %v3793_v8 }
 0x46c   : > { %v3878_v34 = vpop.f32.mrb[20].mxu1 }
 0x46d   : > { %v3879_v36 = vpop.f32.mrb[21].mxu1 }
 0x46e   : > { %v3880_v1 = vadd.f32 %v3879_v36, %v3878_v34  ;;  %v3881_v12 = vpop.f32.mrb[22].mxu1 }
 0x46f   : > { %v3882_v4 = vpop.f32.mrb[23].mxu1 }
 0x470   : > { %v3191_v3 = vadd.f32 %v3880_v1, %v3792_v14  ;;  %v3883_v20 = vadd.f32 %v3882_v4, %v3881_v12 }
 0x472   : > { %v3281_v26 = vrot.slane %v3191_v3, 7  ;;  %v3194_v23 = vadd.f32 %v3883_v20, %v3795_v13 }
 0x473   : > { %v3796_v54 = vpop.f32.mrb[24].mxu0 }
 0x474   : > { %v3797_v32 = vpop.f32.mrb[25].mxu0  ;;  %v3282_v46 = vsel %vm898_vm4, %v3280_v42, %v3281_v26  ;;  %v3283_v21 = vrot.slane %v3194_v23, 7 }
 0x475   : > { %v3798_v43 = vadd.f32 %v3797_v32, %v3796_v54  ;;  %v3799_v48 = vpop.f32.mrb[26].mxu0  ;;  %v3287_v59 = vmax.f32 %v3183_v6, %v3282_v46 }
 0x476   : > { %v3800_v10 = vpop.f32.mrb[27].mxu0  ;;  %v3284_v9 = vsel %vm898_vm4, %v3281_v26, %v3283_v21 }
 0x477   : > { %v3801_v11 = vadd.f32 %v3800_v10, %v3799_v48  ;;  %v3290_v33 = vrot.slane %v3287_v59, 1  ;;  %v3288_v19 = vmax.f32 %v3186_v47, %v3284_v9 }
 0x479   : > { %v3884_v45 = vpop.f32.mrb[24].mxu1  ;;  %v3292_v5 = vmax.f32 %v3287_v59, %v3290_v33  ;;  %v3294_v53 = vrot.slane %v3288_v19, 1 }
 0x47a   : > { %v3885_v15 = vpop.f32.mrb[25].mxu1 }
 0x47b   : > { %v3886_v52 = vadd.f32 %v3885_v15, %v3884_v45  ;;  %v3887_v27 = vpop.f32.mrb[26].mxu1  ;;  %v3298_v51 = vrot.slane %v3292_v5, 1  ;;  %v3300_v18 = vrot.slane %v3292_v5, 2  ;;  %v3296_v22 = vmax.f32 %v3288_v19, %v3294_v53 }
 0x47c   : > { %v3888_v55 = vpop.f32.mrb[27].mxu1  ;;  %v3302_v35 = vrot.slane %v3292_v5, 3 }
 0x47d   : > { %v3199_v56 = vadd.f32 %v3886_v52, %v3798_v43  ;;  %v3889_v57 = vadd.f32 %v3888_v55, %v3887_v27  ;;  %v3309_v60 = vsel %vm898_vm4, %v3292_v5, %v3298_v51  ;;  %v3305_v28 = vrot.slane %v3296_v22, 4  ;;  %v3328_v43 = vld [vmem:[%s6643_s6] sm:$0x3f] }
 0x47e   : > { %v3311_v44 = vsel %vm3310_vm0, %v3309_v60, %v3300_v18  ;;  %v3307_v37 = vrot.slane %v3296_v22, 5 }
 0x47f   : > { %v3202_v29 = vadd.f32 %v3889_v57, %v3801_v11  ;;  %v3313_v7 = vsel %vm3312_vm1, %v3311_v44, %v3302_v35 }
 0x480   : > { %v3802_v31 = vpop.f32.mrb[28].mxu0  ;;  %v3315_v6 = vsel %vm3314_vm2, %v3313_v7, %v3305_v28 }
 0x481   : > { %v3803_v2 = vpop.f32.mrb[29].mxu0  ;;  %v3342_v49 = vrot.slane %v3202_v29, 7  ;;  %v3317_v58 = vsel %vm3316_vm8, %v3315_v6, %v3307_v37 }
 0x482   : > { %v3804_v50 = vadd.f32 %v3803_v2, %v3802_v31  ;;  %v3805_v39 = vpop.f32.mrb[30].mxu0  ;;  %v3890_v63 = vpop.f32.mrb[28].mxu1  ;;  %v3324_v61 = vadd.f32 %v6556_v16, %v3317_v58 }
 0x483   : > { %v3806_v62 = vpop.f32.mrb[31].mxu0  ;;  %v3891_v24 = vpop.f32.mrb[29].mxu1  ;;  %v3350_v17 = vmax.f32 %v3194_v23, %v3342_v49 }
 0x484   : > { %v3807_v25 = vadd.f32 %v3806_v62, %v3805_v39  ;;  %v3892_v30 = vadd.f32 %v3891_v24, %v3890_v63  ;;  %v3893_v0 = vpop.f32.mrb[30].mxu1  ;;  %vm3325_vm14 = vcmp.gt.f32.partialorder %v3324_v61, 0.0  ;;  %v3326_v36 = vmul.f32 0.2, %v3324_v61 }
 0x485   : > { %v3894_v38 = vpop.f32.mrb[31].mxu1  ;;  %v3354_v13 = vrot.slane %v3350_v17, 1 }
 0x486   : > { %v3207_v41 = vadd.f32 %v3892_v30, %v3804_v50  ;;  %v3895_v47 = vadd.f32 %v3894_v38, %v3893_v0  ;;  %v3327_v21 = vsel %vm3325_vm14, %v3324_v61, %v3326_v36  ;;  %v3387_v0 = vld [vmem:[%s6643_s6 + $0x6] sm:$0x3f] }
 0x487   : > { %v3356_v48 = vmax.f32 %v3350_v17, %v3354_v13  ;;  %v3329_v27 = vmul.f32 %v3328_v43, %v3327_v21 }
 0x488   : > { %v3343_v14 = vrot.slane %v3207_v41, 7  ;;  %v3210_v8 = vadd.f32 %v3895_v47, %v3807_v25 }
 0x48a   : > { %v3808_v40 = vpop.f32.mrb[32].mxu0  ;;  %v3344_v1 = vsel %vm898_vm4, %v3342_v49, %v3343_v14  ;;  %v3345_v20 = vrot.slane %v3210_v8, 7 }
 0x48b   : > { %v3809_v34 = vpop.f32.mrb[33].mxu0  ;;  %v3896_v4 = vpop.f32.mrb[32].mxu1  ;;  %v3351_v3 = vmax.f32 %v3199_v56, %v3344_v1  ;;  %v3366_v56 = vrot.slane %v3356_v48, 6 }
 0x48c   : > { %v3811_v12 = vpop.f32.mrb[34].mxu0  ;;  %v3810_v42 = vadd.f32 %v3809_v34, %v3808_v40  ;;  %v3897_v23 = vpop.f32.mrb[33].mxu1  ;;  %v3346_v59 = vsel %vm898_vm4, %v3343_v14, %v3345_v20 }
 0x48d   : > { %v3812_v26 = vpop.f32.mrb[35].mxu0  ;;  %v3898_v32 = vadd.f32 %v3897_v23, %v3896_v4  ;;  %v3899_v46 = vpop.f32.mrb[34].mxu1  ;;  %v3358_v45 = vrot.slane %v3351_v3, 1  ;;  %v3352_v15 = vmax.f32 %v3202_v29, %v3346_v59  ;;  %v3331_v29 = vsel %vm3330_vm15, %v3329_v27, 0.0 }
 0x48e   : > { %v3813_v54 = vadd.f32 %v3812_v26, %v3811_v12  ;;  %v3900_v10 = vpop.f32.mrb[35].mxu1  ;;  %v3332_v24 = vrot.slane %v3331_v29, 4 }
 0x48f   : > { %v3215_v9 = vadd.f32 %v3898_v32, %v3810_v42  ;;  %v3901_v11 = vadd.f32 %v3900_v10, %v3899_v46  ;;  %v3360_v52 = vmax.f32 %v3351_v3, %v3358_v45  ;;  %v3362_v33 = vrot.slane %v3352_v15, 1 }
 0x490   : > { %v3333_v30 = vadd.f32 %v3332_v24, %v3331_v29  ;;  %v3435_v24 = vld [vmem:[%s6643_s6 + $0xc] sm:$0x3f] }
 0x491   : > { %v3218_v19 = vadd.f32 %v3901_v11, %v3813_v54  ;;  %v3369_v57 = vrot.slane %v3360_v52, 7  ;;  %v3364_v53 = vmax.f32 %v3352_v15, %v3362_v33  ;;  %v3371_v22 = vrot.slane %v3360_v52, 1 }
 0x492   : > { %v3814_v55 = vpop.f32.mrb[36].mxu0  ;;  %v3373_v50 = vrot.slane %v3360_v52, 2  ;;  %v3334_v38 = vrot.slane %v3333_v30, 2 }
 0x493   : > { %v3815_v5 = vpop.f32.mrb[37].mxu0  ;;  %v3399_v31 = vrot.slane %v3218_v19, 7  ;;  %v3378_v2 = vsel %vm898_vm4, %v3366_v56, %v3369_v57  ;;  %v3376_v28 = vrot.slane %v3364_v53, 3 }
 0x494   : > { %v3816_v51 = vadd.f32 %v3815_v5, %v3814_v55  ;;  %v3817_v18 = vpop.f32.mrb[38].mxu0  ;;  %v3379_v39 = vsel %vm3310_vm0, %v3378_v2, %v3360_v52  ;;  %v3335_v61 = vadd.f32 %v3334_v38, %v3333_v30 }
 0x495   : > { %v3818_v49 = vpop.f32.mrb[39].mxu0  ;;  %v3404_v63 = vmax.f32 %v3210_v8, %v3399_v31  ;;  %v3380_v60 = vsel %vm3312_vm1, %v3379_v39, %v3371_v22 }
 0x496   : > { %v3819_v35 = vadd.f32 %v3818_v49, %v3817_v18  ;;  %v3381_v62 = vsel %vm3314_vm2, %v3380_v60, %v3373_v50  ;;  %v3336_v4 = vrot.slane %v3335_v61, 1 }
 0x497   : > { %v3382_v44 = vsel %vm3316_vm8, %v3381_v62, %v3376_v28  ;;  %v3407_v36 = vrot.slane %v3404_v63, 1 }
 0x498   : > { %v3383_v17 = vadd.f32 %v6556_v16, %v3382_v44  ;;  %v3337_v45 = vadd.f32 %v3336_v4, %v3335_v61 }
 0x499   : > { %v3409_v54 = vmax.f32 %v3404_v63, %v3407_v36 }
 0x49a   : > { %vm3384_vm3 = vcmp.gt.f32.partialorder %v3383_v17, 0.0  ;;  %v3385_v25 = vmul.f32 0.2, %v3383_v17 }
 0x49b   : > { %v3415_v33 = vrot.slane %v3409_v54, 4  ;;  %v3417_v19 = vrot.slane %v3409_v54, 5 }
 0x49c   : > { %v3386_v37 = vsel %vm3384_vm3, %v3383_v17, %v3385_v25 }
 0x49d   : > { %v3388_v7 = vmul.f32 %v3387_v0, %v3386_v37  ;;  %v3902_v47 = vpop.f32.mrb[36].mxu1 }
 0x49e   : > { %v3903_v58 = vpop.f32.mrb[37].mxu1 }
 0x49f   : > { %v3389_v6 = vsel %vm3330_vm15, %v3388_v7, 0.0  ;;  %v3904_v8 = vadd.f32 %v3903_v58, %v3902_v47  ;;  %v3905_v40 = vpop.f32.mrb[38].mxu1 }
 0x4a0   : > { %v3390_v41 = vrot.slane %v3389_v6, 4  ;;  %v3906_v13 = vpop.f32.mrb[39].mxu1 }
 0x4a1   : > { %v3223_v1 = vadd.f32 %v3904_v8, %v3816_v51  ;;  %v3907_v12 = vadd.f32 %v3906_v13, %v3905_v40 }
 0x4a2   : > { %v3391_v14 = vadd.f32 %v3390_v41, %v3389_v6 }
 0x4a3   : > { %v3400_v20 = vrot.slane %v3223_v1, 7  ;;  %v3226_v42 = vadd.f32 %v3907_v12, %v3819_v35 }
 0x4a4   : > { %v3392_v34 = vrot.slane %v3391_v14, 2  ;;  %v3820_v26 = vpop.f32.mrb[40].mxu0 }
 0x4a5   : > { %v3401_v32 = vsel %vm898_vm4, %v3399_v31, %v3400_v20  ;;  %v3821_v46 = vpop.f32.mrb[41].mxu0 }
 0x4a6   : > { %v3393_v3 = vadd.f32 %v3392_v34, %v3391_v14  ;;  %v3405_v21 = vmax.f32 %v3215_v9, %v3401_v32  ;;  %v3822_v43 = vadd.f32 %v3821_v46, %v3820_v26  ;;  %v3823_v48 = vpop.f32.mrb[42].mxu0  ;;  %v3426_v9 = vsel %vm898_vm4, %v3415_v33, %v3417_v19 }
 0x4a7   : > { %v3824_v10 = vpop.f32.mrb[43].mxu0 }
 0x4a8   : > { %v3394_v23 = vrot.slane %v3393_v3, 1  ;;  %v3411_v15 = vrot.slane %v3405_v21, 1  ;;  %v3825_v11 = vadd.f32 %v3824_v10, %v3823_v48 }
 0x4aa   : > { %v3395_v59 = vadd.f32 %v3394_v23, %v3393_v3  ;;  %v3413_v56 = vmax.f32 %v3405_v21, %v3411_v15 }
 0x4ab   : > { %v3908_v52 = vpop.f32.mrb[40].mxu1 }
 0x4ac   : > { %v3396_v27 = vadd.f32 %v3395_v59, %v3337_v45  ;;  %v3909_v55 = vpop.f32.mrb[41].mxu1  ;;  %v3420_v51 = vrot.slane %v3413_v56, 6  ;;  %v3422_v31 = vrot.slane %v3413_v56, 7  ;;  %v3424_v49 = vrot.slane %v3413_v56, 1 }
 0x4ad   : > { %v3910_v57 = vadd.f32 %v3909_v55, %v3908_v52  ;;  %v3911_v5 = vpop.f32.mrb[42].mxu1 }
 0x4ae   : > { %v3912_v53 = vpop.f32.mrb[43].mxu1  ;;  %v3427_v2 = vsel %vm3310_vm0, %v3426_v9, %v3420_v51 }
 0x4af   : > { %v3231_v18 = vadd.f32 %v3910_v57, %v3822_v43  ;;  %v3913_v22 = vadd.f32 %v3912_v53, %v3911_v5  ;;  %v3428_v29 = vsel %vm3312_vm1, %v3427_v2, %v3422_v31 }
 0x4b0   : > { %v3429_v39 = vsel %vm3314_vm2, %v3428_v29, %v3413_v56 }
 0x4b1   : > { %v3234_v50 = vadd.f32 %v3913_v22, %v3825_v11  ;;  %v3430_v63 = vsel %vm3316_vm8, %v3429_v39, %v3424_v49 }
 0x4b2   : > { %v3431_v60 = vadd.f32 %v6556_v16, %v3430_v63 }
 0x4b3   : > { %v3447_v35 = vrot.slane %v3234_v50, 7 }
 0x4b4   : > { %vm3432_vm5 = vcmp.gt.f32.partialorder %v3431_v60, 0.0  ;;  %v3433_v62 = vmul.f32 0.2, %v3431_v60 }
 0x4b5   : > { %v3452_v28 = vmax.f32 %v3226_v42, %v3447_v35 }
 0x4b6   : > { %v3434_v44 = vsel %vm3432_vm5, %v3431_v60, %v3433_v62 }
 0x4b7   : > { %v3436_v17 = vmul.f32 %v3435_v24, %v3434_v44  ;;  %v3455_v34 = vrot.slane %v3452_v28, 1 }
 0x4b9   : > { %v3437_v25 = vsel %vm3330_vm15, %v3436_v17, 0.0  ;;  %v3457_v42 = vmax.f32 %v3452_v28, %v3455_v34 }
 0x4ba   : > { %v3438_v30 = vrot.slane %v3437_v25, 4 }
 0x4bb   : > { %v3463_v32 = vrot.slane %v3457_v42, 2  ;;  %v3465_v46 = vrot.slane %v3457_v42, 3  ;;  %v3467_v48 = vrot.slane %v3457_v42, 4 }
 0x4bc   : > { %v3439_v0 = vadd.f32 %v3438_v30, %v3437_v25 }
 0x4bd   : > { %v3476_v59 = vsel %vm898_vm4, %v3463_v32, %v3465_v46 }
 0x4be   : > { %v3440_v37 = vrot.slane %v3439_v0, 2  ;;  %v3477_v55 = vsel %vm3310_vm0, %v3476_v59, %v3467_v48 }
 0x4c0   : > { %v3441_v7 = vadd.f32 %v3440_v37, %v3439_v0 }
 0x4c2   : > { %v3442_v38 = vrot.slane %v3441_v7, 1 }
 0x4c4   : > { %v3443_v6 = vadd.f32 %v3442_v38, %v3441_v7 }
 0x4c6   : > { %v6589_v41 = vadd.f32 %v3443_v6, %v3396_v27 }
 0x4d1   : > { %v3826_v47 = vpop.f32.mrb[44].mxu0 }
 0x4d2   : > { %v3827_v58 = vpop.f32.mrb[45].mxu0 }
 0x4d3   : > { %v3828_v61 = vadd.f32 %v3827_v58, %v3826_v47  ;;  %v3829_v14 = vpop.f32.mrb[46].mxu0 }
 0x4d4   : > { %v3830_v8 = vpop.f32.mrb[47].mxu0 }
 0x4d5   : > { %v3831_v40 = vadd.f32 %v3830_v8, %v3829_v14 }
 0x4d8   : > { %v3914_v13 = vpop.f32.mrb[44].mxu1 }
 0x4d9   : > { %v3915_v36 = vpop.f32.mrb[45].mxu1 }
 0x4da   : > { %v3916_v1 = vadd.f32 %v3915_v36, %v3914_v13  ;;  %v3917_v12 = vpop.f32.mrb[46].mxu1 }
 0x4db   : > { %v3918_v4 = vpop.f32.mrb[47].mxu1 }
 0x4dc   : > { %v3239_v3 = vadd.f32 %v3916_v1, %v3828_v61  ;;  %v3919_v20 = vadd.f32 %v3918_v4, %v3917_v12 }
 0x4de   : > { %v3448_v26 = vrot.slane %v3239_v3, 7  ;;  %v3242_v23 = vadd.f32 %v3919_v20, %v3831_v40 }
 0x4e0   : > { %v3449_v54 = vsel %vm898_vm4, %v3447_v35, %v3448_v26  ;;  %v3485_v35 = vld [vmem:[%s6643_s6 + $0x12] sm:$0x3f] }
 0x4e1   : > { %v3453_v21 = vmax.f32 %v3231_v18, %v3449_v54 }
 0x4e3   : > { %v3459_v43 = vrot.slane %v3453_v21, 1 }
 0x4e4   : > { %v3832_v45 = vpop.f32.mrb[48].mxu0 }
 0x4e5   : > { %v3461_v10 = vmax.f32 %v3453_v21, %v3459_v43  ;;  %v3833_v15 = vpop.f32.mrb[49].mxu0 }
 0x4e6   : > { %v3834_v11 = vadd.f32 %v3833_v15, %v3832_v45  ;;  %v3835_v52 = vpop.f32.mrb[50].mxu0 }
 0x4e7   : > { %v3470_v27 = vrot.slane %v3461_v10, 5  ;;  %v3472_v33 = vrot.slane %v3461_v10, 6  ;;  %v3836_v19 = vpop.f32.mrb[51].mxu0  ;;  %v3474_v5 = vrot.slane %v3461_v10, 7 }
 0x4e8   : > { %v3837_v56 = vadd.f32 %v3836_v19, %v3835_v52 }
 0x4e9   : > { %v3478_v53 = vsel %vm3312_vm1, %v3477_v55, %v3470_v27 }
 0x4ea   : > { %v3479_v31 = vsel %vm3314_vm2, %v3478_v53, %v3472_v33 }
 0x4eb   : > { %v3920_v57 = vpop.f32.mrb[48].mxu1  ;;  %v3480_v22 = vsel %vm3316_vm8, %v3479_v31, %v3474_v5 }
 0x4ec   : > { %v3921_v51 = vpop.f32.mrb[49].mxu1  ;;  %v3481_v49 = vadd.f32 %v6556_v16, %v3480_v22 }
 0x4ed   : > { %v3922_v18 = vadd.f32 %v3921_v51, %v3920_v57  ;;  %v3923_v9 = vpop.f32.mrb[50].mxu1 }
 0x4ee   : > { %v3924_v2 = vpop.f32.mrb[51].mxu1  ;;  %vm3482_vm6 = vcmp.gt.f32.partialorder %v3481_v49, 0.0  ;;  %v3483_v63 = vmul.f32 0.2, %v3481_v49 }
 0x4ef   : > { %v3247_v29 = vadd.f32 %v3922_v18, %v3834_v11  ;;  %v3925_v50 = vadd.f32 %v3924_v2, %v3923_v9 }
 0x4f0   : > { %v3484_v62 = vsel %vm3482_vm6, %v3481_v49, %v3483_v63 }
 0x4f1   : > { %v3250_v39 = vadd.f32 %v3925_v50, %v3837_v56  ;;  %v3498_v60 = vrot.slane %v3247_v29, 7  ;;  %v3486_v24 = vmul.f32 %v3485_v35, %v3484_v62 }
 0x4f3   : > { %v3499_v28 = vrot.slane %v3250_v39, 7  ;;  %v3487_v25 = vsel %vm3330_vm15, %v3486_v24, 0.0 }
 0x4f4   : > { %v3488_v30 = vrot.slane %v3487_v25, 4 }
 0x4f5   : > { %v3500_v44 = vsel %vm898_vm4, %v3498_v60, %v3499_v28 }
 0x4f6   : > { %v3505_v17 = vmax.f32 %v3242_v23, %v3500_v44  ;;  %v3489_v7 = vadd.f32 %v3488_v30, %v3487_v25 }
 0x4f8   : > { %v3508_v38 = vrot.slane %v3505_v17, 1  ;;  %v3490_v61 = vrot.slane %v3489_v7, 2 }
 0x4fa   : > { %v3838_v0 = vpop.f32.mrb[52].mxu0  ;;  %v3491_v13 = vadd.f32 %v3490_v61, %v3489_v7  ;;  %v3510_v34 = vmax.f32 %v3505_v17, %v3508_v38 }
 0x4fb   : > { %v3839_v37 = vpop.f32.mrb[53].mxu0 }
 0x4fc   : > { %v3840_v6 = vadd.f32 %v3839_v37, %v3838_v0  ;;  %v3841_v47 = vpop.f32.mrb[54].mxu0  ;;  %v3492_v4 = vrot.slane %v3491_v13, 1  ;;  %v3516_v26 = vrot.slane %v3510_v34, 1  ;;  %v3518_v10 = vrot.slane %v3510_v34, 2 }
 0x4fd   : > { %v3842_v58 = vpop.f32.mrb[55].mxu0  ;;  %v3520_v31 = vrot.slane %v3510_v34, 3 }
 0x4fe   : > { %v3843_v14 = vadd.f32 %v3842_v58, %v3841_v47  ;;  %v3926_v8 = vpop.f32.mrb[52].mxu1  ;;  %v3493_v42 = vadd.f32 %v3492_v4, %v3491_v13  ;;  %v3527_v27 = vsel %vm898_vm4, %v3510_v34, %v3516_v26 }
 0x4ff   : > { %v3927_v40 = vpop.f32.mrb[53].mxu1 }
 0x500   : > { %v3928_v36 = vadd.f32 %v3927_v40, %v3926_v8  ;;  %v3929_v1 = vpop.f32.mrb[54].mxu1  ;;  %v6604_v21 = vadd.f32 %v3493_v42, %v6589_v41  ;;  %v3528_v41 = vsel %vm3310_vm0, %v3527_v27, %v3518_v10  ;;  %v3536_v8 = vld [vmem:[%s6643_s6 + $0x18] sm:$0x3f] }
 0x501   : > { %v3930_v12 = vpop.f32.mrb[55].mxu1  ;;  %v3529_v49 = vsel %vm3312_vm1, %v3528_v41, %v3520_v31 }
 0x502   : > { %v3255_v3 = vadd.f32 %v3928_v36, %v3840_v6  ;;  %v3931_v20 = vadd.f32 %v3930_v12, %v3929_v1 }
 0x504   : > { %v3501_v23 = vrot.slane %v3255_v3, 7  ;;  %v3258_v54 = vadd.f32 %v3931_v20, %v3843_v14  ;;  %v3844_v32 = vpop.f32.mrb[56].mxu0 }
 0x505   : > { %v3845_v46 = vpop.f32.mrb[57].mxu0 }
 0x506   : > { %v3502_v43 = vsel %vm898_vm4, %v3499_v28, %v3501_v23  ;;  %v3846_v48 = vadd.f32 %v3845_v46, %v3844_v32  ;;  %v3847_v45 = vpop.f32.mrb[58].mxu0  ;;  %v3932_v59 = vpop.f32.mrb[56].mxu1 }
 0x507   : > { %v3506_v15 = vmax.f32 %v3247_v29, %v3502_v43  ;;  %v3848_v11 = vpop.f32.mrb[59].mxu0  ;;  %v3933_v52 = vpop.f32.mrb[57].mxu1 }
 0x508   : > { %v3849_v33 = vadd.f32 %v3848_v11, %v3847_v45  ;;  %v3934_v19 = vadd.f32 %v3933_v52, %v3932_v59  ;;  %v3935_v55 = vpop.f32.mrb[58].mxu1 }
 0x509   : > { %v3512_v56 = vrot.slane %v3506_v15, 1  ;;  %v3936_v57 = vpop.f32.mrb[59].mxu1 }
 0x50a   : > { %v3263_v5 = vadd.f32 %v3934_v19, %v3846_v48  ;;  %v3937_v53 = vadd.f32 %v3936_v57, %v3935_v55 }
 0x50b   : > { %v3514_v51 = vmax.f32 %v3506_v15, %v3512_v56  ;;  %v3594_v56 = vld [vmem:[%s6643_s6 + $0x1e] sm:$0x3f] }
 0x50c   : > { %v3549_v18 = vrot.slane %v3263_v5, 7  ;;  %v3266_v9 = vadd.f32 %v3937_v53, %v3849_v33 }
 0x50d   : > { %v3523_v22 = vrot.slane %v3514_v51, 4  ;;  %v3525_v2 = vrot.slane %v3514_v51, 5 }
 0x50e   : > { %v3557_v29 = vmax.f32 %v3255_v3, %v3549_v18  ;;  %v3550_v50 = vrot.slane %v3266_v9, 7  ;;  %v3850_v39 = vpop.f32.mrb[60].mxu0  ;;  %v3938_v63 = vpop.f32.mrb[60].mxu1 }
 0x50f   : > { %v3530_v35 = vsel %vm3314_vm2, %v3529_v49, %v3523_v22  ;;  %v3851_v60 = vpop.f32.mrb[61].mxu0  ;;  %v3939_v28 = vpop.f32.mrb[61].mxu1  ;;  %v3606_v49 = vld [vmem:[#allocation3] sm:$0x1] }
 0x510   : > { %v3531_v62 = vsel %vm3316_vm8, %v3530_v35, %v3525_v2  ;;  %v3561_v24 = vrot.slane %v3557_v29, 1  ;;  %v3551_v44 = vsel %vm898_vm4, %v3549_v18, %v3550_v50  ;;  %v3852_v17 = vadd.f32 %v3851_v60, %v3850_v39  ;;  %v3853_v25 = vpop.f32.mrb[62].mxu0  ;;  %v3941_v30 = vpop.f32.mrb[62].mxu1 }
 0x511   : > { %v3532_v0 = vadd.f32 %v6556_v16, %v3531_v62  ;;  %v3558_v37 = vmax.f32 %v3258_v54, %v3551_v44  ;;  %v3940_v7 = vadd.f32 %v3939_v28, %v3938_v63  ;;  %v3854_v38 = vpop.f32.mrb[63].mxu0  ;;  %v3942_v6 = vpop.f32.mrb[63].mxu1 }
 0x512   : > { %v3563_v47 = vmax.f32 %v3557_v29, %v3561_v24 }
 0x513   : > { %v3565_v58 = vrot.slane %v3558_v37, 1  ;;  %v3271_v61 = vadd.f32 %v3940_v7, %v3852_v17  ;;  %vm3533_vm7 = vcmp.gt.f32.partialorder %v3532_v0, 0.0  ;;  %v3534_v14 = vmul.f32 0.2, %v3532_v0 }
 0x514   : > { %v3573_v1 = vrot.slane %v3563_v47, 6 }
 0x515   : > { %v3567_v40 = vmax.f32 %v3558_v37, %v3565_v58  ;;  %v3552_v13 = vrot.slane %v3271_v61, 7  ;;  %v3535_v34 = vsel %vm3533_vm7, %v3532_v0, %v3534_v14 }
 0x516   : > { %v3537_v36 = vmul.f32 %v3536_v8, %v3535_v34 }
 0x517   : > { %v3576_v12 = vrot.slane %v3567_v40, 7  ;;  %v3553_v4 = vsel %vm898_vm4, %v3550_v50, %v3552_v13  ;;  %v3578_v42 = vrot.slane %v3567_v40, 1  ;;  %v3580_v54 = vrot.slane %v3567_v40, 2 }
 0x518   : > { %v3559_v3 = vmax.f32 %v3263_v5, %v3553_v4  ;;  %v3538_v20 = vsel %vm3330_vm15, %v3537_v36, 0.0 }
 0x519   : > { %v3585_v26 = vsel %vm898_vm4, %v3573_v1, %v3576_v12  ;;  %v3539_v23 = vrot.slane %v3538_v20, 4 }
 0x51a   : > { %v3586_v32 = vsel %vm3310_vm0, %v3585_v26, %v3567_v40  ;;  %v3569_v46 = vrot.slane %v3559_v3, 1 }
 0x51b   : > { %v3587_v43 = vsel %vm3312_vm1, %v3586_v32, %v3578_v42  ;;  %v3540_v48 = vadd.f32 %v3539_v23, %v3538_v20 }
 0x51c   : > { %v3571_v45 = vmax.f32 %v3559_v3, %v3569_v46  ;;  %v3588_v59 = vsel %vm3314_vm2, %v3587_v43, %v3580_v54 }
 0x51d   : > { %v3541_v10 = vrot.slane %v3540_v48, 2 }
 0x51e   : > { %v3583_v15 = vrot.slane %v3571_v45, 3 }
 0x51f   : > { %v3542_v11 = vadd.f32 %v3541_v10, %v3540_v48 }
 0x520   : > { %v3589_v52 = vsel %vm3316_vm8, %v3588_v59, %v3583_v15 }
 0x521   : > { %v3590_v27 = vadd.f32 %v6556_v16, %v3589_v52  ;;  %v3543_v33 = vrot.slane %v3542_v11, 1 }
 0x523   : > { %v3544_v19 = vadd.f32 %v3543_v33, %v3542_v11  ;;  %vm3591_vm4 = vcmp.gt.f32.partialorder %v3590_v27, 0.0  ;;  %v3592_v55 = vmul.f32 0.2, %v3590_v27 }
 0x525   : > { %v3545_v57 = vadd.f32 %v3544_v19, %v6604_v21  ;;  %v3593_v5 = vsel %vm3591_vm4, %v3590_v27, %v3592_v55 }
 0x526   : > { %v3595_v53 = vmul.f32 %v3594_v56, %v3593_v5 }
 0x528   : > { %v3596_v41 = vsel %vm3330_vm15, %v3595_v53, 0.0 }
 0x529   : > { %v3597_v51 = vrot.slane %v3596_v41, 4 }
 0x52b   : > { %v3598_v31 = vadd.f32 %v3597_v51, %v3596_v41 }
 0x52d   : > { %v3599_v18 = vrot.slane %v3598_v31, 2 }
 0x52f   : > { %v3600_v9 = vadd.f32 %v3599_v18, %v3598_v31 }
 0x531   : > { %v3601_v16 = vrot.slane %v3600_v9, 1 }
 0x533   : > { %v3602_v22 = vadd.f32 %v3601_v16, %v3600_v9 }
 0x535   : > { %v3603_v2 = vadd.f32 %v3602_v22, %v3545_v57 }
 0x537   : > { %3604 = vadd.xlane.f32.xlu1 %v3603_v2 }
 0x5c4   : > { %v3605_v29 = vpop.xlane.xlu1 %3604 }
 0x5c5   : > { %v3607_v50 = vadd.f32 %v3606_v49, %v3605_v29 }
 0x5c7   : > { %v3608_v39 = vand.u32 2147483647, %v3607_v50  ;;  %vm3612_vm10 = vcmp.ge.f32.partialorder %v3607_v50, 0.0 }
 0x5c9   : > { %v3609_v63 = vsub.f32 0.0, %v3608_v39 }
 0x5cb   : > { %v3610_v35 = vmul.f32 1.442695, %v3609_v63 }
 0x5cd   : > { %4798 = vpow2.f32 %v3610_v35 }
 0x5d7   : > { %v4799_v21 = vpop.eup %4798 }
 0x5d8   : > { %v3613_v60 = vadd.f32 1.0, %v4799_v21 }
 0x5da   : > { %4800 = vrcp.f32 %v3613_v60 }
 0x5e4   : > { %v4801_v28 = vpop.eup %4800 }
 0x5e5   : > { %v3616_v62 = vmul.f32 %v4801_v28, %v4799_v21 }
 0x5e7   : > { %v3617_v24 = vsel %vm3612_vm10, %v4801_v28, %v3616_v62 }
 0x5e8   : > { %3619 = vst.msk [vmem:[%s353_s23] sm:$0x1] %vm3618_vm9, %v3617_v24 }
 0x5e9 PF: > { %s22_s29 = sadd.s32 1, %s4922_s29  }
 0x5ea   : > { %p19_p5 = scmp.ge.s32.totalorder %s22_s29, 4  }
 0x5ec   :  { %21 = sbr.rel (!%p19_p5) target bundleno = 5 (0x5), region = 94 }
 0x5f3   :  { %3637 = vsyncpa [#allocation5], 1 }
 0x5f4   :  { %3639 = vsyncpa [#allocation5 + $0x1], 1 }
 0x5f5   :  { %3640 = vsyncpa [#allocation7], 1 }

</bundles_post_ra>
